<compile_context>
chip_gen: v7x
topology: tpu7x:2x2x1
jax: 0.10.0
libtpu: 0.0.40
codegen_flags: <defaults>
</compile_context>

<pallas_src>
from functools import partial

import jax
import jax.numpy as jnp
from jax.experimental import pallas as pl
from jax.experimental.pallas import tpu as pltpu

COUT_PAD = 128           # lane-dense padded channel / feature width
K1_PAD = 32              # conv1 reduction: 5*5*1 = 25  -> 32
K2_PAD = 160             # conv2 reduction: 5*5*6 = 150 -> 160


def _round_up(x, m):
    return (x + m - 1) // m * m


# ----------------------------- Pallas kernels ------------------------------

def _conv_relu_pool_kernel(p00_ref, p01_ref, p10_ref, p11_ref, w_ref, b_ref, o_ref):
    """Fused conv (as matmul over im2col patches) + bias + ReLU + 2x2 max-pool.

    p{a}{b}_ref : (tm, Kpad)  patches evaluated at pool offset (a, b)
    w_ref       : (Kpad, 128) zero-padded conv weight matrix
    b_ref       : (1, 128)    zero-padded bias (f32)
    o_ref       : (tm, 128)   pooled activation (lane-dense)
    """
    w = w_ref[...]
    m00 = jnp.dot(p00_ref[...], w, preferred_element_type=jnp.float32)
    m01 = jnp.dot(p01_ref[...], w, preferred_element_type=jnp.float32)
    m10 = jnp.dot(p10_ref[...], w, preferred_element_type=jnp.float32)
    m11 = jnp.dot(p11_ref[...], w, preferred_element_type=jnp.float32)
    acc = jnp.maximum(jnp.maximum(m00, m01), jnp.maximum(m10, m11))
    o_ref[...] = jnp.maximum(acc + b_ref[...], 0.0).astype(o_ref.dtype)


def _fc3_fused_kernel(x_ref, w1_ref, b1_ref, w2_ref, b2_ref, w3_ref, b3_ref, o_ref):
    """fc1 -> ReLU -> fc2 -> ReLU -> fc3, all intermediates stay in VMEM."""
    h = jnp.dot(x_ref[...], w1_ref[...], preferred_element_type=jnp.float32)
    h = jnp.maximum(h + b1_ref[...], 0.0)
    h = jnp.dot(h.astype(w2_ref.dtype), w2_ref[...], preferred_element_type=jnp.float32)
    h = jnp.maximum(h + b2_ref[...], 0.0)
    h = jnp.dot(h.astype(w3_ref.dtype), w3_ref[...], preferred_element_type=jnp.float32)
    o_ref[...] = (h + b3_ref[...]).astype(o_ref.dtype)


# ------------------------------ wrappers ------------------------------------

def _im2col_pool_offsets(x, kh, kw):
    """x: (N, H, W, C) -> list of 4 patch matrices, one per 2x2-pool offset.

    mats[a*2+b] has shape (N*Hp*Wp, kh*kw*C); row (n, pi, pj) holds the patch for
    conv output position (2*pi + a, 2*pj + b) of image n, feature order (di, dj, c).
    """
    N, H, W, C = x.shape
    Ho, Wo = H - kh + 1, W - kw + 1
    Hp, Wp = Ho // 2, Wo // 2
    mats = []
    for a in range(2):
        for b in range(2):
            cols = jnp.stack(
                [x[:, a + di: a + di + 2 * Hp: 2, b + dj: b + dj + 2 * Wp: 2, :]
                 for di in range(kh) for dj in range(kw)],
                axis=3)                                   # (N, Hp, Wp, kh*kw, C)
            mats.append(cols.reshape(N * Hp * Wp, kh * kw * C))
    return mats, (N, Hp, Wp)


def conv_relu_pool(x_nhwc, w_mat, b_row, kh, kw, compute_dtype):
    """Valid conv (cross-correlation) + bias + ReLU + 2x2 max-pool.

    x_nhwc : (N, H, W, C) in compute_dtype
    w_mat  : (Kpad, 128)   zero-padded weight matrix
    b_row  : (1, 128)      zero-padded bias (f32)
    returns: (N, Ho//2, Wo//2, 128) pooled activation (padded channels are 0)
    """
    mats, (N, Hp, Wp) = _im2col_pool_offsets(x_nhwc, kh, kw)
    M, K = mats[0].shape
    Kp = w_mat.shape[0]
    tm = min(512, _round_up(M, 8))
    Mp = _round_up(M, tm)
    mats = [jnp.pad(p, ((0, Mp - M), (0, Kp - K))) for p in mats]

    itm = jnp.dtype(compute_dtype).itemsize
    cost = pl.CostEstimate(
        flops=4 * 2 * Mp * Kp * COUT_PAD,
        transcendentals=0,
        bytes_accessed=(4 * Mp * Kp + Kp * COUT_PAD) * itm + Mp * COUT_PAD * itm)

    out = pl.pallas_call(
        _conv_relu_pool_kernel,
        out_shape=jax.ShapeDtypeStruct((Mp, COUT_PAD), compute_dtype),
        grid=(Mp // tm,),
        in_specs=[pl.BlockSpec((tm, Kp), lambda i: (i, 0))] * 4 + [
            pl.BlockSpec((Kp, COUT_PAD), lambda i: (0, 0)),
            pl.BlockSpec((1, COUT_PAD), lambda i: (0, 0)),
        ],
        out_specs=pl.BlockSpec((tm, COUT_PAD), lambda i: (i, 0)),
        compiler_params=pltpu.CompilerParams(dimension_semantics=("parallel",)),
        cost_estimate=cost,
    )(*mats, w_mat, b_row)
    return out[:M].reshape(N, Hp, Wp, COUT_PAD)


def fc_head(x, w1, b1, w2, b2, w3, b3):
    """Fused fc1(ReLU) -> fc2(ReLU) -> fc3 head.  x: (N, 2048). Returns (N, 10) f32."""
    N, K = x.shape
    tm = min(256, _round_up(N, 8))
    Np = _round_up(N, tm)
    xp = jnp.pad(x, ((0, Np - N), (0, 0)))

    itm = x.dtype.itemsize
    cost = pl.CostEstimate(
        flops=2 * Np * (K * 128 + 128 * 128 + 128 * 128),
        transcendentals=0,
        bytes_accessed=Np * K * itm + (K * 128 + 2 * 128 * 128) * w1.dtype.itemsize
        + Np * 128 * 4)

    out = pl.pallas_call(
        _fc3_fused_kernel,
        out_shape=jax.ShapeDtypeStruct((Np, 128), jnp.float32),
        grid=(Np // tm,),
        in_specs=[
            pl.BlockSpec((tm, K), lambda i: (i, 0)),
            pl.BlockSpec((K, 128), lambda i: (0, 0)),
            pl.BlockSpec((1, 128), lambda i: (0, 0)),
            pl.BlockSpec((128, 128), lambda i: (0, 0)),
            pl.BlockSpec((1, 128), lambda i: (0, 0)),
            pl.BlockSpec((128, 128), lambda i: (0, 0)),
            pl.BlockSpec((1, 128), lambda i: (0, 0)),
        ],
        out_specs=pl.BlockSpec((tm, 128), lambda i: (i, 0)),
        compiler_params=pltpu.CompilerParams(dimension_semantics=("parallel",)),
        cost_estimate=cost,
    )(xp, w1, b1, w2, b2, w3, b3)
    return out[:N, :10]


# ----------------------- parameter prep (one-time) ---------------------------

def prepare_params(params, compute_dtype):
    """Zero-pad to lane-dense (128) widths / 8-aligned K, permute fc1 rows to the
    NHWC-padded flatten order, and cast matmul operands to compute_dtype."""
    cd = compute_dtype
    w1 = jnp.pad(params["w1"].reshape(25, 6), ((0, K1_PAD - 25), (0, 128 - 6))).astype(cd)
    b1 = jnp.pad(params["b1"], (0, 128 - 6)).reshape(1, 128).astype(jnp.float32)
    w2 = jnp.pad(params["w2"].reshape(150, 16), ((0, K2_PAD - 150), (0, 128 - 16))).astype(cd)
    b2 = jnp.pad(params["b2"], (0, 128 - 16)).reshape(1, 128).astype(jnp.float32)

    # torch flatten order is (c, h, w); our conv2 output flattens as (h, w, c_pad).
    wf1 = params["wf1"].reshape(16, 4, 4, 120).transpose(1, 2, 0, 3)      # (h, w, c, :)
    wf1 = jnp.pad(wf1, ((0, 0), (0, 0), (0, 128 - 16), (0, 128 - 120)))   # (4,4,128,128)
    wf1 = wf1.reshape(4 * 4 * 128, 128).astype(cd)
    bf1 = jnp.pad(params["bf1"], (0, 128 - 120)).reshape(1, 128).astype(jnp.float32)
    wf2 = jnp.pad(params["wf2"], ((0, 128 - 120), (0, 128 - 84))).astype(cd)
    bf2 = jnp.pad(params["bf2"], (0, 128 - 84)).reshape(1, 128).astype(jnp.float32)
    wf3 = jnp.pad(params["wf3"], ((0, 128 - 84), (0, 128 - 10))).astype(cd)
    bf3 = jnp.pad(params["bf3"], (0, 128 - 10)).reshape(1, 128).astype(jnp.float32)
    return dict(w1=w1, b1=b1, w2=w2, b2=b2,
                wf1=wf1, bf1=bf1, wf2=wf2, bf2=bf2, wf3=wf3, bf3=bf3)


# ------------------------------ the network ---------------------------------

def init_params(key):
    ks = jax.random.split(key, 10)
    s = 0.1
    return {
        "w1": s * jax.random.normal(ks[0], (5, 5, 1, 6), jnp.float32),
        "b1": s * jax.random.normal(ks[1], (6,), jnp.float32),
        "w2": s * jax.random.normal(ks[2], (5, 5, 6, 16), jnp.float32),
        "b2": s * jax.random.normal(ks[3], (16,), jnp.float32),
        "wf1": s * jax.random.normal(ks[4], (16 * 4 * 4, 120), jnp.float32),
        "bf1": s * jax.random.normal(ks[5], (120,), jnp.float32),
        "wf2": s * jax.random.normal(ks[6], (120, 84), jnp.float32),
        "bf2": s * jax.random.normal(ks[7], (84,), jnp.float32),
        "wf3": s * jax.random.normal(ks[8], (84, 10), jnp.float32),
        "bf3": s * jax.random.normal(ks[9], (10,), jnp.float32),
    }


def net_forward(params, x_nchw, compute_dtype=jnp.bfloat16):
    """x_nchw: (N, 1, 28, 28) float32 -> logits (N, 10) float32."""
    pp = prepare_params(params, compute_dtype)
    x = jnp.transpose(x_nchw, (0, 2, 3, 1)).astype(compute_dtype)          # NHWC
    h = conv_relu_pool(x, pp["w1"], pp["b1"], 5, 5, compute_dtype)         # (N,12,12,128)
    h = conv_relu_pool(h[..., :6], pp["w2"], pp["b2"], 5, 5, compute_dtype)  # (N,4,4,128)
    h = h.reshape(h.shape[0], 4 * 4 * 128)                                 # lane-dense flatten
    return fc_head(h, pp["wf1"], pp["bf1"], pp["wf2"], pp["bf2"], pp["wf3"], pp["bf3"])


# --------------------------- pure-JAX reference ------------------------------

def net_forward_ref(params, x_nchw):
    dn = jax.lax.conv_dimension_numbers(x_nchw.shape, (6, 1, 5, 5),
                                        ("NCHW", "OIHW", "NCHW"))

    def conv(x, w_hwio, b):
        w_oihw = jnp.transpose(w_hwio, (3, 2, 0, 1))
        y = jax.lax.conv_general_dilated(x, w_oihw, (1, 1), "VALID",
                                         dimension_numbers=dn)
        return jax.nn.relu(y + b[None, :, None, None])

    def pool(x):  # NCHW 2x2 max pool
        N, C, H, W = x.shape
        return x.reshape(N, C, H // 2, 2, W // 2, 2).max(axis=(3, 5))

    x = pool(conv(x_nchw, params["w1"], params["b1"]))
    x = pool(conv(x, params["w2"], params["b2"]))
    x = x.reshape(x.shape[0], -1)
    x = jax.nn.relu(x @ params["wf1"] + params["bf1"])
    x = jax.nn.relu(x @ params["wf2"] + params["bf2"])
    return x @ params["wf3"] + params["bf3"]


# ---------------------------------- main -------------------------------------

if __name__ == "__main__":
    key = jax.random.PRNGKey(0)
    k_x, k_p = jax.random.split(key)

    # Input spatial size is forced by the architecture (fc1 expects 16*4*4 -> 28x28).
    x = jax.random.normal(k_x, (8, 1, 28, 28), jnp.float32)
    params = init_params(k_p)

    fwd = jax.jit(net_forward, static_argnames=("compute_dtype",))
    ref = jax.block_until_ready(net_forward_ref(params, x))

    # f32-operand path: exact-math check against the reference.
    out_f32 = jax.block_until_ready(fwd(params, x, compute_dtype=jnp.float32))
    assert out_f32.shape == (8, 10) and out_f32.dtype == jnp.float32
    assert jnp.allclose(out_f32, ref, rtol=2e-3, atol=2e-3), "f32 path mismatch vs reference"

    # bf16 MXU path (default / perf): looser tolerance for bf16 operand rounding.
    out_bf16 = jax.block_until_ready(fwd(params, x, compute_dtype=jnp.bfloat16))
    assert out_bf16.shape == (8, 10)
    assert jnp.allclose(out_bf16, ref, rtol=1e-1, atol=1e-1), "bf16 path mismatch vs reference"

    print("KERNEL_OK")
</pallas_src>

<mosaic_0001>
module attributes {stable_mosaic.version = 11 : i64} {
  func.func @_conv_relu_pool_kernel(%arg0: i32, %arg1: memref<512x32xf32, #tpu.memory_space<vmem>>, %arg2: memref<512x32xf32, #tpu.memory_space<vmem>>, %arg3: memref<512x32xf32, #tpu.memory_space<vmem>>, %arg4: memref<512x32xf32, #tpu.memory_space<vmem>>, %arg5: memref<32x128xf32, #tpu.memory_space<vmem>>, %arg6: memref<1x128xf32, #tpu.memory_space<vmem>>, %arg7: memref<512x128xf32, #tpu.memory_space<vmem>>) attributes {dimension_semantics = [#tpu.dimension_semantics<parallel>], iteration_bounds = array<i64: 3>, scalar_prefetch = 0 : i64, scratch_operands = 0 : i64, tpu.core_type = #tpu.core_type<tc>, window_params = [{transform_indices = @transform_0, window_bounds = array<i64: 512, 32>}, {transform_indices = @transform_1, window_bounds = array<i64: 512, 32>}, {transform_indices = @transform_2, window_bounds = array<i64: 512, 32>}, {transform_indices = @transform_3, window_bounds = array<i64: 512, 32>}, {pipeline_mode = #tpu.pipeline_mode<synchronous>, transform_indices = @transform_4, window_bounds = array<i64: 32, 128>}, {pipeline_mode = #tpu.pipeline_mode<synchronous>, transform_indices = @transform_5, window_bounds = array<i64: 1, 128>}, {transform_indices = @transform_6, window_bounds = array<i64: 512, 128>}]} {
    %c0 = arith.constant 0 : index
    %c0_0 = arith.constant 0 : index
    %0 = vector.load %arg5[%c0, %c0_0] : memref<32x128xf32, #tpu.memory_space<vmem>>, vector<32x128xf32>
    %c0_1 = arith.constant 0 : index
    %c0_2 = arith.constant 0 : index
    %1 = vector.load %arg1[%c0_1, %c0_2] : memref<512x32xf32, #tpu.memory_space<vmem>>, vector<512x32xf32>
    %cst = arith.constant dense<0.000000e+00> : vector<512x128xf32>
    %2 = tpu.matmul %1, %0, %cst {dimension_numbers = #tpu.dot_dimension_numbers<[1], [0], [0], [1], [0, 0, 1, 1], [], []>} : vector<512x32xf32>, vector<32x128xf32>, vector<512x128xf32> -> vector<512x128xf32>
    %c0_3 = arith.constant 0 : index
    %c0_4 = arith.constant 0 : index
    %3 = vector.load %arg2[%c0_3, %c0_4] : memref<512x32xf32, #tpu.memory_space<vmem>>, vector<512x32xf32>
    %cst_5 = arith.constant dense<0.000000e+00> : vector<512x128xf32>
    %4 = tpu.matmul %3, %0, %cst_5 {dimension_numbers = #tpu.dot_dimension_numbers<[1], [0], [0], [1], [0, 0, 1, 1], [], []>} : vector<512x32xf32>, vector<32x128xf32>, vector<512x128xf32> -> vector<512x128xf32>
    %c0_6 = arith.constant 0 : index
    %c0_7 = arith.constant 0 : index
    %5 = vector.load %arg3[%c0_6, %c0_7] : memref<512x32xf32, #tpu.memory_space<vmem>>, vector<512x32xf32>
    %cst_8 = arith.constant dense<0.000000e+00> : vector<512x128xf32>
    %6 = tpu.matmul %5, %0, %cst_8 {dimension_numbers = #tpu.dot_dimension_numbers<[1], [0], [0], [1], [0, 0, 1, 1], [], []>} : vector<512x32xf32>, vector<32x128xf32>, vector<512x128xf32> -> vector<512x128xf32>
    %c0_9 = arith.constant 0 : index
    %c0_10 = arith.constant 0 : index
    %7 = vector.load %arg4[%c0_9, %c0_10] : memref<512x32xf32, #tpu.memory_space<vmem>>, vector<512x32xf32>
    %cst_11 = arith.constant dense<0.000000e+00> : vector<512x128xf32>
    %8 = tpu.matmul %7, %0, %cst_11 {dimension_numbers = #tpu.dot_dimension_numbers<[1], [0], [0], [1], [0, 0, 1, 1], [], []>} : vector<512x32xf32>, vector<32x128xf32>, vector<512x128xf32> -> vector<512x128xf32>
    %9 = arith.maximumf %2, %4 : vector<512x128xf32>
    %10 = arith.maximumf %6, %8 : vector<512x128xf32>
    %11 = arith.maximumf %9, %10 : vector<512x128xf32>
    %c0_12 = arith.constant 0 : index
    %c0_13 = arith.constant 0 : index
    %12 = vector.load %arg6[%c0_12, %c0_13] : memref<1x128xf32, #tpu.memory_space<vmem>>, vector<1x128xf32>
    %13 = vector.broadcast %12 : vector<1x128xf32> to vector<512x128xf32>
    %14 = arith.addf %11, %13 : vector<512x128xf32>
    %cst_14 = arith.constant 0.000000e+00 : f32
    %15 = vector.broadcast %cst_14 : f32 to vector<512x128xf32>
    %16 = arith.maximumf %14, %15 : vector<512x128xf32>
    %c0_15 = arith.constant 0 : index
    %c0_16 = arith.constant 0 : index
    %17 = vector.load %arg7[%c0_15, %c0_16] : memref<512x128xf32, #tpu.memory_space<vmem>>, vector<512x128xf32>
    tpu.vector_store %arg7[%c0_15, %c0_16], %16 {strides = array<i32>} : memref<512x128xf32, #tpu.memory_space<vmem>>, vector<512x128xf32>,
    return
  }
  func.func @transform_0(%arg0: i32) -> (i32, i32) {
    %c0_i32 = arith.constant 0 : i32
    %c0_i32_0 = arith.constant 0 : i32
    return %arg0, %c0_i32 : i32, i32
  }
  func.func @transform_1(%arg0: i32) -> (i32, i32) {
    %c0_i32 = arith.constant 0 : i32
    %c0_i32_0 = arith.constant 0 : i32
    return %arg0, %c0_i32 : i32, i32
  }
  func.func @transform_2(%arg0: i32) -> (i32, i32) {
    %c0_i32 = arith.constant 0 : i32
    %c0_i32_0 = arith.constant 0 : i32
    return %arg0, %c0_i32 : i32, i32
  }
  func.func @transform_3(%arg0: i32) -> (i32, i32) {
    %c0_i32 = arith.constant 0 : i32
    %c0_i32_0 = arith.constant 0 : i32
    return %arg0, %c0_i32 : i32, i32
  }
  func.func @transform_4(%arg0: i32) -> (i32, i32) {
    %c0_i32 = arith.constant 0 : i32
    %c0_i32_0 = arith.constant 0 : i32
    %c0_i32_1 = arith.constant 0 : i32
    return %c0_i32, %c0_i32_0 : i32, i32
  }
  func.func @transform_5(%arg0: i32) -> (i32, i32) {
    %c0_i32 = arith.constant 0 : i32
    %c0_i32_0 = arith.constant 0 : i32
    %c0_i32_1 = arith.constant 0 : i32
    return %c0_i32, %c0_i32_0 : i32, i32
  }
  func.func @transform_6(%arg0: i32) -> (i32, i32) {
    %c0_i32 = arith.constant 0 : i32
    %c0_i32_0 = arith.constant 0 : i32
    return %arg0, %c0_i32 : i32, i32
  }
}

module attributes {stable_mosaic.version = 11 : i64} {
  func.func @_conv_relu_pool_kernel(%arg0: i32, %arg1: memref<128x160xf32, #tpu.memory_space<vmem>>, %arg2: memref<128x160xf32, #tpu.memory_space<vmem>>, %arg3: memref<128x160xf32, #tpu.memory_space<vmem>>, %arg4: memref<128x160xf32, #tpu.memory_space<vmem>>, %arg5: memref<160x128xf32, #tpu.memory_space<vmem>>, %arg6: memref<1x128xf32, #tpu.memory_space<vmem>>, %arg7: memref<128x128xf32, #tpu.memory_space<vmem>>) attributes {dimension_semantics = [#tpu.dimension_semantics<parallel>], iteration_bounds = array<i64: 1>, scalar_prefetch = 0 : i64, scratch_operands = 0 : i64, tpu.core_type = #tpu.core_type<tc>, window_params = [{transform_indices = @transform_0, window_bounds = array<i64: 128, 160>}, {transform_indices = @transform_1, window_bounds = array<i64: 128, 160>}, {transform_indices = @transform_2, window_bounds = array<i64: 128, 160>}, {transform_indices = @transform_3, window_bounds = array<i64: 128, 160>}, {pipeline_mode = #tpu.pipeline_mode<synchronous>, transform_indices = @transform_4, window_bounds = array<i64: 160, 128>}, {pipeline_mode = #tpu.pipeline_mode<synchronous>, transform_indices = @transform_5, window_bounds = array<i64: 1, 128>}, {transform_indices = @transform_6, window_bounds = array<i64: 128, 128>}]} {
    %c0 = arith.constant 0 : index
    %c0_0 = arith.constant 0 : index
    %0 = vector.load %arg5[%c0, %c0_0] : memref<160x128xf32, #tpu.memory_space<vmem>>, vector<160x128xf32>
    %c0_1 = arith.constant 0 : index
    %c0_2 = arith.constant 0 : index
    %1 = vector.load %arg1[%c0_1, %c0_2] : memref<128x160xf32, #tpu.memory_space<vmem>>, vector<128x160xf32>
    %cst = arith.constant dense<0.000000e+00> : vector<128x128xf32>
    %2 = tpu.matmul %1, %0, %cst {dimension_numbers = #tpu.dot_dimension_numbers<[1], [0], [0], [1], [0, 0, 1, 1], [], []>} : vector<128x160xf32>, vector<160x128xf32>, vector<128x128xf32> -> vector<128x128xf32>
    %c0_3 = arith.constant 0 : index
    %c0_4 = arith.constant 0 : index
    %3 = vector.load %arg2[%c0_3, %c0_4] : memref<128x160xf32, #tpu.memory_space<vmem>>, vector<128x160xf32>
    %cst_5 = arith.constant dense<0.000000e+00> : vector<128x128xf32>
    %4 = tpu.matmul %3, %0, %cst_5 {dimension_numbers = #tpu.dot_dimension_numbers<[1], [0], [0], [1], [0, 0, 1, 1], [], []>} : vector<128x160xf32>, vector<160x128xf32>, vector<128x128xf32> -> vector<128x128xf32>
    %c0_6 = arith.constant 0 : index
    %c0_7 = arith.constant 0 : index
    %5 = vector.load %arg3[%c0_6, %c0_7] : memref<128x160xf32, #tpu.memory_space<vmem>>, vector<128x160xf32>
    %cst_8 = arith.constant dense<0.000000e+00> : vector<128x128xf32>
    %6 = tpu.matmul %5, %0, %cst_8 {dimension_numbers = #tpu.dot_dimension_numbers<[1], [0], [0], [1], [0, 0, 1, 1], [], []>} : vector<128x160xf32>, vector<160x128xf32>, vector<128x128xf32> -> vector<128x128xf32>
    %c0_9 = arith.constant 0 : index
    %c0_10 = arith.constant 0 : index
    %7 = vector.load %arg4[%c0_9, %c0_10] : memref<128x160xf32, #tpu.memory_space<vmem>>, vector<128x160xf32>
    %cst_11 = arith.constant dense<0.000000e+00> : vector<128x128xf32>
    %8 = tpu.matmul %7, %0, %cst_11 {dimension_numbers = #tpu.dot_dimension_numbers<[1], [0], [0], [1], [0, 0, 1, 1], [], []>} : vector<128x160xf32>, vector<160x128xf32>, vector<128x128xf32> -> vector<128x128xf32>
    %9 = arith.maximumf %2, %4 : vector<128x128xf32>
    %10 = arith.maximumf %6, %8 : vector<128x128xf32>
    %11 = arith.maximumf %9, %10 : vector<128x128xf32>
    %c0_12 = arith.constant 0 : index
    %c0_13 = arith.constant 0 : index
    %12 = vector.load %arg6[%c0_12, %c0_13] : memref<1x128xf32, #tpu.memory_space<vmem>>, vector<1x128xf32>
    %13 = vector.broadcast %12 : vector<1x128xf32> to vector<128x128xf32>
    %14 = arith.addf %11, %13 : vector<128x128xf32>
    %cst_14 = arith.constant 0.000000e+00 : f32
    %15 = vector.broadcast %cst_14 : f32 to vector<128x128xf32>
    %16 = arith.maximumf %14, %15 : vector<128x128xf32>
    %c0_15 = arith.constant 0 : index
    %c0_16 = arith.constant 0 : index
    %17 = vector.load %arg7[%c0_15, %c0_16] : memref<128x128xf32, #tpu.memory_space<vmem>>, vector<128x128xf32>
    tpu.vector_store %arg7[%c0_15, %c0_16], %16 {strides = array<i32>} : memref<128x128xf32, #tpu.memory_space<vmem>>, vector<128x128xf32>,
    return
  }
  func.func @transform_0(%arg0: i32) -> (i32, i32) {
    %c0_i32 = arith.constant 0 : i32
    %c0_i32_0 = arith.constant 0 : i32
    return %arg0, %c0_i32 : i32, i32
  }
  func.func @transform_1(%arg0: i32) -> (i32, i32) {
    %c0_i32 = arith.constant 0 : i32
    %c0_i32_0 = arith.constant 0 : i32
    return %arg0, %c0_i32 : i32, i32
  }
  func.func @transform_2(%arg0: i32) -> (i32, i32) {
    %c0_i32 = arith.constant 0 : i32
    %c0_i32_0 = arith.constant 0 : i32
    return %arg0, %c0_i32 : i32, i32
  }
  func.func @transform_3(%arg0: i32) -> (i32, i32) {
    %c0_i32 = arith.constant 0 : i32
    %c0_i32_0 = arith.constant 0 : i32
    return %arg0, %c0_i32 : i32, i32
  }
  func.func @transform_4(%arg0: i32) -> (i32, i32) {
    %c0_i32 = arith.constant 0 : i32
    %c0_i32_0 = arith.constant 0 : i32
    %c0_i32_1 = arith.constant 0 : i32
    return %c0_i32, %c0_i32_0 : i32, i32
  }
  func.func @transform_5(%arg0: i32) -> (i32, i32) {
    %c0_i32 = arith.constant 0 : i32
    %c0_i32_0 = arith.constant 0 : i32
    %c0_i32_1 = arith.constant 0 : i32
    return %c0_i32, %c0_i32_0 : i32, i32
  }
  func.func @transform_6(%arg0: i32) -> (i32, i32) {
    %c0_i32 = arith.constant 0 : i32
    %c0_i32_0 = arith.constant 0 : i32
    return %arg0, %c0_i32 : i32, i32
  }
}

module attributes {stable_mosaic.version = 11 : i64} {
  func.func @_fc3_fused_kernel(%arg0: i32, %arg1: memref<8x2048xf32, #tpu.memory_space<vmem>>, %arg2: memref<2048x128xf32, #tpu.memory_space<vmem>>, %arg3: memref<1x128xf32, #tpu.memory_space<vmem>>, %arg4: memref<128x128xf32, #tpu.memory_space<vmem>>, %arg5: memref<1x128xf32, #tpu.memory_space<vmem>>, %arg6: memref<128x128xf32, #tpu.memory_space<vmem>>, %arg7: memref<1x128xf32, #tpu.memory_space<vmem>>, %arg8: memref<8x128xf32, #tpu.memory_space<vmem>>) attributes {dimension_semantics = [#tpu.dimension_semantics<parallel>], iteration_bounds = array<i64: 1>, scalar_prefetch = 0 : i64, scratch_operands = 0 : i64, tpu.core_type = #tpu.core_type<tc>, window_params = [{transform_indices = @transform_0, window_bounds = array<i64: 8, 2048>}, {pipeline_mode = #tpu.pipeline_mode<synchronous>, transform_indices = @transform_1, window_bounds = array<i64: 2048, 128>}, {pipeline_mode = #tpu.pipeline_mode<synchronous>, transform_indices = @transform_2, window_bounds = array<i64: 1, 128>}, {pipeline_mode = #tpu.pipeline_mode<synchronous>, transform_indices = @transform_3, window_bounds = array<i64: 128, 128>}, {pipeline_mode = #tpu.pipeline_mode<synchronous>, transform_indices = @transform_4, window_bounds = array<i64: 1, 128>}, {pipeline_mode = #tpu.pipeline_mode<synchronous>, transform_indices = @transform_5, window_bounds = array<i64: 128, 128>}, {pipeline_mode = #tpu.pipeline_mode<synchronous>, transform_indices = @transform_6, window_bounds = array<i64: 1, 128>}, {transform_indices = @transform_7, window_bounds = array<i64: 8, 128>}]} {
    %c0 = arith.constant 0 : index
    %c0_0 = arith.constant 0 : index
    %0 = vector.load %arg1[%c0, %c0_0] : memref<8x2048xf32, #tpu.memory_space<vmem>>, vector<8x2048xf32>
    %c0_1 = arith.constant 0 : index
    %c0_2 = arith.constant 0 : index
    %1 = vector.load %arg2[%c0_1, %c0_2] : memref<2048x128xf32, #tpu.memory_space<vmem>>, vector<2048x128xf32>
    %cst = arith.constant dense<0.000000e+00> : vector<8x128xf32>
    %2 = tpu.matmul %0, %1, %cst {dimension_numbers = #tpu.dot_dimension_numbers<[1], [0], [0], [1], [0, 0, 1, 1], [], []>} : vector<8x2048xf32>, vector<2048x128xf32>, vector<8x128xf32> -> vector<8x128xf32>
    %c0_3 = arith.constant 0 : index
    %c0_4 = arith.constant 0 : index
    %3 = vector.load %arg3[%c0_3, %c0_4] : memref<1x128xf32, #tpu.memory_space<vmem>>, vector<1x128xf32>
    %4 = vector.broadcast %3 : vector<1x128xf32> to vector<8x128xf32>
    %5 = arith.addf %2, %4 : vector<8x128xf32>
    %cst_5 = arith.constant 0.000000e+00 : f32
    %6 = vector.broadcast %cst_5 : f32 to vector<8x128xf32>
    %7 = arith.maximumf %5, %6 : vector<8x128xf32>
    %c0_6 = arith.constant 0 : index
    %c0_7 = arith.constant 0 : index
    %8 = vector.load %arg4[%c0_6, %c0_7] : memref<128x128xf32, #tpu.memory_space<vmem>>, vector<128x128xf32>
    %cst_8 = arith.constant dense<0.000000e+00> : vector<8x128xf32>
    %9 = tpu.matmul %7, %8, %cst_8 {dimension_numbers = #tpu.dot_dimension_numbers<[1], [0], [0], [1], [0, 0, 1, 1], [], []>} : vector<8x128xf32>, vector<128x128xf32>, vector<8x128xf32> -> vector<8x128xf32>
    %c0_9 = arith.constant 0 : index
    %c0_10 = arith.constant 0 : index
    %10 = vector.load %arg5[%c0_9, %c0_10] : memref<1x128xf32, #tpu.memory_space<vmem>>, vector<1x128xf32>
    %11 = vector.broadcast %10 : vector<1x128xf32> to vector<8x128xf32>
    %12 = arith.addf %9, %11 : vector<8x128xf32>
    %cst_11 = arith.constant 0.000000e+00 : f32
    %13 = vector.broadcast %cst_11 : f32 to vector<8x128xf32>
    %14 = arith.maximumf %12, %13 : vector<8x128xf32>
    %c0_12 = arith.constant 0 : index
    %c0_13 = arith.constant 0 : index
    %15 = vector.load %arg6[%c0_12, %c0_13] : memref<128x128xf32, #tpu.memory_space<vmem>>, vector<128x128xf32>
    %cst_14 = arith.constant dense<0.000000e+00> : vector<8x128xf32>
    %16 = tpu.matmul %14, %15, %cst_14 {dimension_numbers = #tpu.dot_dimension_numbers<[1], [0], [0], [1], [0, 0, 1, 1], [], []>} : vector<8x128xf32>, vector<128x128xf32>, vector<8x128xf32> -> vector<8x128xf32>
    %c0_15 = arith.constant 0 : index
    %c0_16 = arith.constant 0 : index
    %17 = vector.load %arg7[%c0_15, %c0_16] : memref<1x128xf32, #tpu.memory_space<vmem>>, vector<1x128xf32>
    %18 = vector.broadcast %17 : vector<1x128xf32> to vector<8x128xf32>
    %19 = arith.addf %16, %18 : vector<8x128xf32>
    %c0_17 = arith.constant 0 : index
    %c0_18 = arith.constant 0 : index
    %20 = vector.load %arg8[%c0_17, %c0_18] : memref<8x128xf32, #tpu.memory_space<vmem>>, vector<8x128xf32>
    tpu.vector_store %arg8[%c0_17, %c0_18], %19 {strides = array<i32>} : memref<8x128xf32, #tpu.memory_space<vmem>>, vector<8x128xf32>,
    return
  }
  func.func @transform_0(%arg0: i32) -> (i32, i32) {
    %c0_i32 = arith.constant 0 : i32
    %c0_i32_0 = arith.constant 0 : i32
    return %arg0, %c0_i32 : i32, i32
  }
  func.func @transform_1(%arg0: i32) -> (i32, i32) {
    %c0_i32 = arith.constant 0 : i32
    %c0_i32_0 = arith.constant 0 : i32
    %c0_i32_1 = arith.constant 0 : i32
    return %c0_i32, %c0_i32_0 : i32, i32
  }
  func.func @transform_2(%arg0: i32) -> (i32, i32) {
    %c0_i32 = arith.constant 0 : i32
    %c0_i32_0 = arith.constant 0 : i32
    %c0_i32_1 = arith.constant 0 : i32
    return %c0_i32, %c0_i32_0 : i32, i32
  }
  func.func @transform_3(%arg0: i32) -> (i32, i32) {
    %c0_i32 = arith.constant 0 : i32
    %c0_i32_0 = arith.constant 0 : i32
    %c0_i32_1 = arith.constant 0 : i32
    return %c0_i32, %c0_i32_0 : i32, i32
  }
  func.func @transform_4(%arg0: i32) -> (i32, i32) {
    %c0_i32 = arith.constant 0 : i32
    %c0_i32_0 = arith.constant 0 : i32
    %c0_i32_1 = arith.constant 0 : i32
    return %c0_i32, %c0_i32_0 : i32, i32
  }
  func.func @transform_5(%arg0: i32) -> (i32, i32) {
    %c0_i32 = arith.constant 0 : i32
    %c0_i32_0 = arith.constant 0 : i32
    %c0_i32_1 = arith.constant 0 : i32
    return %c0_i32, %c0_i32_0 : i32, i32
  }
  func.func @transform_6(%arg0: i32) -> (i32, i32) {
    %c0_i32 = arith.constant 0 : i32
    %c0_i32_0 = arith.constant 0 : i32
    %c0_i32_1 = arith.constant 0 : i32
    return %c0_i32, %c0_i32_0 : i32, i32
  }
  func.func @transform_7(%arg0: i32) -> (i32, i32) {
    %c0_i32 = arith.constant 0 : i32
    %c0_i32_0 = arith.constant 0 : i32
    return %arg0, %c0_i32 : i32, i32
  }
}

</mosaic_0001>

<bundles_post_ra>
// kernel: net_forward.3
= control target key start
LH: loop header
LB: loop body
LE: loop exit
PB: predicated region body
PF: predicated region fallthrough
CT: control target
= control target key end

     0   :  { %s4418_s21 = smov 0   ;;  %s5694_s0 = inlined_call_operand.vmem [shape: f32[1536,32], index: 0, kind: input, shape index: {}]   ;;  %s5695_s1 = inlined_call_operand.vmem [shape: f32[1536,32], index: 1, kind: input, shape index: {}]   ;;  %s5696_s2 = inlined_call_operand.vmem [shape: f32[1536,32], index: 2, kind: input, shape index: {}]   ;;  %s5697_s3 = inlined_call_operand.vmem [shape: f32[1536,32], index: 3, kind: input, shape index: {}]   ;;  %s5698_s4 = inlined_call_operand.vmem [shape: f32[32,128], index: 4, kind: input, shape index: {}]   ;;  %s5699_s5 = inlined_call_operand.vmem [shape: f32[1,128], index: 5, kind: input, shape index: {}]   ;;  %s5700_s6 = inlined_call_operand.vmem [shape: f32[1536,128], index: 6, kind: output, shape index: {}]  }
   0x1 LB: > { %s3373_s22 = sadd.s32 4294967295, %s4381_s21   ;;  %p3377_p0 = scmp.ge.s32.totalorder %s4381_s21, 1  ;;  %s4381_s21 = sphi %s4418_s21, %s16_s21  }
   0x2   : > { %p246_p1 = scmp.lt.s32.totalorder %s4381_s21, 4 }
   0x4   : > { %p247_p2 = pnand %p3377_p0, %p246_p1 }
   0x6   : > { %250 = sbr.rel (%p247_p2) target bundleno = 498 (0x1f2), region = 44 }
   0xd   : > { %v321_v0 = vld [vmem:[%s5698_s4] sm:$0xff]  ;;  %v322_v1 = vld [vmem:[%s5698_s4 + $0x8] sm:$0xff]  ;;  %v323_v2 = vld [vmem:[%s5698_s4 + $0x10] sm:$0xff]  ;;  %s3378_s29 = sshll.u32 %s3373_s22, 6  ;;  %vm389_vm0 = vcmask 261120  }
   0xe   : > { %v4335_v3 = vpack.c.bf16 %v322_v1, %v321_v0  ;;  %v324_v4 = vld [vmem:[%s5698_s4 + $0x18] sm:$0xff]  ;;  %p292_p3 = scmp.lt.s32.totalorder %s3378_s29, 191 }
   0xf   : > { %v4339_v5 = vpack.c.bf16 %v324_v4, %v323_v2 }
  0x10   : > { %4336 = vmatprep.subr.bf16.mxu0 %v4335_v3  ;;  %4344 = vmatprep.subr.bf16.mxu1 %v4335_v3  ;;  %s6003_s29 = smov (!%p292_p3, %s3378_s29), 191 }
  0x11   : > { %4338 = vmatpush3.bf16.msra.mxu0 %v4335_v3  ;;  %4346 = vmatpush3.bf16.msra.mxu1 %v4335_v3  ;;  %s4438_s8 = sshll.u32 %s6003_s29, 3 }
  0x12   : > { %4340 = vmatprep.subr.bf16.mxu0 %v4339_v5  ;;  %4348 = vmatprep.subr.bf16.mxu1 %v4339_v5  ;;  %s4444_s11 = scalar_lea.vmem %s5694_s0, %s4438_s8  ;;  %s4450_s14 = scalar_lea.vmem %s5695_s1, %s4438_s8 }
  0x13   : > { %v325_v6 = vld [vmem:[%s4444_s11] sm:$0xff]  ;;  %v326_v8 = vld [vmem:[%s4444_s11 + $0x8] sm:$0xff]  ;;  %v327_v10 = vld [vmem:[%s4444_s11 + $0x10] sm:$0xff]  ;;  %s4704_s17 = scalar_lea.vmem %s5696_s2, %s4438_s8  ;;  %s4710_s20 = scalar_lea.vmem %s5697_s3, %s4438_s8 }
  0x14   : > { %v967_v7 = vld [vmem:[%s4450_s14] sm:$0xff]  ;;  %v968_v9 = vld [vmem:[%s4450_s14 + $0x8] sm:$0xff]  ;;  %3927 = vmatprep.mubr.msk.f32.mxu0 %vm389_vm0, %v325_v6  ;;  %v969_v11 = vld [vmem:[%s4450_s14 + $0x10] sm:$0xff]  ;;  %s5376_s26 = scalar_lea.vmem %s5700_s6, %s4438_s8 }
  0x15   : > { %4342 = vmatpush3.bf16.msra.mxu0 %v4339_v5  ;;  %4350 = vmatpush3.bf16.msra.mxu1 %v4339_v5  ;;  %v328_v12 = vld [vmem:[%s4444_s11 + $0x18] sm:$0xff]  ;;  %v329_v14 = vld [vmem:[%s4444_s11 + $0x20] sm:$0xff]  ;;  %v330_v16 = vld [vmem:[%s4444_s11 + $0x28] sm:$0xff] }
  0x16   : > { %4031 = vmatprep.mubr.msk.f32.mxu1 %vm389_vm0, %v967_v7  ;;  %4352 = vmatprep.subr.bf16.mxu0 %v4335_v3  ;;  %v970_v13 = vld [vmem:[%s4450_s14 + $0x18] sm:$0xff]  ;;  %v971_v15 = vld [vmem:[%s4450_s14 + $0x20] sm:$0xff]  ;;  %v972_v17 = vld [vmem:[%s4450_s14 + $0x28] sm:$0xff] }
  0x17   : > { %4360 = vmatprep.subr.bf16.mxu1 %v4335_v3  ;;  %v331_v18 = vld [vmem:[%s4444_s11 + $0x30] sm:$0xff]  ;;  %v332_v20 = vld [vmem:[%s4444_s11 + $0x38] sm:$0xff]  ;;  %v333_v22 = vld [vmem:[%s4444_s11 + $0x40] sm:$0xff] }
  0x18   : > { %3928 = vmatmul.mubr.msk.f32.vlgmr.msra.gmra.mrb[0].mxu0 %vm389_vm0, %v326_v8  ;;  %4032 = vmatmul.mubr.msk.f32.vlgmr.msra.gmra.mrb[0].mxu1 %vm389_vm0, %v968_v9  ;;  %v973_v19 = vld [vmem:[%s4450_s14 + $0x30] sm:$0xff]  ;;  %v974_v21 = vld [vmem:[%s4450_s14 + $0x38] sm:$0xff]  ;;  %v975_v23 = vld [vmem:[%s4450_s14 + $0x40] sm:$0xff] }
  0x19   : > { %4354 = vmatpush3.bf16.msra.mxu0 %v4335_v3  ;;  %4362 = vmatpush3.bf16.msra.mxu1 %v4335_v3  ;;  %v334_v24 = vld [vmem:[%s4444_s11 + $0x48] sm:$0xff]  ;;  %v335_v26 = vld [vmem:[%s4444_s11 + $0x50] sm:$0xff]  ;;  %v336_v28 = vld [vmem:[%s4444_s11 + $0x58] sm:$0xff] }
  0x1a   : > { %3930 = vmatprep.mubr.msk.f32.mxu0 %vm389_vm0, %v327_v10  ;;  %4034 = vmatprep.mubr.msk.f32.mxu1 %vm389_vm0, %v969_v11  ;;  %v976_v25 = vld [vmem:[%s4450_s14 + $0x48] sm:$0xff]  ;;  %v977_v27 = vld [vmem:[%s4450_s14 + $0x50] sm:$0xff]  ;;  %v978_v29 = vld [vmem:[%s4450_s14 + $0x58] sm:$0xff] }
  0x1b   : > { %4356 = vmatprep.subr.bf16.mxu0 %v4339_v5  ;;  %4364 = vmatprep.subr.bf16.mxu1 %v4339_v5  ;;  %v337_v30 = vld [vmem:[%s4444_s11 + $0x60] sm:$0xff]  ;;  %v338_v32 = vld [vmem:[%s4444_s11 + $0x68] sm:$0xff]  ;;  %v339_v34 = vld [vmem:[%s4444_s11 + $0x70] sm:$0xff] }
  0x1c   : > { %3931 = vmatmul.mubr.msk.f32.gmra.mrb[2].mxu0 %vm389_vm0, %v328_v12  ;;  %4035 = vmatmul.mubr.msk.f32.gmra.mrb[2].mxu1 %vm389_vm0, %v970_v13  ;;  %v979_v31 = vld [vmem:[%s4450_s14 + $0x60] sm:$0xff]  ;;  %v980_v33 = vld [vmem:[%s4450_s14 + $0x68] sm:$0xff]  ;;  %v981_v35 = vld [vmem:[%s4450_s14 + $0x70] sm:$0xff] }
  0x1d   : > { %3933 = vmatprep.mubr.msk.f32.mxu0 %vm389_vm0, %v329_v14  ;;  %4037 = vmatprep.mubr.msk.f32.mxu1 %vm389_vm0, %v971_v15  ;;  %v340_v36 = vld [vmem:[%s4444_s11 + $0x78] sm:$0xff]  ;;  %v341_v38 = vld [vmem:[%s4444_s11 + $0x80] sm:$0xff]  ;;  %v342_v40 = vld [vmem:[%s4444_s11 + $0x88] sm:$0xff] }
  0x1e   : > { %4358 = vmatpush3.bf16.msra.mxu0 %v4339_v5  ;;  %4366 = vmatpush3.bf16.msra.mxu1 %v4339_v5  ;;  %v982_v37 = vld [vmem:[%s4450_s14 + $0x78] sm:$0xff]  ;;  %v983_v39 = vld [vmem:[%s4450_s14 + $0x80] sm:$0xff]  ;;  %v984_v41 = vld [vmem:[%s4450_s14 + $0x88] sm:$0xff] }
  0x1f   : > { %v343_v42 = vld [vmem:[%s4444_s11 + $0x90] sm:$0xff]  ;;  %v344_v44 = vld [vmem:[%s4444_s11 + $0x98] sm:$0xff]  ;;  %v345_v46 = vld [vmem:[%s4444_s11 + $0xa0] sm:$0xff] }
  0x20   : > { %3934 = vmatmul.mubr.msk.f32.gmra.mrb[4].mxu0 %vm389_vm0, %v330_v16  ;;  %4038 = vmatmul.mubr.msk.f32.gmra.mrb[4].mxu1 %vm389_vm0, %v972_v17  ;;  %v985_v43 = vld [vmem:[%s4450_s14 + $0x90] sm:$0xff]  ;;  %v986_v45 = vld [vmem:[%s4450_s14 + $0x98] sm:$0xff]  ;;  %v987_v47 = vld [vmem:[%s4450_s14 + $0xa0] sm:$0xff] }
  0x21   : > { %3936 = vmatprep.mubr.msk.f32.mxu0 %vm389_vm0, %v331_v18  ;;  %4040 = vmatprep.mubr.msk.f32.mxu1 %vm389_vm0, %v973_v19  ;;  %v346_v48 = vld [vmem:[%s4444_s11 + $0xa8] sm:$0xff]  ;;  %v347_v50 = vld [vmem:[%s4444_s11 + $0xb0] sm:$0xff]  ;;  %v348_v52 = vld [vmem:[%s4444_s11 + $0xb8] sm:$0xff] }
  0x22   : > { %v988_v49 = vld [vmem:[%s4450_s14 + $0xa8] sm:$0xff]  ;;  %v989_v51 = vld [vmem:[%s4450_s14 + $0xb0] sm:$0xff]  ;;  %v990_v53 = vld [vmem:[%s4450_s14 + $0xb8] sm:$0xff] }
  0x23   : > { %v349_v54 = vld [vmem:[%s4444_s11 + $0xc0] sm:$0xff]  ;;  %v350_v56 = vld [vmem:[%s4444_s11 + $0xc8] sm:$0xff]  ;;  %v351_v58 = vld [vmem:[%s4444_s11 + $0xd0] sm:$0xff] }
  0x24   : > { %3937 = vmatmul.mubr.msk.f32.gmra.mrb[6].mxu0 %vm389_vm0, %v332_v20  ;;  %4041 = vmatmul.mubr.msk.f32.gmra.mrb[6].mxu1 %vm389_vm0, %v974_v21  ;;  %v991_v55 = vld [vmem:[%s4450_s14 + $0xc0] sm:$0xff]  ;;  %v992_v57 = vld [vmem:[%s4450_s14 + $0xc8] sm:$0xff]  ;;  %v993_v59 = vld [vmem:[%s4450_s14 + $0xd0] sm:$0xff] }
  0x25   : > { %3939 = vmatprep.mubr.msk.f32.mxu0 %vm389_vm0, %v333_v22  ;;  %4043 = vmatprep.mubr.msk.f32.mxu1 %vm389_vm0, %v975_v23  ;;  %v352_v60 = vld [vmem:[%s4444_s11 + $0xd8] sm:$0xff]  ;;  %v353_v62 = vld [vmem:[%s4444_s11 + $0xe0] sm:$0xff]  ;;  %v354_v0 = vld [vmem:[%s4444_s11 + $0xe8] sm:$0xff] }
  0x26   : > { %v994_v61 = vld [vmem:[%s4450_s14 + $0xd8] sm:$0xff]  ;;  %v995_v63 = vld [vmem:[%s4450_s14 + $0xe0] sm:$0xff]  ;;  %v996_v1 = vld [vmem:[%s4450_s14 + $0xe8] sm:$0xff] }
  0x27   : > { %v355_v2 = vld [vmem:[%s4444_s11 + $0xf0] sm:$0xff]  ;;  %v356_v4 = vld [vmem:[%s4444_s11 + $0xf8] sm:$0xff]  ;;  %v357_v6 = vld [vmem:[%s4444_s11 + $0x100] sm:$0xff] }
  0x28   : > { %3940 = vmatmul.mubr.msk.f32.gmra.mrb[8].mxu0 %vm389_vm0, %v334_v24  ;;  %4044 = vmatmul.mubr.msk.f32.gmra.mrb[8].mxu1 %vm389_vm0, %v976_v25  ;;  %v997_v3 = vld [vmem:[%s4450_s14 + $0xf0] sm:$0xff]  ;;  %v998_v5 = vld [vmem:[%s4450_s14 + $0xf8] sm:$0xff]  ;;  %v999_v7 = vld [vmem:[%s4450_s14 + $0x100] sm:$0xff] }
  0x29   : > { %3942 = vmatprep.mubr.msk.f32.mxu0 %vm389_vm0, %v335_v26  ;;  %4046 = vmatprep.mubr.msk.f32.mxu1 %vm389_vm0, %v977_v27  ;;  %v358_v8 = vld [vmem:[%s4444_s11 + $0x108] sm:$0xff]  ;;  %v359_v10 = vld [vmem:[%s4444_s11 + $0x110] sm:$0xff]  ;;  %v360_v12 = vld [vmem:[%s4444_s11 + $0x118] sm:$0xff] }
  0x2a   : > { %v1000_v9 = vld [vmem:[%s4450_s14 + $0x108] sm:$0xff]  ;;  %v1001_v11 = vld [vmem:[%s4450_s14 + $0x110] sm:$0xff]  ;;  %v1002_v13 = vld [vmem:[%s4450_s14 + $0x118] sm:$0xff] }
  0x2b   : > { %v361_v14 = vld [vmem:[%s4444_s11 + $0x120] sm:$0xff]  ;;  %v362_v16 = vld [vmem:[%s4444_s11 + $0x128] sm:$0xff]  ;;  %v363_v18 = vld [vmem:[%s4444_s11 + $0x130] sm:$0xff] }
  0x2c   : > { %3943 = vmatmul.mubr.msk.f32.gmra.mrb[10].mxu0 %vm389_vm0, %v336_v28  ;;  %4047 = vmatmul.mubr.msk.f32.gmra.mrb[10].mxu1 %vm389_vm0, %v978_v29  ;;  %v1003_v15 = vld [vmem:[%s4450_s14 + $0x120] sm:$0xff]  ;;  %v1004_v17 = vld [vmem:[%s4450_s14 + $0x128] sm:$0xff]  ;;  %v1005_v19 = vld [vmem:[%s4450_s14 + $0x130] sm:$0xff] }
  0x2d   : > { %3945 = vmatprep.mubr.msk.f32.mxu0 %vm389_vm0, %v337_v30  ;;  %4049 = vmatprep.mubr.msk.f32.mxu1 %vm389_vm0, %v979_v31  ;;  %v364_v20 = vld [vmem:[%s4444_s11 + $0x138] sm:$0xff]  ;;  %v365_v22 = vld [vmem:[%s4444_s11 + $0x140] sm:$0xff]  ;;  %v366_v24 = vld [vmem:[%s4444_s11 + $0x148] sm:$0xff] }
  0x2e   : > { %v1006_v21 = vld [vmem:[%s4450_s14 + $0x138] sm:$0xff]  ;;  %v1007_v23 = vld [vmem:[%s4450_s14 + $0x140] sm:$0xff]  ;;  %v1008_v25 = vld [vmem:[%s4450_s14 + $0x148] sm:$0xff] }
  0x2f   : > { %v367_v26 = vld [vmem:[%s4444_s11 + $0x150] sm:$0xff]  ;;  %v368_v28 = vld [vmem:[%s4444_s11 + $0x158] sm:$0xff]  ;;  %v369_v30 = vld [vmem:[%s4444_s11 + $0x160] sm:$0xff] }
  0x30   : > { %3946 = vmatmul.mubr.msk.f32.gmra.mrb[12].mxu0 %vm389_vm0, %v338_v32  ;;  %4050 = vmatmul.mubr.msk.f32.gmra.mrb[12].mxu1 %vm389_vm0, %v980_v33  ;;  %v1009_v27 = vld [vmem:[%s4450_s14 + $0x150] sm:$0xff]  ;;  %v1010_v29 = vld [vmem:[%s4450_s14 + $0x158] sm:$0xff]  ;;  %v1011_v31 = vld [vmem:[%s4450_s14 + $0x160] sm:$0xff] }
  0x31   : > { %3948 = vmatprep.mubr.msk.f32.mxu0 %vm389_vm0, %v339_v34  ;;  %4052 = vmatprep.mubr.msk.f32.mxu1 %vm389_vm0, %v981_v35  ;;  %v370_v32 = vld [vmem:[%s4444_s11 + $0x168] sm:$0xff]  ;;  %v371_v34 = vld [vmem:[%s4444_s11 + $0x170] sm:$0xff] }
  0x32   : > { %v1012_v33 = vld [vmem:[%s4450_s14 + $0x168] sm:$0xff]  ;;  %v1013_v35 = vld [vmem:[%s4450_s14 + $0x170] sm:$0xff] }
  0x34   : > { %3949 = vmatmul.mubr.msk.f32.gmra.mrb[14].mxu0 %vm389_vm0, %v340_v36  ;;  %4053 = vmatmul.mubr.msk.f32.gmra.mrb[14].mxu1 %vm389_vm0, %v982_v37  ;;  %v372_v36 = vld [vmem:[%s4444_s11 + $0x178] sm:$0xff] }
  0x35   : > { %3951 = vmatprep.mubr.msk.f32.mxu0 %vm389_vm0, %v341_v38  ;;  %4055 = vmatprep.mubr.msk.f32.mxu1 %vm389_vm0, %v983_v39  ;;  %v1014_v37 = vld [vmem:[%s4450_s14 + $0x178] sm:$0xff]  ;;  %v373_v38 = vld [vmem:[%s4444_s11 + $0x180] sm:$0xff] }
  0x36   : > { %v1015_v39 = vld [vmem:[%s4450_s14 + $0x180] sm:$0xff] }
  0x38   : > { %3952 = vmatmul.mubr.msk.f32.gmra.mrb[16].mxu0 %vm389_vm0, %v342_v40  ;;  %4056 = vmatmul.mubr.msk.f32.gmra.mrb[16].mxu1 %vm389_vm0, %v984_v41  ;;  %v374_v40 = vld [vmem:[%s4444_s11 + $0x188] sm:$0xff] }
  0x39   : > { %3954 = vmatprep.mubr.msk.f32.mxu0 %vm389_vm0, %v343_v42  ;;  %4058 = vmatprep.mubr.msk.f32.mxu1 %vm389_vm0, %v985_v43  ;;  %v1016_v41 = vld [vmem:[%s4450_s14 + $0x188] sm:$0xff]  ;;  %v375_v42 = vld [vmem:[%s4444_s11 + $0x190] sm:$0xff] }
  0x3a   : > { %v1017_v43 = vld [vmem:[%s4450_s14 + $0x190] sm:$0xff] }
  0x3c   : > { %3955 = vmatmul.mubr.msk.f32.gmra.mrb[18].mxu0 %vm389_vm0, %v344_v44  ;;  %4059 = vmatmul.mubr.msk.f32.gmra.mrb[18].mxu1 %vm389_vm0, %v986_v45  ;;  %v376_v44 = vld [vmem:[%s4444_s11 + $0x198] sm:$0xff] }
  0x3d   : > { %3957 = vmatprep.mubr.msk.f32.mxu0 %vm389_vm0, %v345_v46  ;;  %4061 = vmatprep.mubr.msk.f32.mxu1 %vm389_vm0, %v987_v47  ;;  %v1018_v45 = vld [vmem:[%s4450_s14 + $0x198] sm:$0xff]  ;;  %v377_v46 = vld [vmem:[%s4444_s11 + $0x1a0] sm:$0xff] }
  0x3e   : > { %v1019_v47 = vld [vmem:[%s4450_s14 + $0x1a0] sm:$0xff] }
  0x40   : > { %3958 = vmatmul.mubr.msk.f32.gmra.mrb[20].mxu0 %vm389_vm0, %v346_v48  ;;  %4062 = vmatmul.mubr.msk.f32.gmra.mrb[20].mxu1 %vm389_vm0, %v988_v49  ;;  %v378_v48 = vld [vmem:[%s4444_s11 + $0x1a8] sm:$0xff] }
  0x41   : > { %3960 = vmatprep.mubr.msk.f32.mxu0 %vm389_vm0, %v347_v50  ;;  %4064 = vmatprep.mubr.msk.f32.mxu1 %vm389_vm0, %v989_v51  ;;  %v1020_v49 = vld [vmem:[%s4450_s14 + $0x1a8] sm:$0xff]  ;;  %v379_v50 = vld [vmem:[%s4444_s11 + $0x1b0] sm:$0xff] }
  0x42   : > { %v1021_v51 = vld [vmem:[%s4450_s14 + $0x1b0] sm:$0xff] }
  0x44   : > { %3961 = vmatmul.mubr.msk.f32.gmra.mrb[22].mxu0 %vm389_vm0, %v348_v52  ;;  %4065 = vmatmul.mubr.msk.f32.gmra.mrb[22].mxu1 %vm389_vm0, %v990_v53  ;;  %v380_v52 = vld [vmem:[%s4444_s11 + $0x1b8] sm:$0xff] }
  0x45   : > { %3963 = vmatprep.mubr.msk.f32.mxu0 %vm389_vm0, %v349_v54  ;;  %4067 = vmatprep.mubr.msk.f32.mxu1 %vm389_vm0, %v991_v55  ;;  %v1022_v53 = vld [vmem:[%s4450_s14 + $0x1b8] sm:$0xff]  ;;  %v381_v54 = vld [vmem:[%s4444_s11 + $0x1c0] sm:$0xff] }
  0x46   : > { %v1023_v55 = vld [vmem:[%s4450_s14 + $0x1c0] sm:$0xff] }
  0x48   : > { %3964 = vmatmul.mubr.msk.f32.gmra.mrb[24].mxu0 %vm389_vm0, %v350_v56  ;;  %4068 = vmatmul.mubr.msk.f32.gmra.mrb[24].mxu1 %vm389_vm0, %v992_v57  ;;  %v382_v56 = vld [vmem:[%s4444_s11 + $0x1c8] sm:$0xff] }
  0x49   : > { %3966 = vmatprep.mubr.msk.f32.mxu0 %vm389_vm0, %v351_v58  ;;  %4070 = vmatprep.mubr.msk.f32.mxu1 %vm389_vm0, %v993_v59  ;;  %v1024_v57 = vld [vmem:[%s4450_s14 + $0x1c8] sm:$0xff]  ;;  %v383_v58 = vld [vmem:[%s4444_s11 + $0x1d0] sm:$0xff] }
  0x4a   : > { %v1025_v59 = vld [vmem:[%s4450_s14 + $0x1d0] sm:$0xff] }
  0x4c   : > { %3967 = vmatmul.mubr.msk.f32.gmra.mrb[26].mxu0 %vm389_vm0, %v352_v60  ;;  %4071 = vmatmul.mubr.msk.f32.gmra.mrb[26].mxu1 %vm389_vm0, %v994_v61  ;;  %v384_v60 = vld [vmem:[%s4444_s11 + $0x1d8] sm:$0xff] }
  0x4d   : > { %3969 = vmatprep.mubr.msk.f32.mxu0 %vm389_vm0, %v353_v62  ;;  %4073 = vmatprep.mubr.msk.f32.mxu1 %vm389_vm0, %v995_v63  ;;  %v1026_v61 = vld [vmem:[%s4450_s14 + $0x1d8] sm:$0xff]  ;;  %v385_v62 = vld [vmem:[%s4444_s11 + $0x1e0] sm:$0xff] }
  0x4e   : > { %v1027_v63 = vld [vmem:[%s4450_s14 + $0x1e0] sm:$0xff] }
  0x50   : > { %3970 = vmatmul.mubr.msk.f32.gmra.mrb[28].mxu0 %vm389_vm0, %v354_v0  ;;  %4074 = vmatmul.mubr.msk.f32.gmra.mrb[28].mxu1 %vm389_vm0, %v996_v1  ;;  %v386_v0 = vld [vmem:[%s4444_s11 + $0x1e8] sm:$0xff] }
  0x51   : > { %3972 = vmatprep.mubr.msk.f32.mxu0 %vm389_vm0, %v355_v2  ;;  %4076 = vmatprep.mubr.msk.f32.mxu1 %vm389_vm0, %v997_v3  ;;  %v1028_v1 = vld [vmem:[%s4450_s14 + $0x1e8] sm:$0xff]  ;;  %v387_v2 = vld [vmem:[%s4444_s11 + $0x1f0] sm:$0xff] }
  0x52   : > { %v1029_v3 = vld [vmem:[%s4450_s14 + $0x1f0] sm:$0xff] }
  0x54   : > { %3973 = vmatmul.mubr.msk.f32.gmra.mrb[30].mxu0 %vm389_vm0, %v356_v4  ;;  %4077 = vmatmul.mubr.msk.f32.gmra.mrb[30].mxu1 %vm389_vm0, %v998_v5  ;;  %v388_v4 = vld [vmem:[%s4444_s11 + $0x1f8] sm:$0xff] }
  0x55   : > { %3975 = vmatprep.mubr.msk.f32.mxu0 %vm389_vm0, %v357_v6  ;;  %4079 = vmatprep.mubr.msk.f32.mxu1 %vm389_vm0, %v999_v7  ;;  %v1030_v5 = vld [vmem:[%s4450_s14 + $0x1f8] sm:$0xff]  ;;  %v1608_v6 = vld [vmem:[%s4704_s17] sm:$0xff] }
  0x56   : > { %v2249_v7 = vld [vmem:[%s4710_s20] sm:$0xff] }
  0x58   : > { %3976 = vmatmul.mubr.msk.f32.gmra.mrb[32].mxu0 %vm389_vm0, %v358_v8  ;;  %4080 = vmatmul.mubr.msk.f32.gmra.mrb[32].mxu1 %vm389_vm0, %v1000_v9  ;;  %v1609_v8 = vld [vmem:[%s4704_s17 + $0x8] sm:$0xff] }
  0x59   : > { %3978 = vmatprep.mubr.msk.f32.mxu0 %vm389_vm0, %v359_v10  ;;  %4082 = vmatprep.mubr.msk.f32.mxu1 %vm389_vm0, %v1001_v11  ;;  %v2250_v9 = vld [vmem:[%s4710_s20 + $0x8] sm:$0xff]  ;;  %v1610_v10 = vld [vmem:[%s4704_s17 + $0x10] sm:$0xff] }
  0x5a   : > { %v2251_v11 = vld [vmem:[%s4710_s20 + $0x10] sm:$0xff] }
  0x5c   : > { %3979 = vmatmul.mubr.msk.f32.gmra.mrb[34].mxu0 %vm389_vm0, %v360_v12  ;;  %4083 = vmatmul.mubr.msk.f32.gmra.mrb[34].mxu1 %vm389_vm0, %v1002_v13  ;;  %v1611_v12 = vld [vmem:[%s4704_s17 + $0x18] sm:$0xff] }
  0x5d   : > { %3981 = vmatprep.mubr.msk.f32.mxu0 %vm389_vm0, %v361_v14  ;;  %4085 = vmatprep.mubr.msk.f32.mxu1 %vm389_vm0, %v1003_v15  ;;  %v2252_v13 = vld [vmem:[%s4710_s20 + $0x18] sm:$0xff]  ;;  %v1612_v14 = vld [vmem:[%s4704_s17 + $0x20] sm:$0xff] }
  0x5e   : > { %v2253_v15 = vld [vmem:[%s4710_s20 + $0x20] sm:$0xff] }
  0x60   : > { %3982 = vmatmul.mubr.msk.f32.gmra.mrb[36].mxu0 %vm389_vm0, %v362_v16  ;;  %4086 = vmatmul.mubr.msk.f32.gmra.mrb[36].mxu1 %vm389_vm0, %v1004_v17  ;;  %v1613_v16 = vld [vmem:[%s4704_s17 + $0x28] sm:$0xff] }
  0x61   : > { %3984 = vmatprep.mubr.msk.f32.mxu0 %vm389_vm0, %v363_v18  ;;  %4088 = vmatprep.mubr.msk.f32.mxu1 %vm389_vm0, %v1005_v19  ;;  %v2254_v17 = vld [vmem:[%s4710_s20 + $0x28] sm:$0xff]  ;;  %v1614_v18 = vld [vmem:[%s4704_s17 + $0x30] sm:$0xff] }
  0x62   : > { %v2255_v19 = vld [vmem:[%s4710_s20 + $0x30] sm:$0xff] }
  0x64   : > { %3985 = vmatmul.mubr.msk.f32.gmra.mrb[38].mxu0 %vm389_vm0, %v364_v20  ;;  %4089 = vmatmul.mubr.msk.f32.gmra.mrb[38].mxu1 %vm389_vm0, %v1006_v21  ;;  %v1615_v20 = vld [vmem:[%s4704_s17 + $0x38] sm:$0xff] }
  0x65   : > { %3987 = vmatprep.mubr.msk.f32.mxu0 %vm389_vm0, %v365_v22  ;;  %4091 = vmatprep.mubr.msk.f32.mxu1 %vm389_vm0, %v1007_v23  ;;  %v2256_v21 = vld [vmem:[%s4710_s20 + $0x38] sm:$0xff]  ;;  %v1616_v22 = vld [vmem:[%s4704_s17 + $0x40] sm:$0xff] }
  0x66   : > { %v2257_v23 = vld [vmem:[%s4710_s20 + $0x40] sm:$0xff] }
  0x68   : > { %3988 = vmatmul.mubr.msk.f32.gmra.mrb[40].mxu0 %vm389_vm0, %v366_v24  ;;  %4092 = vmatmul.mubr.msk.f32.gmra.mrb[40].mxu1 %vm389_vm0, %v1008_v25  ;;  %v1617_v24 = vld [vmem:[%s4704_s17 + $0x48] sm:$0xff] }
  0x69   : > { %3990 = vmatprep.mubr.msk.f32.mxu0 %vm389_vm0, %v367_v26  ;;  %4094 = vmatprep.mubr.msk.f32.mxu1 %vm389_vm0, %v1009_v27  ;;  %v2258_v25 = vld [vmem:[%s4710_s20 + $0x48] sm:$0xff]  ;;  %v1618_v26 = vld [vmem:[%s4704_s17 + $0x50] sm:$0xff] }
  0x6a   : > { %v2259_v27 = vld [vmem:[%s4710_s20 + $0x50] sm:$0xff] }
  0x6c   : > { %3991 = vmatmul.mubr.msk.f32.gmra.mrb[42].mxu0 %vm389_vm0, %v368_v28  ;;  %4095 = vmatmul.mubr.msk.f32.gmra.mrb[42].mxu1 %vm389_vm0, %v1010_v29  ;;  %v1619_v28 = vld [vmem:[%s4704_s17 + $0x58] sm:$0xff] }
  0x6d   : > { %3993 = vmatprep.mubr.msk.f32.mxu0 %vm389_vm0, %v369_v30  ;;  %4097 = vmatprep.mubr.msk.f32.mxu1 %vm389_vm0, %v1011_v31  ;;  %v2260_v29 = vld [vmem:[%s4710_s20 + $0x58] sm:$0xff]  ;;  %v1620_v30 = vld [vmem:[%s4704_s17 + $0x60] sm:$0xff] }
  0x6e   : > { %v2261_v31 = vld [vmem:[%s4710_s20 + $0x60] sm:$0xff] }
  0x70   : > { %3994 = vmatmul.mubr.msk.f32.gmra.mrb[44].mxu0 %vm389_vm0, %v370_v32  ;;  %4098 = vmatmul.mubr.msk.f32.gmra.mrb[44].mxu1 %vm389_vm0, %v1012_v33  ;;  %v1621_v32 = vld [vmem:[%s4704_s17 + $0x68] sm:$0xff] }
  0x71   : > { %3996 = vmatprep.mubr.msk.f32.mxu0 %vm389_vm0, %v371_v34  ;;  %4100 = vmatprep.mubr.msk.f32.mxu1 %vm389_vm0, %v1013_v35  ;;  %v2262_v33 = vld [vmem:[%s4710_s20 + $0x68] sm:$0xff]  ;;  %v1622_v34 = vld [vmem:[%s4704_s17 + $0x70] sm:$0xff] }
  0x72   : > { %v2263_v35 = vld [vmem:[%s4710_s20 + $0x70] sm:$0xff] }
  0x74   : > { %3997 = vmatmul.mubr.msk.f32.gmra.mrb[46].mxu0 %vm389_vm0, %v372_v36  ;;  %4101 = vmatmul.mubr.msk.f32.gmra.mrb[46].mxu1 %vm389_vm0, %v1014_v37  ;;  %v1623_v36 = vld [vmem:[%s4704_s17 + $0x78] sm:$0xff] }
  0x75   : > { %3999 = vmatprep.mubr.msk.f32.mxu0 %vm389_vm0, %v373_v38  ;;  %4103 = vmatprep.mubr.msk.f32.mxu1 %vm389_vm0, %v1015_v39  ;;  %v2264_v37 = vld [vmem:[%s4710_s20 + $0x78] sm:$0xff]  ;;  %v1624_v38 = vld [vmem:[%s4704_s17 + $0x80] sm:$0xff] }
  0x76   : > { %v2265_v39 = vld [vmem:[%s4710_s20 + $0x80] sm:$0xff] }
  0x78   : > { %4000 = vmatmul.mubr.msk.f32.gmra.mrb[48].mxu0 %vm389_vm0, %v374_v40  ;;  %4104 = vmatmul.mubr.msk.f32.gmra.mrb[48].mxu1 %vm389_vm0, %v1016_v41  ;;  %v1625_v40 = vld [vmem:[%s4704_s17 + $0x88] sm:$0xff] }
  0x79   : > { %4002 = vmatprep.mubr.msk.f32.mxu0 %vm389_vm0, %v375_v42  ;;  %4106 = vmatprep.mubr.msk.f32.mxu1 %vm389_vm0, %v1017_v43  ;;  %v2266_v41 = vld [vmem:[%s4710_s20 + $0x88] sm:$0xff]  ;;  %v1626_v42 = vld [vmem:[%s4704_s17 + $0x90] sm:$0xff] }
  0x7a   : > { %v2267_v43 = vld [vmem:[%s4710_s20 + $0x90] sm:$0xff] }
  0x7c   : > { %4003 = vmatmul.mubr.msk.f32.gmra.mrb[50].mxu0 %vm389_vm0, %v376_v44  ;;  %4107 = vmatmul.mubr.msk.f32.gmra.mrb[50].mxu1 %vm389_vm0, %v1018_v45  ;;  %v1627_v44 = vld [vmem:[%s4704_s17 + $0x98] sm:$0xff] }
  0x7d   : > { %4005 = vmatprep.mubr.msk.f32.mxu0 %vm389_vm0, %v377_v46  ;;  %4109 = vmatprep.mubr.msk.f32.mxu1 %vm389_vm0, %v1019_v47  ;;  %v2268_v45 = vld [vmem:[%s4710_s20 + $0x98] sm:$0xff]  ;;  %v1628_v46 = vld [vmem:[%s4704_s17 + $0xa0] sm:$0xff] }
  0x7e   : > { %v2269_v47 = vld [vmem:[%s4710_s20 + $0xa0] sm:$0xff] }
  0x80   : > { %4006 = vmatmul.mubr.msk.f32.gmra.mrb[52].mxu0 %vm389_vm0, %v378_v48  ;;  %4110 = vmatmul.mubr.msk.f32.gmra.mrb[52].mxu1 %vm389_vm0, %v1020_v49  ;;  %v1629_v48 = vld [vmem:[%s4704_s17 + $0xa8] sm:$0xff] }
  0x81   : > { %4008 = vmatprep.mubr.msk.f32.mxu0 %vm389_vm0, %v379_v50  ;;  %4112 = vmatprep.mubr.msk.f32.mxu1 %vm389_vm0, %v1021_v51  ;;  %v2270_v49 = vld [vmem:[%s4710_s20 + $0xa8] sm:$0xff]  ;;  %v1630_v50 = vld [vmem:[%s4704_s17 + $0xb0] sm:$0xff] }
  0x82   : > { %v2271_v51 = vld [vmem:[%s4710_s20 + $0xb0] sm:$0xff] }
  0x84   : > { %4009 = vmatmul.mubr.msk.f32.gmra.mrb[54].mxu0 %vm389_vm0, %v380_v52  ;;  %4113 = vmatmul.mubr.msk.f32.gmra.mrb[54].mxu1 %vm389_vm0, %v1022_v53  ;;  %v1631_v52 = vld [vmem:[%s4704_s17 + $0xb8] sm:$0xff] }
  0x85   : > { %4011 = vmatprep.mubr.msk.f32.mxu0 %vm389_vm0, %v381_v54  ;;  %4115 = vmatprep.mubr.msk.f32.mxu1 %vm389_vm0, %v1023_v55  ;;  %v2272_v53 = vld [vmem:[%s4710_s20 + $0xb8] sm:$0xff]  ;;  %v1632_v54 = vld [vmem:[%s4704_s17 + $0xc0] sm:$0xff] }
  0x86   : > { %v2273_v55 = vld [vmem:[%s4710_s20 + $0xc0] sm:$0xff] }
  0x88   : > { %4012 = vmatmul.mubr.msk.f32.gmra.mrb[56].mxu0 %vm389_vm0, %v382_v56  ;;  %4116 = vmatmul.mubr.msk.f32.gmra.mrb[56].mxu1 %vm389_vm0, %v1024_v57  ;;  %v1633_v56 = vld [vmem:[%s4704_s17 + $0xc8] sm:$0xff] }
  0x89   : > { %4014 = vmatprep.mubr.msk.f32.mxu0 %vm389_vm0, %v383_v58  ;;  %4118 = vmatprep.mubr.msk.f32.mxu1 %vm389_vm0, %v1025_v59  ;;  %v2274_v57 = vld [vmem:[%s4710_s20 + $0xc8] sm:$0xff]  ;;  %v1634_v58 = vld [vmem:[%s4704_s17 + $0xd0] sm:$0xff] }
  0x8a   : > { %v2275_v59 = vld [vmem:[%s4710_s20 + $0xd0] sm:$0xff] }
  0x8c   : > { %4015 = vmatmul.mubr.msk.f32.gmra.mrb[58].mxu0 %vm389_vm0, %v384_v60  ;;  %4119 = vmatmul.mubr.msk.f32.gmra.mrb[58].mxu1 %vm389_vm0, %v1026_v61  ;;  %v1635_v60 = vld [vmem:[%s4704_s17 + $0xd8] sm:$0xff] }
  0x8d   : > { %4017 = vmatprep.mubr.msk.f32.mxu0 %vm389_vm0, %v385_v62  ;;  %4121 = vmatprep.mubr.msk.f32.mxu1 %vm389_vm0, %v1027_v63  ;;  %v2276_v61 = vld [vmem:[%s4710_s20 + $0xd8] sm:$0xff]  ;;  %v1636_v62 = vld [vmem:[%s4704_s17 + $0xe0] sm:$0xff] }
  0x8e   : > { %v2277_v63 = vld [vmem:[%s4710_s20 + $0xe0] sm:$0xff] }
  0x90   : > { %4018 = vmatmul.mubr.msk.f32.gmra.mrb[60].mxu0 %vm389_vm0, %v386_v0  ;;  %4122 = vmatmul.mubr.msk.f32.gmra.mrb[60].mxu1 %vm389_vm0, %v1028_v1  ;;  %v1637_v0 = vld [vmem:[%s4704_s17 + $0xe8] sm:$0xff] }
  0x91   : > { %4020 = vmatprep.mubr.msk.f32.mxu0 %vm389_vm0, %v387_v2  ;;  %4124 = vmatprep.mubr.msk.f32.mxu1 %vm389_vm0, %v1029_v3  ;;  %v2278_v1 = vld [vmem:[%s4710_s20 + $0xe8] sm:$0xff]  ;;  %v1638_v2 = vld [vmem:[%s4704_s17 + $0xf0] sm:$0xff] }
  0x92   : > { %v2279_v3 = vld [vmem:[%s4710_s20 + $0xf0] sm:$0xff] }
  0x94   : > { %4021 = vmatmul.mubr.msk.f32.gmra.mrb[62].mxu0 %vm389_vm0, %v388_v4  ;;  %4125 = vmatmul.mubr.msk.f32.gmra.mrb[62].mxu1 %vm389_vm0, %v1030_v5  ;;  %v1639_v4 = vld [vmem:[%s4704_s17 + $0xf8] sm:$0xff] }
  0x95   : > { %4135 = vmatprep.mubr.msk.f32.mxu0 %vm389_vm0, %v1608_v6  ;;  %4239 = vmatprep.mubr.msk.f32.mxu1 %vm389_vm0, %v2249_v7  ;;  %v2280_v5 = vld [vmem:[%s4710_s20 + $0xf8] sm:$0xff]  ;;  %v1640_v6 = vld [vmem:[%s4704_s17 + $0x100] sm:$0xff] }
  0x96   : > { %v2281_v7 = vld [vmem:[%s4710_s20 + $0x100] sm:$0xff] }
  0x98   : > { %4136 = vmatmul.mubr.msk.f32.vlgmr.msra.gmra.mrb[64].mxu0 %vm389_vm0, %v1609_v8  ;;  %4240 = vmatmul.mubr.msk.f32.vlgmr.msra.gmra.mrb[64].mxu1 %vm389_vm0, %v2250_v9  ;;  %v1641_v8 = vld [vmem:[%s4704_s17 + $0x108] sm:$0xff] }
  0x99   : > { %4138 = vmatprep.mubr.msk.f32.mxu0 %vm389_vm0, %v1610_v10  ;;  %4242 = vmatprep.mubr.msk.f32.mxu1 %vm389_vm0, %v2251_v11  ;;  %v2282_v9 = vld [vmem:[%s4710_s20 + $0x108] sm:$0xff]  ;;  %v1642_v10 = vld [vmem:[%s4704_s17 + $0x110] sm:$0xff] }
  0x9a   : > { %v2283_v11 = vld [vmem:[%s4710_s20 + $0x110] sm:$0xff] }
  0x9c   : > { %4139 = vmatmul.mubr.msk.f32.gmra.mrb[66].mxu0 %vm389_vm0, %v1611_v12  ;;  %4243 = vmatmul.mubr.msk.f32.gmra.mrb[66].mxu1 %vm389_vm0, %v2252_v13  ;;  %v1643_v12 = vld [vmem:[%s4704_s17 + $0x118] sm:$0xff] }
  0x9d   : > { %4141 = vmatprep.mubr.msk.f32.mxu0 %vm389_vm0, %v1612_v14  ;;  %4245 = vmatprep.mubr.msk.f32.mxu1 %vm389_vm0, %v2253_v15  ;;  %v2284_v13 = vld [vmem:[%s4710_s20 + $0x118] sm:$0xff]  ;;  %v1644_v14 = vld [vmem:[%s4704_s17 + $0x120] sm:$0xff] }
  0x9e   : > { %v2285_v15 = vld [vmem:[%s4710_s20 + $0x120] sm:$0xff] }
  0xa0   : > { %4142 = vmatmul.mubr.msk.f32.gmra.mrb[68].mxu0 %vm389_vm0, %v1613_v16  ;;  %4246 = vmatmul.mubr.msk.f32.gmra.mrb[68].mxu1 %vm389_vm0, %v2254_v17  ;;  %v1645_v16 = vld [vmem:[%s4704_s17 + $0x128] sm:$0xff] }
  0xa1   : > { %4144 = vmatprep.mubr.msk.f32.mxu0 %vm389_vm0, %v1614_v18  ;;  %4248 = vmatprep.mubr.msk.f32.mxu1 %vm389_vm0, %v2255_v19  ;;  %v2286_v17 = vld [vmem:[%s4710_s20 + $0x128] sm:$0xff]  ;;  %v1646_v18 = vld [vmem:[%s4704_s17 + $0x130] sm:$0xff] }
  0xa2   : > { %v2287_v19 = vld [vmem:[%s4710_s20 + $0x130] sm:$0xff] }
  0xa4   : > { %4145 = vmatmul.mubr.msk.f32.gmra.mrb[70].mxu0 %vm389_vm0, %v1615_v20  ;;  %4249 = vmatmul.mubr.msk.f32.gmra.mrb[70].mxu1 %vm389_vm0, %v2256_v21  ;;  %v1647_v20 = vld [vmem:[%s4704_s17 + $0x138] sm:$0xff] }
  0xa5   : > { %4147 = vmatprep.mubr.msk.f32.mxu0 %vm389_vm0, %v1616_v22  ;;  %4251 = vmatprep.mubr.msk.f32.mxu1 %vm389_vm0, %v2257_v23  ;;  %v2288_v21 = vld [vmem:[%s4710_s20 + $0x138] sm:$0xff]  ;;  %v1648_v22 = vld [vmem:[%s4704_s17 + $0x140] sm:$0xff] }
  0xa6   : > { %v2289_v23 = vld [vmem:[%s4710_s20 + $0x140] sm:$0xff] }
  0xa8   : > { %4148 = vmatmul.mubr.msk.f32.gmra.mrb[72].mxu0 %vm389_vm0, %v1617_v24  ;;  %4252 = vmatmul.mubr.msk.f32.gmra.mrb[72].mxu1 %vm389_vm0, %v2258_v25  ;;  %v1649_v24 = vld [vmem:[%s4704_s17 + $0x148] sm:$0xff] }
  0xa9   : > { %4150 = vmatprep.mubr.msk.f32.mxu0 %vm389_vm0, %v1618_v26  ;;  %4254 = vmatprep.mubr.msk.f32.mxu1 %vm389_vm0, %v2259_v27  ;;  %v2290_v25 = vld [vmem:[%s4710_s20 + $0x148] sm:$0xff]  ;;  %v1650_v26 = vld [vmem:[%s4704_s17 + $0x150] sm:$0xff] }
  0xaa   : > { %v2291_v27 = vld [vmem:[%s4710_s20 + $0x150] sm:$0xff] }
  0xac   : > { %4151 = vmatmul.mubr.msk.f32.gmra.mrb[74].mxu0 %vm389_vm0, %v1619_v28  ;;  %4255 = vmatmul.mubr.msk.f32.gmra.mrb[74].mxu1 %vm389_vm0, %v2260_v29  ;;  %v1651_v28 = vld [vmem:[%s4704_s17 + $0x158] sm:$0xff] }
  0xad   : > { %4153 = vmatprep.mubr.msk.f32.mxu0 %vm389_vm0, %v1620_v30  ;;  %4257 = vmatprep.mubr.msk.f32.mxu1 %vm389_vm0, %v2261_v31  ;;  %v2292_v29 = vld [vmem:[%s4710_s20 + $0x158] sm:$0xff]  ;;  %v1652_v30 = vld [vmem:[%s4704_s17 + $0x160] sm:$0xff] }
  0xae   : > { %v2293_v31 = vld [vmem:[%s4710_s20 + $0x160] sm:$0xff] }
  0xb0   : > { %4154 = vmatmul.mubr.msk.f32.gmra.mrb[76].mxu0 %vm389_vm0, %v1621_v32  ;;  %4258 = vmatmul.mubr.msk.f32.gmra.mrb[76].mxu1 %vm389_vm0, %v2262_v33 }
  0xb1   : > { %4156 = vmatprep.mubr.msk.f32.mxu0 %vm389_vm0, %v1622_v34  ;;  %4260 = vmatprep.mubr.msk.f32.mxu1 %vm389_vm0, %v2263_v35 }
  0xb4   : > { %4157 = vmatmul.mubr.msk.f32.gmra.mrb[78].mxu0 %vm389_vm0, %v1623_v36  ;;  %4261 = vmatmul.mubr.msk.f32.gmra.mrb[78].mxu1 %vm389_vm0, %v2264_v37 }
  0xb5   : > { %4159 = vmatprep.mubr.msk.f32.mxu0 %vm389_vm0, %v1624_v38  ;;  %4263 = vmatprep.mubr.msk.f32.mxu1 %vm389_vm0, %v2265_v39  ;;  %v1653_v38 = vld [vmem:[%s4704_s17 + $0x168] sm:$0xff] }
  0xb6   : > { %v2294_v39 = vld [vmem:[%s4710_s20 + $0x168] sm:$0xff] }
  0xb8   : > { %4160 = vmatmul.mubr.msk.f32.gmra.mrb[80].mxu0 %vm389_vm0, %v1625_v40  ;;  %4264 = vmatmul.mubr.msk.f32.gmra.mrb[80].mxu1 %vm389_vm0, %v2266_v41  ;;  %v1654_v40 = vld [vmem:[%s4704_s17 + $0x170] sm:$0xff] }
  0xb9   : > { %4162 = vmatprep.mubr.msk.f32.mxu0 %vm389_vm0, %v1626_v42  ;;  %4266 = vmatprep.mubr.msk.f32.mxu1 %vm389_vm0, %v2267_v43  ;;  %v2295_v41 = vld [vmem:[%s4710_s20 + $0x170] sm:$0xff] }
  0xbc   : > { %4163 = vmatmul.mubr.msk.f32.gmra.mrb[82].mxu0 %vm389_vm0, %v1627_v44  ;;  %4267 = vmatmul.mubr.msk.f32.gmra.mrb[82].mxu1 %vm389_vm0, %v2268_v45 }
  0xbd   : > { %4165 = vmatprep.mubr.msk.f32.mxu0 %vm389_vm0, %v1628_v46  ;;  %4269 = vmatprep.mubr.msk.f32.mxu1 %vm389_vm0, %v2269_v47 }
  0xc0   : > { %4166 = vmatmul.mubr.msk.f32.gmra.mrb[84].mxu0 %vm389_vm0, %v1629_v48  ;;  %4270 = vmatmul.mubr.msk.f32.gmra.mrb[84].mxu1 %vm389_vm0, %v2270_v49  ;;  %v1655_v48 = vld [vmem:[%s4704_s17 + $0x178] sm:$0xff] }
  0xc1   : > { %4168 = vmatprep.mubr.msk.f32.mxu0 %vm389_vm0, %v1630_v50  ;;  %4272 = vmatprep.mubr.msk.f32.mxu1 %vm389_vm0, %v2271_v51  ;;  %v2296_v49 = vld [vmem:[%s4710_s20 + $0x178] sm:$0xff]  ;;  %v1656_v50 = vld [vmem:[%s4704_s17 + $0x180] sm:$0xff] }
  0xc2   : > { %v2297_v51 = vld [vmem:[%s4710_s20 + $0x180] sm:$0xff] }
  0xc4   : > { %4169 = vmatmul.mubr.msk.f32.gmra.mrb[86].mxu0 %vm389_vm0, %v1631_v52  ;;  %4273 = vmatmul.mubr.msk.f32.gmra.mrb[86].mxu1 %vm389_vm0, %v2272_v53 }
  0xc5   : > { %4171 = vmatprep.mubr.msk.f32.mxu0 %vm389_vm0, %v1632_v54  ;;  %4275 = vmatprep.mubr.msk.f32.mxu1 %vm389_vm0, %v2273_v55 }
  0xc8   : > { %4172 = vmatmul.mubr.msk.f32.gmra.mrb[88].mxu0 %vm389_vm0, %v1633_v56  ;;  %4276 = vmatmul.mubr.msk.f32.gmra.mrb[88].mxu1 %vm389_vm0, %v2274_v57 }
  0xc9   : > { %4174 = vmatprep.mubr.msk.f32.mxu0 %vm389_vm0, %v1634_v58  ;;  %4278 = vmatprep.mubr.msk.f32.mxu1 %vm389_vm0, %v2275_v59  ;;  %v1657_v58 = vld [vmem:[%s4704_s17 + $0x188] sm:$0xff] }
  0xca   : > { %v2298_v59 = vld [vmem:[%s4710_s20 + $0x188] sm:$0xff] }
  0xcc   : > { %4175 = vmatmul.mubr.msk.f32.gmra.mrb[90].mxu0 %vm389_vm0, %v1635_v60  ;;  %4279 = vmatmul.mubr.msk.f32.gmra.mrb[90].mxu1 %vm389_vm0, %v2276_v61  ;;  %v1658_v60 = vld [vmem:[%s4704_s17 + $0x190] sm:$0xff] }
  0xcd   : > { %4177 = vmatprep.mubr.msk.f32.mxu0 %vm389_vm0, %v1636_v62  ;;  %4281 = vmatprep.mubr.msk.f32.mxu1 %vm389_vm0, %v2277_v63  ;;  %v2299_v61 = vld [vmem:[%s4710_s20 + $0x190] sm:$0xff] }
  0xd0   : > { %4178 = vmatmul.mubr.msk.f32.gmra.mrb[92].mxu0 %vm389_vm0, %v1637_v0  ;;  %4282 = vmatmul.mubr.msk.f32.gmra.mrb[92].mxu1 %vm389_vm0, %v2278_v1 }
  0xd1   : > { %4180 = vmatprep.mubr.msk.f32.mxu0 %vm389_vm0, %v1638_v2  ;;  %4284 = vmatprep.mubr.msk.f32.mxu1 %vm389_vm0, %v2279_v3 }
  0xd4   : > { %4181 = vmatmul.mubr.msk.f32.gmra.mrb[94].mxu0 %vm389_vm0, %v1639_v4  ;;  %4285 = vmatmul.mubr.msk.f32.gmra.mrb[94].mxu1 %vm389_vm0, %v2280_v5  ;;  %v1659_v4 = vld [vmem:[%s4704_s17 + $0x198] sm:$0xff] }
  0xd5   : > { %4183 = vmatprep.mubr.msk.f32.mxu0 %vm389_vm0, %v1640_v6  ;;  %4287 = vmatprep.mubr.msk.f32.mxu1 %vm389_vm0, %v2281_v7  ;;  %v2300_v5 = vld [vmem:[%s4710_s20 + $0x198] sm:$0xff]  ;;  %v1660_v6 = vld [vmem:[%s4704_s17 + $0x1a0] sm:$0xff] }
  0xd6   : > { %v2301_v7 = vld [vmem:[%s4710_s20 + $0x1a0] sm:$0xff] }
  0xd8   : > { %4184 = vmatmul.mubr.msk.f32.gmra.mrb[96].mxu0 %vm389_vm0, %v1641_v8  ;;  %4288 = vmatmul.mubr.msk.f32.gmra.mrb[96].mxu1 %vm389_vm0, %v2282_v9 }
  0xd9   : > { %4186 = vmatprep.mubr.msk.f32.mxu0 %vm389_vm0, %v1642_v10  ;;  %4290 = vmatprep.mubr.msk.f32.mxu1 %vm389_vm0, %v2283_v11 }
  0xdc   : > { %4187 = vmatmul.mubr.msk.f32.gmra.mrb[98].mxu0 %vm389_vm0, %v1643_v12  ;;  %4291 = vmatmul.mubr.msk.f32.gmra.mrb[98].mxu1 %vm389_vm0, %v2284_v13 }
  0xdd   : > { %4189 = vmatprep.mubr.msk.f32.mxu0 %vm389_vm0, %v1644_v14  ;;  %4293 = vmatprep.mubr.msk.f32.mxu1 %vm389_vm0, %v2285_v15  ;;  %v1661_v14 = vld [vmem:[%s4704_s17 + $0x1a8] sm:$0xff] }
  0xde   : > { %v2302_v15 = vld [vmem:[%s4710_s20 + $0x1a8] sm:$0xff] }
  0xe0   : > { %4190 = vmatmul.mubr.msk.f32.gmra.mrb[100].mxu0 %vm389_vm0, %v1645_v16  ;;  %4294 = vmatmul.mubr.msk.f32.gmra.mrb[100].mxu1 %vm389_vm0, %v2286_v17  ;;  %v1662_v16 = vld [vmem:[%s4704_s17 + $0x1b0] sm:$0xff] }
  0xe1   : > { %4192 = vmatprep.mubr.msk.f32.mxu0 %vm389_vm0, %v1646_v18  ;;  %4296 = vmatprep.mubr.msk.f32.mxu1 %vm389_vm0, %v2287_v19  ;;  %v2303_v17 = vld [vmem:[%s4710_s20 + $0x1b0] sm:$0xff] }
  0xe4   : > { %4193 = vmatmul.mubr.msk.f32.gmra.mrb[102].mxu0 %vm389_vm0, %v1647_v20  ;;  %4297 = vmatmul.mubr.msk.f32.gmra.mrb[102].mxu1 %vm389_vm0, %v2288_v21 }
  0xe5   : > { %4195 = vmatprep.mubr.msk.f32.mxu0 %vm389_vm0, %v1648_v22  ;;  %4299 = vmatprep.mubr.msk.f32.mxu1 %vm389_vm0, %v2289_v23 }
  0xe8   : > { %4196 = vmatmul.mubr.msk.f32.gmra.mrb[104].mxu0 %vm389_vm0, %v1649_v24  ;;  %4300 = vmatmul.mubr.msk.f32.gmra.mrb[104].mxu1 %vm389_vm0, %v2290_v25  ;;  %v1663_v24 = vld [vmem:[%s4704_s17 + $0x1b8] sm:$0xff] }
  0xe9   : > { %4198 = vmatprep.mubr.msk.f32.mxu0 %vm389_vm0, %v1650_v26  ;;  %4302 = vmatprep.mubr.msk.f32.mxu1 %vm389_vm0, %v2291_v27  ;;  %v2304_v25 = vld [vmem:[%s4710_s20 + $0x1b8] sm:$0xff]  ;;  %v1664_v26 = vld [vmem:[%s4704_s17 + $0x1c0] sm:$0xff] }
  0xea   : > { %v2305_v27 = vld [vmem:[%s4710_s20 + $0x1c0] sm:$0xff] }
  0xeb   : > { %v4896_v32 = vpop.f32.mrb[0].mxu0  ;;  %v4898_v33 = vpop.f32.mrb[0].mxu1 }
  0xec   : > { %v4902_v35 = vpop.f32.mrb[1].mxu0  ;;  %v4904_v36 = vpop.f32.mrb[1].mxu1  ;;  %4199 = vmatmul.mubr.msk.f32.gmra.mrb[106].mxu0 %vm389_vm0, %v1651_v28  ;;  %4303 = vmatmul.mubr.msk.f32.gmra.mrb[106].mxu1 %vm389_vm0, %v2292_v29  ;;  %v5859_v23 = vmax.f32 %v4896_v32, %v4898_v33 }
  0xed   : > { %4201 = vmatprep.mubr.msk.f32.mxu0 %vm389_vm0, %v1652_v30  ;;  %4305 = vmatprep.mubr.msk.f32.mxu1 %vm389_vm0, %v2293_v31 }
  0xef   : > { %v4916_v42 = vpop.f32.mrb[2].mxu0  ;;  %v4918_v43 = vpop.f32.mrb[2].mxu1 }
  0xf0   : > { %v4922_v45 = vpop.f32.mrb[3].mxu0  ;;  %v4924_v46 = vpop.f32.mrb[3].mxu1  ;;  %4202 = vmatmul.mubr.msk.f32.gmra.mrb[108].mxu0 %vm389_vm0, %v1653_v38  ;;  %4306 = vmatmul.mubr.msk.f32.gmra.mrb[108].mxu1 %vm389_vm0, %v2294_v39 }
  0xf1   : > { %4204 = vmatprep.mubr.msk.f32.mxu0 %vm389_vm0, %v1654_v40  ;;  %4308 = vmatprep.mubr.msk.f32.mxu1 %vm389_vm0, %v2295_v41  ;;  %v1665_v40 = vld [vmem:[%s4704_s17 + $0x1c8] sm:$0xff] }
  0xf2   : > { %v2306_v41 = vld [vmem:[%s4710_s20 + $0x1c8] sm:$0xff] }
  0xf3   : > { %v4936_v52 = vpop.f32.mrb[4].mxu0  ;;  %v4938_v53 = vpop.f32.mrb[4].mxu1 }
  0xf4   : > { %v4942_v55 = vpop.f32.mrb[5].mxu0  ;;  %v4944_v56 = vpop.f32.mrb[5].mxu1  ;;  %4205 = vmatmul.mubr.msk.f32.gmra.mrb[110].mxu0 %vm389_vm0, %v1655_v48  ;;  %4309 = vmatmul.mubr.msk.f32.gmra.mrb[110].mxu1 %vm389_vm0, %v2296_v49  ;;  %v1666_v48 = vld [vmem:[%s4704_s17 + $0x1d0] sm:$0xff] }
  0xf5   : > { %4207 = vmatprep.mubr.msk.f32.mxu0 %vm389_vm0, %v1656_v50  ;;  %4311 = vmatprep.mubr.msk.f32.mxu1 %vm389_vm0, %v2297_v51  ;;  %v2307_v49 = vld [vmem:[%s4710_s20 + $0x1d0] sm:$0xff] }
  0xf7   : > { %v4956_v62 = vpop.f32.mrb[6].mxu0  ;;  %v4958_v63 = vpop.f32.mrb[6].mxu1 }
  0xf8   : > { %v4962_v1 = vpop.f32.mrb[7].mxu0  ;;  %v4964_v2 = vpop.f32.mrb[7].mxu1  ;;  %4208 = vmatmul.mubr.msk.f32.gmra.mrb[112].mxu0 %vm389_vm0, %v1657_v58  ;;  %4312 = vmatmul.mubr.msk.f32.gmra.mrb[112].mxu1 %vm389_vm0, %v2298_v59 }
  0xf9   : > { %4210 = vmatprep.mubr.msk.f32.mxu0 %vm389_vm0, %v1658_v60  ;;  %4314 = vmatprep.mubr.msk.f32.mxu1 %vm389_vm0, %v2299_v61 }
  0xfb   : > { %v4976_v8 = vpop.f32.mrb[8].mxu0  ;;  %v4978_v9 = vpop.f32.mrb[8].mxu1 }
  0xfc   : > { %v4982_v11 = vpop.f32.mrb[9].mxu0  ;;  %v4984_v12 = vpop.f32.mrb[9].mxu1  ;;  %4211 = vmatmul.mubr.msk.f32.gmra.mrb[114].mxu0 %vm389_vm0, %v1659_v4  ;;  %4315 = vmatmul.mubr.msk.f32.gmra.mrb[114].mxu1 %vm389_vm0, %v2300_v5  ;;  %v1667_v4 = vld [vmem:[%s4704_s17 + $0x1d8] sm:$0xff] }
  0xfd   : > { %4213 = vmatprep.mubr.msk.f32.mxu0 %vm389_vm0, %v1660_v6  ;;  %4317 = vmatprep.mubr.msk.f32.mxu1 %vm389_vm0, %v2301_v7  ;;  %v2308_v5 = vld [vmem:[%s4710_s20 + $0x1d8] sm:$0xff]  ;;  %v1668_v6 = vld [vmem:[%s4704_s17 + $0x1e0] sm:$0xff] }
  0xfe   : > { %v2309_v7 = vld [vmem:[%s4710_s20 + $0x1e0] sm:$0xff] }
  0xff   : > { %v4996_v18 = vpop.f32.mrb[10].mxu0  ;;  %v4998_v19 = vpop.f32.mrb[10].mxu1 }
 0x100   : > { %v5002_v21 = vpop.f32.mrb[11].mxu0  ;;  %v5004_v22 = vpop.f32.mrb[11].mxu1  ;;  %4214 = vmatmul.mubr.msk.f32.gmra.mrb[116].mxu0 %vm389_vm0, %v1661_v14  ;;  %4318 = vmatmul.mubr.msk.f32.gmra.mrb[116].mxu1 %vm389_vm0, %v2302_v15 }
 0x101   : > { %4216 = vmatprep.mubr.msk.f32.mxu0 %vm389_vm0, %v1662_v16  ;;  %4320 = vmatprep.mubr.msk.f32.mxu1 %vm389_vm0, %v2303_v17  ;;  %v2312_v16 = vld [vmem:[%s4710_s20 + $0x1f8] sm:$0xff] }
 0x103   : > { %v5016_v28 = vpop.f32.mrb[12].mxu0  ;;  %v5018_v29 = vpop.f32.mrb[12].mxu1 }
 0x104   : > { %v5022_v31 = vpop.f32.mrb[13].mxu0  ;;  %v5024_v38 = vpop.f32.mrb[13].mxu1  ;;  %4217 = vmatmul.mubr.msk.f32.gmra.mrb[118].mxu0 %vm389_vm0, %v1663_v24  ;;  %4321 = vmatmul.mubr.msk.f32.gmra.mrb[118].mxu1 %vm389_vm0, %v2304_v25 }
 0x105   : > { %4219 = vmatprep.mubr.msk.f32.mxu0 %vm389_vm0, %v1664_v26  ;;  %4323 = vmatprep.mubr.msk.f32.mxu1 %vm389_vm0, %v2305_v27  ;;  %v1669_v26 = vld [vmem:[%s4704_s17 + $0x1e8] sm:$0xff] }
 0x106   : > { %v2310_v27 = vld [vmem:[%s4710_s20 + $0x1e8] sm:$0xff] }
 0x107   : > { %v5036_v50 = vpop.f32.mrb[14].mxu0  ;;  %v5038_v51 = vpop.f32.mrb[14].mxu1 }
 0x108   : > { %v5042_v59 = vpop.f32.mrb[15].mxu0  ;;  %v5044_v60 = vpop.f32.mrb[15].mxu1  ;;  %4220 = vmatmul.mubr.msk.f32.gmra.mrb[120].mxu0 %vm389_vm0, %v1665_v40  ;;  %4324 = vmatmul.mubr.msk.f32.gmra.mrb[120].mxu1 %vm389_vm0, %v2306_v41  ;;  %v1670_v40 = vld [vmem:[%s4704_s17 + $0x1f0] sm:$0xff] }
 0x109   : > { %4222 = vmatprep.mubr.msk.f32.mxu0 %vm389_vm0, %v1666_v48  ;;  %4326 = vmatprep.mubr.msk.f32.mxu1 %vm389_vm0, %v2307_v49  ;;  %v2311_v41 = vld [vmem:[%s4710_s20 + $0x1f0] sm:$0xff] }
 0x10b   : > { %v5056_v14 = vpop.f32.mrb[16].mxu0  ;;  %v5058_v15 = vpop.f32.mrb[16].mxu1 }
 0x10c   : > { %v5062_v17 = vpop.f32.mrb[17].mxu0  ;;  %v5064_v24 = vpop.f32.mrb[17].mxu1  ;;  %4223 = vmatmul.mubr.msk.f32.gmra.mrb[122].mxu0 %vm389_vm0, %v1667_v4  ;;  %4327 = vmatmul.mubr.msk.f32.gmra.mrb[122].mxu1 %vm389_vm0, %v2308_v5 }
 0x10d   : > { %4225 = vmatprep.mubr.msk.f32.mxu0 %vm389_vm0, %v1668_v6  ;;  %4329 = vmatprep.mubr.msk.f32.mxu1 %vm389_vm0, %v2309_v7  ;;  %v1671_v7 = vld [vmem:[%s4704_s17 + $0x1f8] sm:$0xff] }
 0x10f   : > { %v5076_v48 = vpop.f32.mrb[18].mxu0  ;;  %v5078_v49 = vpop.f32.mrb[18].mxu1 }
 0x110   : > { %v5082_v5 = vpop.f32.mrb[19].mxu0  ;;  %v5084_v25 = vpop.f32.mrb[19].mxu1  ;;  %4226 = vmatmul.mubr.msk.f32.gmra.mrb[124].mxu0 %vm389_vm0, %v1669_v26  ;;  %4330 = vmatmul.mubr.msk.f32.gmra.mrb[124].mxu1 %vm389_vm0, %v2310_v27 }
 0x111   : > { %4228 = vmatprep.mubr.msk.f32.mxu0 %vm389_vm0, %v1670_v40  ;;  %4332 = vmatprep.mubr.msk.f32.mxu1 %vm389_vm0, %v2311_v41 }
 0x113   : > { %v5094_v61 = vpop.f32.mrb[20].mxu0  ;;  %v5096_v4 = vpop.f32.mrb[20].mxu1 }
 0x114   : > { %v5100_v39 = vpop.f32.mrb[21].mxu0  ;;  %v5102_v26 = vpop.f32.mrb[21].mxu1  ;;  %4229 = vmatmul.mubr.msk.f32.gmra.mrb[126].mxu0 %vm389_vm0, %v1671_v7  ;;  %4333 = vmatmul.mubr.msk.f32.gmra.mrb[126].mxu1 %vm389_vm0, %v2312_v16 }
 0x117   : > { %v5108_v40 = vpop.f32.mrb[22].mxu0  ;;  %v5110_v41 = vpop.f32.mrb[22].mxu1 }
 0x118   : > { %v5114_v30 = vpop.f32.mrb[23].mxu0  ;;  %v5116_v58 = vpop.f32.mrb[23].mxu1 }
 0x11b   : > { %v5120_v7 = vpop.f32.mrb[24].mxu0  ;;  %v5122_v16 = vpop.f32.mrb[24].mxu1 }
 0x11c   : > { %5780 = vst [vmem:[#allocation2_spill] sm:$0xff] %v5122_v16  ;;  %v5126_v20 = vpop.f32.mrb[25].mxu0  ;;  %v5128_v13 = vpop.f32.mrb[25].mxu1 }
 0x11d   : > { %5781 = vst [vmem:[#allocation3_spill] sm:$0xff] %v5126_v20  ;;  %5782 = vst [vmem:[#allocation4_spill] sm:$0xff] %v5128_v13 }
 0x11f   : > { %v5132_v10 = vpop.f32.mrb[26].mxu0  ;;  %v5134_v3 = vpop.f32.mrb[26].mxu1 }
 0x120   : > { %5783 = vst [vmem:[#allocation5_spill] sm:$0xff] %v5132_v10  ;;  %5784 = vst [vmem:[#allocation6_spill] sm:$0xff] %v5134_v3  ;;  %v5138_v0 = vpop.f32.mrb[27].mxu0  ;;  %v5140_v57 = vpop.f32.mrb[27].mxu1 }
 0x121   : > { %5785 = vst [vmem:[#allocation7_spill] sm:$0xff] %v5138_v0  ;;  %5786 = vst [vmem:[#allocation8_spill] sm:$0xff] %v5140_v57 }
 0x123   : > { %v5144_v54 = vpop.f32.mrb[28].mxu0  ;;  %v5146_v47 = vpop.f32.mrb[28].mxu1 }
 0x124   : > { %5787 = vst [vmem:[#allocation9_spill] sm:$0xff] %v5144_v54  ;;  %5788 = vst [vmem:[#allocation10_spill] sm:$0xff] %v5146_v47  ;;  %v5150_v44 = vpop.f32.mrb[29].mxu0  ;;  %v5152_v37 = vpop.f32.mrb[29].mxu1 }
 0x125   : > { %5789 = vst [vmem:[#allocation11_spill] sm:$0xff] %v5150_v44  ;;  %5790 = vst [vmem:[#allocation12_spill] sm:$0xff] %v5152_v37 }
 0x127   : > { %v5156_v34 = vpop.f32.mrb[30].mxu0  ;;  %v5158_v3 = vpop.f32.mrb[30].mxu1 }
 0x128   : > { %5791 = vst [vmem:[#allocation13_spill] sm:$0xff] %v5156_v34  ;;  %5792 = vst [vmem:[#allocation14_spill] sm:$0xff] %v5158_v3  ;;  %v5162_v57 = vpop.f32.mrb[31].mxu0  ;;  %v5164_v0 = vpop.f32.mrb[31].mxu1 }
 0x129   : > { %5793 = vst [vmem:[#allocation15_spill] sm:$0xff] %v5162_v57  ;;  %5794 = vst [vmem:[#allocation16_spill] sm:$0xff] %v5164_v0 }
 0x12b   : > { %v5168_v47 = vpop.f32.mrb[32].mxu0  ;;  %v5170_v54 = vpop.f32.mrb[32].mxu1 }
 0x12c   : > { %5795 = vst [vmem:[#allocation17_spill] sm:$0xff] %v5168_v47  ;;  %5796 = vst [vmem:[#allocation18_spill] sm:$0xff] %v5170_v54  ;;  %v5174_v37 = vpop.f32.mrb[33].mxu0  ;;  %v5176_v44 = vpop.f32.mrb[33].mxu1 }
 0x12d   : > { %5797 = vst [vmem:[#allocation19_spill] sm:$0xff] %v5174_v37  ;;  %5798 = vst [vmem:[#allocation20_spill] sm:$0xff] %v5176_v44 }
 0x12f   : > { %v5180_v3 = vpop.f32.mrb[34].mxu0  ;;  %v5182_v34 = vpop.f32.mrb[34].mxu1 }
 0x130   : > { %5799 = vst [vmem:[#allocation21_spill] sm:$0xff] %v5180_v3  ;;  %5800 = vst [vmem:[#allocation22_spill] sm:$0xff] %v5182_v34  ;;  %v5186_v0 = vpop.f32.mrb[35].mxu0  ;;  %v5188_v57 = vpop.f32.mrb[35].mxu1 }
 0x131   : > { %5801 = vst [vmem:[#allocation23_spill] sm:$0xff] %v5186_v0  ;;  %5802 = vst [vmem:[#allocation24_spill] sm:$0xff] %v5188_v57 }
 0x133   : > { %v5192_v54 = vpop.f32.mrb[36].mxu0  ;;  %v5194_v47 = vpop.f32.mrb[36].mxu1 }
 0x134   : > { %5803 = vst [vmem:[#allocation25_spill] sm:$0xff] %v5192_v54  ;;  %5804 = vst [vmem:[#allocation26_spill] sm:$0xff] %v5194_v47  ;;  %v5198_v44 = vpop.f32.mrb[37].mxu0  ;;  %v5200_v37 = vpop.f32.mrb[37].mxu1 }
 0x135   : > { %5805 = vst [vmem:[#allocation27_spill] sm:$0xff] %v5198_v44  ;;  %5806 = vst [vmem:[#allocation28_spill] sm:$0xff] %v5200_v37 }
 0x137   : > { %v5204_v34 = vpop.f32.mrb[38].mxu0  ;;  %v5206_v3 = vpop.f32.mrb[38].mxu1 }
 0x138   : > { %5807 = vst [vmem:[#allocation29_spill] sm:$0xff] %v5204_v34  ;;  %5808 = vst [vmem:[#allocation30_spill] sm:$0xff] %v5206_v3  ;;  %v5210_v57 = vpop.f32.mrb[39].mxu0  ;;  %v5212_v0 = vpop.f32.mrb[39].mxu1 }
 0x139   : > { %5809 = vst [vmem:[#allocation31_spill] sm:$0xff] %v5210_v57  ;;  %5810 = vst [vmem:[#allocation32_spill] sm:$0xff] %v5212_v0 }
 0x13b   : > { %v5216_v47 = vpop.f32.mrb[40].mxu0  ;;  %v5218_v54 = vpop.f32.mrb[40].mxu1 }
 0x13c   : > { %5811 = vst [vmem:[#allocation33_spill] sm:$0xff] %v5216_v47  ;;  %5812 = vst [vmem:[#allocation34_spill] sm:$0xff] %v5218_v54  ;;  %v5222_v37 = vpop.f32.mrb[41].mxu0  ;;  %v5224_v44 = vpop.f32.mrb[41].mxu1 }
 0x13d   : > { %5813 = vst [vmem:[#allocation35_spill] sm:$0xff] %v5222_v37  ;;  %5814 = vst [vmem:[#allocation36_spill] sm:$0xff] %v5224_v44 }
 0x13f   : > { %v5228_v3 = vpop.f32.mrb[42].mxu0  ;;  %v5230_v34 = vpop.f32.mrb[42].mxu1 }
 0x140   : > { %5815 = vst [vmem:[#allocation37_spill] sm:$0xff] %v5228_v3  ;;  %5816 = vst [vmem:[#allocation38_spill] sm:$0xff] %v5230_v34  ;;  %v5234_v0 = vpop.f32.mrb[43].mxu0  ;;  %v5236_v57 = vpop.f32.mrb[43].mxu1 }
 0x141   : > { %5817 = vst [vmem:[#allocation39_spill] sm:$0xff] %v5234_v0  ;;  %5818 = vst [vmem:[#allocation40_spill] sm:$0xff] %v5236_v57 }
 0x143   : > { %v5240_v54 = vpop.f32.mrb[44].mxu0  ;;  %v5242_v47 = vpop.f32.mrb[44].mxu1 }
 0x144   : > { %5819 = vst [vmem:[#allocation41_spill] sm:$0xff] %v5240_v54  ;;  %5820 = vst [vmem:[#allocation42_spill] sm:$0xff] %v5242_v47  ;;  %v5246_v44 = vpop.f32.mrb[45].mxu0  ;;  %v5248_v37 = vpop.f32.mrb[45].mxu1 }
 0x145   : > { %5821 = vst [vmem:[#allocation43_spill] sm:$0xff] %v5246_v44  ;;  %5822 = vst [vmem:[#allocation44_spill] sm:$0xff] %v5248_v37 }
 0x147   : > { %v5252_v34 = vpop.f32.mrb[46].mxu0  ;;  %v5254_v3 = vpop.f32.mrb[46].mxu1 }
 0x148   : > { %5823 = vst [vmem:[#allocation45_spill] sm:$0xff] %v5252_v34  ;;  %5824 = vst [vmem:[#allocation46_spill] sm:$0xff] %v5254_v3  ;;  %v5258_v57 = vpop.f32.mrb[47].mxu0  ;;  %v5260_v0 = vpop.f32.mrb[47].mxu1 }
 0x149   : > { %5825 = vst [vmem:[#allocation47_spill] sm:$0xff] %v5258_v57  ;;  %5826 = vst [vmem:[#allocation48_spill] sm:$0xff] %v5260_v0 }
 0x14b   : > { %v5264_v47 = vpop.f32.mrb[48].mxu0  ;;  %v5266_v54 = vpop.f32.mrb[48].mxu1 }
 0x14c   : > { %5827 = vst [vmem:[#allocation49_spill] sm:$0xff] %v5264_v47  ;;  %5828 = vst [vmem:[#allocation50_spill] sm:$0xff] %v5266_v54  ;;  %v5270_v37 = vpop.f32.mrb[49].mxu0  ;;  %v5272_v44 = vpop.f32.mrb[49].mxu1 }
 0x14d   : > { %5829 = vst [vmem:[#allocation51_spill] sm:$0xff] %v5270_v37  ;;  %5830 = vst [vmem:[#allocation52_spill] sm:$0xff] %v5272_v44 }
 0x14f   : > { %v5276_v3 = vpop.f32.mrb[50].mxu0  ;;  %v5278_v34 = vpop.f32.mrb[50].mxu1 }
 0x150   : > { %5831 = vst [vmem:[#allocation53_spill] sm:$0xff] %v5276_v3  ;;  %5832 = vst [vmem:[#allocation54_spill] sm:$0xff] %v5278_v34  ;;  %v5282_v0 = vpop.f32.mrb[51].mxu0  ;;  %v5284_v57 = vpop.f32.mrb[51].mxu1 }
 0x151   : > { %5833 = vst [vmem:[#allocation55_spill] sm:$0xff] %v5282_v0  ;;  %5834 = vst [vmem:[#allocation56_spill] sm:$0xff] %v5284_v57 }
 0x153   : > { %v5288_v54 = vpop.f32.mrb[52].mxu0  ;;  %v5290_v47 = vpop.f32.mrb[52].mxu1 }
 0x154   : > { %5835 = vst [vmem:[#allocation57_spill] sm:$0xff] %v5288_v54  ;;  %5836 = vst [vmem:[#allocation58_spill] sm:$0xff] %v5290_v47  ;;  %v5294_v44 = vpop.f32.mrb[53].mxu0  ;;  %v5296_v37 = vpop.f32.mrb[53].mxu1 }
 0x155   : > { %5837 = vst [vmem:[#allocation59_spill] sm:$0xff] %v5294_v44  ;;  %5838 = vst [vmem:[#allocation60_spill] sm:$0xff] %v5296_v37 }
 0x157   : > { %v5300_v34 = vpop.f32.mrb[54].mxu0  ;;  %v5302_v3 = vpop.f32.mrb[54].mxu1 }
 0x158   : > { %5839 = vst [vmem:[#allocation61_spill] sm:$0xff] %v5300_v34  ;;  %5840 = vst [vmem:[#allocation62_spill] sm:$0xff] %v5302_v3  ;;  %v5306_v57 = vpop.f32.mrb[55].mxu0  ;;  %v5308_v0 = vpop.f32.mrb[55].mxu1 }
 0x159   : > { %5841 = vst [vmem:[#allocation63_spill] sm:$0xff] %v5306_v57  ;;  %5842 = vst [vmem:[#allocation64_spill] sm:$0xff] %v5308_v0 }
 0x15b   : > { %v5312_v47 = vpop.f32.mrb[56].mxu0  ;;  %v5314_v54 = vpop.f32.mrb[56].mxu1 }
 0x15c   : > { %5843 = vst [vmem:[#allocation65_spill] sm:$0xff] %v5312_v47  ;;  %5844 = vst [vmem:[#allocation66_spill] sm:$0xff] %v5314_v54  ;;  %v5318_v37 = vpop.f32.mrb[57].mxu0  ;;  %v5320_v44 = vpop.f32.mrb[57].mxu1 }
 0x15d   : > { %5845 = vst [vmem:[#allocation67_spill] sm:$0xff] %v5318_v37  ;;  %5846 = vst [vmem:[#allocation68_spill] sm:$0xff] %v5320_v44 }
 0x15f   : > { %v5324_v3 = vpop.f32.mrb[58].mxu0  ;;  %v5326_v34 = vpop.f32.mrb[58].mxu1 }
 0x160   : > { %5847 = vst [vmem:[#allocation69_spill] sm:$0xff] %v5324_v3  ;;  %5848 = vst [vmem:[#allocation70_spill] sm:$0xff] %v5326_v34  ;;  %v5330_v0 = vpop.f32.mrb[59].mxu0  ;;  %v5332_v57 = vpop.f32.mrb[59].mxu1 }
 0x161   : > { %5849 = vst [vmem:[#allocation71_spill] sm:$0xff] %v5330_v0  ;;  %5850 = vst [vmem:[#allocation72_spill] sm:$0xff] %v5332_v57 }
 0x163   : > { %v5336_v54 = vpop.f32.mrb[60].mxu0  ;;  %v5338_v47 = vpop.f32.mrb[60].mxu1 }
 0x164   : > { %5851 = vst [vmem:[#allocation73_spill] sm:$0xff] %v5336_v54  ;;  %5852 = vst [vmem:[#allocation74_spill] sm:$0xff] %v5338_v47  ;;  %v5342_v44 = vpop.f32.mrb[61].mxu0  ;;  %v5344_v37 = vpop.f32.mrb[61].mxu1 }
 0x165   : > { %5853 = vst [vmem:[#allocation75_spill] sm:$0xff] %v5342_v44  ;;  %5854 = vst [vmem:[#allocation76_spill] sm:$0xff] %v5344_v37  ;;  %v5363_v37 = vld [vmem:[%s5699_s5] ss:$0 sm:$0xff] }
 0x167   : > { %v5348_v34 = vpop.f32.mrb[62].mxu0  ;;  %v5350_v3 = vpop.f32.mrb[62].mxu1 }
 0x168   : > { %5855 = vst [vmem:[#allocation77_spill] sm:$0xff] %v5348_v34  ;;  %5856 = vst [vmem:[#allocation78_spill] sm:$0xff] %v5350_v3  ;;  %v5354_v57 = vpop.f32.mrb[63].mxu0  ;;  %v5356_v0 = vpop.f32.mrb[63].mxu1  ;;  %v5860_v34 = vmax.f32 %v4902_v35, %v4904_v36 }
 0x169   : > { %5857 = vst [vmem:[#allocation79_spill] sm:$0xff] %v5354_v57  ;;  %5858 = vst [vmem:[#allocation80_spill] sm:$0xff] %v5356_v0 }
 0x16b   : > { %v4137_v47 = vpop.f32.mrb[64].mxu0  ;;  %v4241_v54 = vpop.f32.mrb[64].mxu1 }
 0x16c   : > { %v2955_v10 = vmax.f32 %v4137_v47, %v4241_v54  ;;  %v1930_v13 = vpop.f32.mrb[65].mxu0  ;;  %v2571_v6 = vpop.f32.mrb[65].mxu1 }
 0x16d   : > { %v2954_v44 = vmax.f32 %v1930_v13, %v2571_v6 }
 0x16e   : > { %v3019_v3 = vmax.f32 %v5859_v23, %v2955_v10 }
 0x16f   : > { %v3018_v27 = vmax.f32 %v5860_v34, %v2954_v44  ;;  %v4140_v0 = vpop.f32.mrb[66].mxu0  ;;  %v4244_v57 = vpop.f32.mrb[66].mxu1  ;;  %v5861_v34 = vmax.f32 %v4916_v42, %v4918_v43  ;;  %v5862_v44 = vmax.f32 %v4922_v45, %v4924_v46 }
 0x170   : > { %v3090_v47 = vadd.f32 %v5363_v37, %v3019_v3  ;;  %v2957_v54 = vmax.f32 %v4140_v0, %v4244_v57  ;;  %v1940_v20 = vpop.f32.mrb[67].mxu0  ;;  %v2581_v16 = vpop.f32.mrb[67].mxu1 }
 0x171   : > { %v3089_v32 = vadd.f32 %v5363_v37, %v3018_v27  ;;  %v2956_v33 = vmax.f32 %v1940_v20, %v2581_v16  ;;  %v5863_v16 = vmax.f32 %v4936_v52, %v4938_v53 }
 0x172   : > { %v3154_v10 = vmax.f32 %v3090_v47, 0.0  ;;  %v3021_v35 = vmax.f32 %v5861_v34, %v2957_v54  ;;  %v5864_v47 = vmax.f32 %v4942_v55, %v4944_v56 }
 0x173   : > { %v3153_v36 = vmax.f32 %v3089_v32, 0.0  ;;  %v3020_v57 = vmax.f32 %v5862_v44, %v2956_v33  ;;  %v4143_v0 = vpop.f32.mrb[68].mxu0  ;;  %v4247_v3 = vpop.f32.mrb[68].mxu1 }
 0x174   : > { %3218 = vst [vmem:[%s5376_s26 + $0x8] sm:$0xff] %v3154_v10  ;;  %v3092_v13 = vadd.f32 %v5363_v37, %v3021_v35  ;;  %v2959_v23 = vmax.f32 %v4143_v0, %v4247_v3  ;;  %v1950_v6 = vpop.f32.mrb[69].mxu0  ;;  %v2591_v20 = vpop.f32.mrb[69].mxu1  ;;  %v5866_v0 = vmax.f32 %v4962_v1, %v4964_v2 }
 0x175   : > { %3217 = vst [vmem:[%s5376_s26] sm:$0xff] %v3153_v36  ;;  %v3091_v27 = vadd.f32 %v5363_v37, %v3020_v57  ;;  %v2958_v42 = vmax.f32 %v1950_v6, %v2591_v20  ;;  %v5865_v57 = vmax.f32 %v4956_v62, %v4958_v63 }
 0x176   : > { %v3156_v43 = vmax.f32 %v3092_v13, 0.0  ;;  %v3023_v45 = vmax.f32 %v5863_v16, %v2959_v23  ;;  %v5867_v16 = vmax.f32 %v4976_v8, %v4978_v9 }
 0x177   : > { %v3155_v46 = vmax.f32 %v3091_v27, 0.0  ;;  %v3022_v54 = vmax.f32 %v5864_v47, %v2958_v42  ;;  %v4146_v32 = vpop.f32.mrb[70].mxu0  ;;  %v4250_v33 = vpop.f32.mrb[70].mxu1 }
 0x178   : > { %3220 = vst [vmem:[%s5376_s26 + $0x18] sm:$0xff] %v3156_v43  ;;  %v3094_v10 = vadd.f32 %v5363_v37, %v3023_v45  ;;  %v2961_v34 = vmax.f32 %v4146_v32, %v4250_v33  ;;  %v1960_v35 = vpop.f32.mrb[71].mxu0  ;;  %v2601_v36 = vpop.f32.mrb[71].mxu1  ;;  %v5868_v45 = vmax.f32 %v4982_v11, %v4984_v12 }
 0x179   : > { %3219 = vst [vmem:[%s5376_s26 + $0x10] sm:$0xff] %v3155_v46  ;;  %v3093_v44 = vadd.f32 %v5363_v37, %v3022_v54  ;;  %v2960_v52 = vmax.f32 %v1960_v35, %v2601_v36  ;;  %v5869_v36 = vmax.f32 %v4996_v18, %v4998_v19 }
 0x17a   : > { %v3158_v53 = vmax.f32 %v3094_v10, 0.0  ;;  %v3025_v55 = vmax.f32 %v5865_v57, %v2961_v34 }
 0x17b   : > { %v3157_v56 = vmax.f32 %v3093_v44, 0.0  ;;  %v3024_v3 = vmax.f32 %v5866_v0, %v2960_v52  ;;  %v4149_v13 = vpop.f32.mrb[72].mxu0  ;;  %v4253_v23 = vpop.f32.mrb[72].mxu1  ;;  %v5870_v44 = vmax.f32 %v5002_v21, %v5004_v22 }
 0x17c   : > { %3222 = vst [vmem:[%s5376_s26 + $0x28] sm:$0xff] %v3158_v53  ;;  %v3096_v6 = vadd.f32 %v5363_v37, %v3025_v55  ;;  %v2963_v20 = vmax.f32 %v4149_v13, %v4253_v23  ;;  %v1970_v27 = vpop.f32.mrb[73].mxu0  ;;  %v2611_v42 = vpop.f32.mrb[73].mxu1  ;;  %v5871_v23 = vmax.f32 %v5016_v28, %v5018_v29 }
 0x17d   : > { %3221 = vst [vmem:[%s5376_s26 + $0x20] sm:$0xff] %v3157_v56  ;;  %v3095_v43 = vadd.f32 %v5363_v37, %v3024_v3  ;;  %v2962_v62 = vmax.f32 %v1970_v27, %v2611_v42 }
 0x17e   : > { %v3160_v63 = vmax.f32 %v3096_v6, 0.0  ;;  %v3027_v1 = vmax.f32 %v5867_v16, %v2963_v20  ;;  %v5872_v6 = vmax.f32 %v5022_v31, %v5024_v38 }
 0x17f   : > { %v3159_v2 = vmax.f32 %v3095_v43, 0.0  ;;  %v3026_v46 = vmax.f32 %v5868_v45, %v2962_v62  ;;  %v4152_v47 = vpop.f32.mrb[74].mxu0  ;;  %v4256_v54 = vpop.f32.mrb[74].mxu1  ;;  %v5874_v45 = vmax.f32 %v5042_v59, %v5044_v60 }
 0x180   : > { %3224 = vst [vmem:[%s5376_s26 + $0x38] sm:$0xff] %v3160_v63  ;;  %v3098_v32 = vadd.f32 %v5363_v37, %v3027_v1  ;;  %v2965_v33 = vmax.f32 %v4152_v47, %v4256_v54  ;;  %v1980_v10 = vpop.f32.mrb[75].mxu0  ;;  %v2621_v34 = vpop.f32.mrb[75].mxu1 }
 0x181   : > { %3223 = vst [vmem:[%s5376_s26 + $0x30] sm:$0xff] %v3159_v2  ;;  %v3097_v35 = vadd.f32 %v5363_v37, %v3026_v46  ;;  %v2964_v8 = vmax.f32 %v1980_v10, %v2621_v34  ;;  %v5873_v2 = vmax.f32 %v5036_v50, %v5038_v51 }
 0x182   : > { %v3162_v9 = vmax.f32 %v3098_v32, 0.0  ;;  %v3029_v11 = vmax.f32 %v5869_v36, %v2965_v33 }
 0x183   : > { %v3161_v12 = vmax.f32 %v3097_v35, 0.0  ;;  %v3028_v52 = vmax.f32 %v5870_v44, %v2964_v8  ;;  %v4155_v53 = vpop.f32.mrb[76].mxu0  ;;  %v4259_v57 = vpop.f32.mrb[76].mxu1  ;;  %v5875_v8 = vmax.f32 %v5056_v14, %v5058_v15 }
 0x184   : > { %3226 = vst [vmem:[%s5376_s26 + $0x48] sm:$0xff] %v3162_v9  ;;  %v3100_v55 = vadd.f32 %v5363_v37, %v3029_v11  ;;  %v2967_v56 = vmax.f32 %v4155_v53, %v4259_v57  ;;  %v1990_v0 = vpop.f32.mrb[77].mxu0  ;;  %v2631_v3 = vpop.f32.mrb[77].mxu1  ;;  %v5876_v9 = vmax.f32 %v5062_v17, %v5064_v24 }
 0x185   : > { %3225 = vst [vmem:[%s5376_s26 + $0x40] sm:$0xff] %v3161_v12  ;;  %v3099_v13 = vadd.f32 %v5363_v37, %v3028_v52  ;;  %v2966_v18 = vmax.f32 %v1990_v0, %v2631_v3  ;;  %v5878_v0 = vmax.f32 %v5082_v5, %v5084_v25 }
 0x186   : > { %v3164_v19 = vmax.f32 %v3100_v55, 0.0  ;;  %v3031_v21 = vmax.f32 %v5871_v23, %v2967_v56  ;;  %v5877_v56 = vmax.f32 %v5076_v48, %v5078_v49 }
 0x187   : > { %v3163_v22 = vmax.f32 %v3099_v13, 0.0  ;;  %v3030_v20 = vmax.f32 %v5872_v6, %v2966_v18  ;;  %v4158_v27 = vpop.f32.mrb[78].mxu0  ;;  %v4262_v42 = vpop.f32.mrb[78].mxu1 }
 0x188   : > { %3228 = vst [vmem:[%s5376_s26 + $0x58] sm:$0xff] %v3164_v19  ;;  %v3102_v43 = vadd.f32 %v5363_v37, %v3031_v21  ;;  %v2969_v62 = vmax.f32 %v4158_v27, %v4262_v42  ;;  %v2000_v63 = vpop.f32.mrb[79].mxu0  ;;  %v2641_v16 = vpop.f32.mrb[79].mxu1  ;;  %v5880_v27 = vmax.f32 %v5100_v39, %v5102_v26 }
 0x189   : > { %3227 = vst [vmem:[%s5376_s26 + $0x50] sm:$0xff] %v3163_v22  ;;  %v3101_v1 = vadd.f32 %v5363_v37, %v3030_v20  ;;  %v2968_v28 = vmax.f32 %v2000_v63, %v2641_v16  ;;  %v5879_v20 = vmax.f32 %v5094_v61, %v5096_v4 }
 0x18a   : > { %v3166_v29 = vmax.f32 %v3102_v43, 0.0  ;;  %v3033_v31 = vmax.f32 %v5873_v2, %v2969_v62  ;;  %v5881_v2 = vmax.f32 %v5108_v40, %v5110_v41 }
 0x18b   : > { %v3165_v38 = vmax.f32 %v3101_v1, 0.0  ;;  %v3032_v46 = vmax.f32 %v5874_v45, %v2968_v28  ;;  %v4161_v47 = vpop.f32.mrb[80].mxu0  ;;  %v4265_v54 = vpop.f32.mrb[80].mxu1 }
 0x18c   : > { %3230 = vst [vmem:[%s5376_s26 + $0x68] sm:$0xff] %v3166_v29  ;;  %v3104_v32 = vadd.f32 %v5363_v37, %v3033_v31  ;;  %v2971_v33 = vmax.f32 %v4161_v47, %v4265_v54  ;;  %v2010_v10 = vpop.f32.mrb[81].mxu0  ;;  %v2651_v34 = vpop.f32.mrb[81].mxu1  ;;  %v5882_v31 = vmax.f32 %v5114_v30, %v5116_v58 }
 0x18d   : > { %3229 = vst [vmem:[%s5376_s26 + $0x60] sm:$0xff] %v3165_v38  ;;  %v3103_v35 = vadd.f32 %v5363_v37, %v3032_v46  ;;  %v2970_v50 = vmax.f32 %v2010_v10, %v2651_v34  ;;  %v5883_v34 = vld [vmem:[#allocation2_spill] sm:$0xff] }
 0x18e   : > { %v3168_v51 = vmax.f32 %v3104_v32, 0.0  ;;  %v3035_v59 = vmax.f32 %v5875_v8, %v2971_v33 }
 0x18f   : > { %v3167_v60 = vmax.f32 %v3103_v35, 0.0  ;;  %v3034_v36 = vmax.f32 %v5876_v9, %v2970_v50  ;;  %v4164_v11 = vpop.f32.mrb[82].mxu0  ;;  %v4268_v12 = vpop.f32.mrb[82].mxu1  ;;  %v5884_v35 = vmax.f32 %v5120_v7, %v5883_v34  ;;  %v5885_v50 = vld [vmem:[#allocation3_spill] sm:$0xff] }
 0x190   : > { %3232 = vst [vmem:[%s5376_s26 + $0x78] sm:$0xff] %v3168_v51  ;;  %v3106_v44 = vadd.f32 %v5363_v37, %v3035_v59  ;;  %v2973_v52 = vmax.f32 %v4164_v11, %v4268_v12  ;;  %v2020_v53 = vpop.f32.mrb[83].mxu0  ;;  %v2661_v57 = vpop.f32.mrb[83].mxu1  ;;  %v5886_v51 = vld [vmem:[#allocation4_spill] sm:$0xff] }
 0x191   : > { %3231 = vst [vmem:[%s5376_s26 + $0x70] sm:$0xff] %v3167_v60  ;;  %v3105_v55 = vadd.f32 %v5363_v37, %v3034_v36  ;;  %v2972_v14 = vmax.f32 %v2020_v53, %v2661_v57  ;;  %v5887_v8 = vmax.f32 %v5885_v50, %v5886_v51  ;;  %v5888_v57 = vld [vmem:[#allocation5_spill] sm:$0xff] }
 0x192   : > { %v3170_v15 = vmax.f32 %v3106_v44, 0.0  ;;  %v3037_v17 = vmax.f32 %v5877_v56, %v2973_v52 }
 0x193   : > { %v3169_v24 = vmax.f32 %v3105_v55, 0.0  ;;  %v3036_v3 = vmax.f32 %v5878_v0, %v2972_v14  ;;  %v4167_v13 = vpop.f32.mrb[84].mxu0  ;;  %v4271_v18 = vpop.f32.mrb[84].mxu1  ;;  %v5889_v55 = vld [vmem:[#allocation6_spill] sm:$0xff] }
 0x194   : > { %3234 = vst [vmem:[%s5376_s26 + $0x88] sm:$0xff] %v3170_v15  ;;  %v3108_v19 = vadd.f32 %v5363_v37, %v3037_v17  ;;  %v2975_v23 = vmax.f32 %v4167_v13, %v4271_v18  ;;  %v2030_v21 = vpop.f32.mrb[85].mxu0  ;;  %v2671_v22 = vpop.f32.mrb[85].mxu1  ;;  %v5890_v14 = vmax.f32 %v5888_v57, %v5889_v55  ;;  %v5891_v17 = vld [vmem:[#allocation7_spill] sm:$0xff] }
 0x195   : > { %3233 = vst [vmem:[%s5376_s26 + $0x80] sm:$0xff] %v3169_v24  ;;  %v3107_v6 = vadd.f32 %v5363_v37, %v3036_v3  ;;  %v2974_v48 = vmax.f32 %v2030_v21, %v2671_v22  ;;  %v5892_v24 = vld [vmem:[#allocation8_spill] sm:$0xff] }
 0x196   : > { %v3172_v49 = vmax.f32 %v3108_v19, 0.0  ;;  %v3039_v25 = vmax.f32 %v5879_v20, %v2975_v23  ;;  %v5893_v0 = vmax.f32 %v5891_v17, %v5892_v24  ;;  %v5894_v20 = vld [vmem:[#allocation9_spill] sm:$0xff] }
 0x197   : > { %v3171_v5 = vmax.f32 %v3107_v6, 0.0  ;;  %v3038_v42 = vmax.f32 %v5880_v27, %v2974_v48  ;;  %v4170_v43 = vpop.f32.mrb[86].mxu0  ;;  %v4274_v62 = vpop.f32.mrb[86].mxu1 }
 0x198   : > { %3236 = vst [vmem:[%s5376_s26 + $0x98] sm:$0xff] %v3172_v49  ;;  %v3110_v63 = vadd.f32 %v5363_v37, %v3039_v25  ;;  %v2977_v16 = vmax.f32 %v4170_v43, %v4274_v62  ;;  %v2040_v1 = vpop.f32.mrb[87].mxu0  ;;  %v2681_v28 = vpop.f32.mrb[87].mxu1  ;;  %v5895_v25 = vld [vmem:[#allocation10_spill] sm:$0xff]  ;;  %v5897_v43 = vld [vmem:[#allocation11_spill] sm:$0xff]  ;;  %v5898_v62 = vld [vmem:[#allocation12_spill] sm:$0xff] }
 0x199   : > { %3235 = vst [vmem:[%s5376_s26 + $0x90] sm:$0xff] %v3171_v5  ;;  %v3109_v29 = vadd.f32 %v5363_v37, %v3038_v42  ;;  %v2976_v61 = vmax.f32 %v2040_v1, %v2681_v28  ;;  %v5896_v5 = vmax.f32 %v5894_v20, %v5895_v25 }
 0x19a   : > { %v3174_v4 = vmax.f32 %v3110_v63, 0.0  ;;  %v3041_v39 = vmax.f32 %v5881_v2, %v2977_v16  ;;  %v5899_v63 = vmax.f32 %v5897_v43, %v5898_v62 }
 0x19b   : > { %v3173_v26 = vmax.f32 %v3109_v29, 0.0  ;;  %v3040_v38 = vmax.f32 %v5882_v31, %v2976_v61  ;;  %v4173_v45 = vpop.f32.mrb[88].mxu0  ;;  %v4277_v46 = vpop.f32.mrb[88].mxu1 }
 0x19c   : > { %3238 = vst [vmem:[%s5376_s26 + $0xa8] sm:$0xff] %v3174_v4  ;;  %v3112_v47 = vadd.f32 %v5363_v37, %v3041_v39  ;;  %v2979_v54 = vmax.f32 %v4173_v45, %v4277_v46  ;;  %v2050_v32 = vpop.f32.mrb[89].mxu0  ;;  %v2691_v33 = vpop.f32.mrb[89].mxu1  ;;  %v5901_v45 = vld [vmem:[#allocation14_spill] sm:$0xff] }
 0x19d   : > { %3237 = vst [vmem:[%s5376_s26 + $0xa0] sm:$0xff] %v3173_v26  ;;  %v3111_v10 = vadd.f32 %v5363_v37, %v3040_v38  ;;  %v2978_v40 = vmax.f32 %v2050_v32, %v2691_v33  ;;  %v5900_v38 = vld [vmem:[#allocation13_spill] sm:$0xff]  ;;  %v5903_v32 = vld [vmem:[#allocation15_spill] sm:$0xff]  ;;  %v5904_v33 = vld [vmem:[#allocation16_spill] sm:$0xff] }
 0x19e   : > { %v3176_v41 = vmax.f32 %v3112_v47, 0.0  ;;  %v3043_v30 = vmax.f32 %v5884_v35, %v2979_v54  ;;  %v5902_v46 = vmax.f32 %v5900_v38, %v5901_v45 }
 0x19f   : > { %v3175_v58 = vmax.f32 %v3111_v10, 0.0  ;;  %v3042_v59 = vmax.f32 %v5887_v8, %v2978_v40  ;;  %v4176_v60 = vpop.f32.mrb[90].mxu0  ;;  %v4280_v9 = vpop.f32.mrb[90].mxu1  ;;  %v5905_v10 = vmax.f32 %v5903_v32, %v5904_v33 }
 0x1a0   : > { %3240 = vst [vmem:[%s5376_s26 + $0xb8] sm:$0xff] %v3176_v41  ;;  %v3114_v36 = vadd.f32 %v5363_v37, %v3043_v30  ;;  %v2981_v11 = vmax.f32 %v4176_v60, %v4280_v9  ;;  %v2060_v12 = vpop.f32.mrb[91].mxu0  ;;  %v2701_v44 = vpop.f32.mrb[91].mxu1  ;;  %v5906_v60 = vld [vmem:[#allocation17_spill] sm:$0xff]  ;;  %v5907_v9 = vld [vmem:[#allocation18_spill] sm:$0xff] }
 0x1a1   : > { %3239 = vst [vmem:[%s5376_s26 + $0xb0] sm:$0xff] %v3175_v58  ;;  %v3113_v52 = vadd.f32 %v5363_v37, %v3042_v59  ;;  %v2980_v7 = vmax.f32 %v2060_v12, %v2701_v44  ;;  %v5909_v44 = vld [vmem:[#allocation19_spill] sm:$0xff] }
 0x1a2   : > { %v3178_v53 = vmax.f32 %v3114_v36, 0.0  ;;  %v3045_v15 = vmax.f32 %v5890_v14, %v2981_v11  ;;  %v5908_v36 = vmax.f32 %v5906_v60, %v5907_v9 }
 0x1a3   : > { %v3177_v56 = vmax.f32 %v3113_v52, 0.0  ;;  %v3044_v3 = vmax.f32 %v5893_v0, %v2980_v7  ;;  %v4179_v13 = vpop.f32.mrb[92].mxu0  ;;  %v4283_v18 = vpop.f32.mrb[92].mxu1  ;;  %v5910_v52 = vld [vmem:[#allocation20_spill] sm:$0xff] }
 0x1a4   : > { %3242 = vst [vmem:[%s5376_s26 + $0xc8] sm:$0xff] %v3178_v53  ;;  %v3116_v19 = vadd.f32 %v5363_v37, %v3045_v15  ;;  %v2983_v23 = vmax.f32 %v4179_v13, %v4283_v18  ;;  %v2070_v21 = vpop.f32.mrb[93].mxu0  ;;  %v2711_v22 = vpop.f32.mrb[93].mxu1  ;;  %v5911_v7 = vmax.f32 %v5909_v44, %v5910_v52  ;;  %v5912_v13 = vld [vmem:[#allocation21_spill] sm:$0xff]  ;;  %v5913_v18 = vld [vmem:[#allocation22_spill] sm:$0xff] }
 0x1a5   : > { %3241 = vst [vmem:[%s5376_s26 + $0xc0] sm:$0xff] %v3177_v56  ;;  %v3115_v6 = vadd.f32 %v5363_v37, %v3044_v3  ;;  %v2982_v48 = vmax.f32 %v2070_v21, %v2711_v22  ;;  %v5915_v22 = vld [vmem:[#allocation23_spill] sm:$0xff] }
 0x1a6   : > { %v3180_v49 = vmax.f32 %v3116_v19, 0.0  ;;  %v3047_v27 = vmax.f32 %v5896_v5, %v2983_v23  ;;  %v5914_v19 = vmax.f32 %v5912_v13, %v5913_v18 }
 0x1a7   : > { %v3179_v42 = vmax.f32 %v3115_v6, 0.0  ;;  %v3046_v16 = vmax.f32 %v5899_v63, %v2982_v48  ;;  %v4182_v1 = vpop.f32.mrb[94].mxu0  ;;  %v4286_v28 = vpop.f32.mrb[94].mxu1  ;;  %v5916_v6 = vld [vmem:[#allocation24_spill] sm:$0xff] }
 0x1a8   : > { %3244 = vst [vmem:[%s5376_s26 + $0xd8] sm:$0xff] %v3180_v49  ;;  %v3118_v29 = vadd.f32 %v5363_v37, %v3047_v27  ;;  %v2985_v61 = vmax.f32 %v4182_v1, %v4286_v28  ;;  %v2080_v4 = vpop.f32.mrb[95].mxu0  ;;  %v2721_v2 = vpop.f32.mrb[95].mxu1  ;;  %v5917_v48 = vmax.f32 %v5915_v22, %v5916_v6  ;;  %v5918_v1 = vld [vmem:[#allocation25_spill] sm:$0xff]  ;;  %v5919_v28 = vld [vmem:[#allocation26_spill] sm:$0xff] }
 0x1a9   : > { %3243 = vst [vmem:[%s5376_s26 + $0xd0] sm:$0xff] %v3179_v42  ;;  %v3117_v39 = vadd.f32 %v5363_v37, %v3046_v16  ;;  %v2984_v26 = vmax.f32 %v2080_v4, %v2721_v2  ;;  %v5921_v2 = vld [vmem:[#allocation27_spill] sm:$0xff] }
 0x1aa   : > { %v3182_v31 = vmax.f32 %v3118_v29, 0.0  ;;  %v3049_v47 = vmax.f32 %v5902_v46, %v2985_v61  ;;  %v5920_v29 = vmax.f32 %v5918_v1, %v5919_v28 }
 0x1ab   : > { %v3181_v54 = vmax.f32 %v3117_v39, 0.0  ;;  %v3048_v40 = vmax.f32 %v5905_v10, %v2984_v26  ;;  %v4185_v41 = vpop.f32.mrb[96].mxu0  ;;  %v4289_v34 = vpop.f32.mrb[96].mxu1  ;;  %v5922_v39 = vld [vmem:[#allocation28_spill] sm:$0xff] }
 0x1ac   : > { %3246 = vst [vmem:[%s5376_s26 + $0xe8] sm:$0xff] %v3182_v31  ;;  %v3120_v35 = vadd.f32 %v5363_v37, %v3049_v47  ;;  %v2987_v30 = vmax.f32 %v4185_v41, %v4289_v34  ;;  %v2090_v58 = vpop.f32.mrb[97].mxu0  ;;  %v2731_v50 = vpop.f32.mrb[97].mxu1  ;;  %v5923_v26 = vmax.f32 %v5921_v2, %v5922_v39  ;;  %v5924_v41 = vld [vmem:[#allocation29_spill] sm:$0xff]  ;;  %v5925_v34 = vld [vmem:[#allocation30_spill] sm:$0xff] }
 0x1ad   : > { %3245 = vst [vmem:[%s5376_s26 + $0xe0] sm:$0xff] %v3181_v54  ;;  %v3119_v51 = vadd.f32 %v5363_v37, %v3048_v40  ;;  %v2986_v8 = vmax.f32 %v2090_v58, %v2731_v50  ;;  %v5927_v50 = vld [vmem:[#allocation31_spill] sm:$0xff] }
 0x1ae   : > { %v3184_v59 = vmax.f32 %v3120_v35, 0.0  ;;  %v3051_v11 = vmax.f32 %v5908_v36, %v2987_v30  ;;  %v5926_v35 = vmax.f32 %v5924_v41, %v5925_v34 }
 0x1af   : > { %v3183_v12 = vmax.f32 %v3119_v51, 0.0  ;;  %v3050_v53 = vmax.f32 %v5911_v7, %v2986_v8  ;;  %v4188_v57 = vpop.f32.mrb[98].mxu0  ;;  %v4292_v55 = vpop.f32.mrb[98].mxu1  ;;  %v5928_v51 = vld [vmem:[#allocation32_spill] sm:$0xff] }
 0x1b0   : > { %3248 = vst [vmem:[%s5376_s26 + $0xf8] sm:$0xff] %v3184_v59  ;;  %v3122_v14 = vadd.f32 %v5363_v37, %v3051_v11  ;;  %v2989_v15 = vmax.f32 %v4188_v57, %v4292_v55  ;;  %v2100_v56 = vpop.f32.mrb[99].mxu0  ;;  %v2741_v17 = vpop.f32.mrb[99].mxu1  ;;  %v5929_v8 = vmax.f32 %v5927_v50, %v5928_v51  ;;  %v5930_v57 = vld [vmem:[#allocation33_spill] sm:$0xff]  ;;  %v5931_v55 = vld [vmem:[#allocation34_spill] sm:$0xff] }
 0x1b1   : > { %3247 = vst [vmem:[%s5376_s26 + $0xf0] sm:$0xff] %v3183_v12  ;;  %v3121_v24 = vadd.f32 %v5363_v37, %v3050_v53  ;;  %v2988_v0 = vmax.f32 %v2100_v56, %v2741_v17  ;;  %v5933_v17 = vld [vmem:[#allocation35_spill] sm:$0xff] }
 0x1b2   : > { %v3186_v3 = vmax.f32 %v3122_v14, 0.0  ;;  %v3053_v23 = vmax.f32 %v5914_v19, %v2989_v15  ;;  %v5932_v14 = vmax.f32 %v5930_v57, %v5931_v55 }
 0x1b3   : > { %v3185_v21 = vmax.f32 %v3121_v24, 0.0  ;;  %v3052_v49 = vmax.f32 %v5917_v48, %v2988_v0  ;;  %v4191_v20 = vpop.f32.mrb[100].mxu0  ;;  %v4295_v25 = vpop.f32.mrb[100].mxu1  ;;  %v5934_v24 = vld [vmem:[#allocation36_spill] sm:$0xff] }
 0x1b4   : > { %3250 = vst [vmem:[%s5376_s26 + $0x108] sm:$0xff] %v3186_v3  ;;  %v3124_v5 = vadd.f32 %v5363_v37, %v3053_v23  ;;  %v2991_v27 = vmax.f32 %v4191_v20, %v4295_v25  ;;  %v2110_v42 = vpop.f32.mrb[101].mxu0  ;;  %v2751_v43 = vpop.f32.mrb[101].mxu1  ;;  %v5935_v0 = vmax.f32 %v5933_v17, %v5934_v24  ;;  %v5936_v20 = vld [vmem:[#allocation37_spill] sm:$0xff]  ;;  %v5937_v25 = vld [vmem:[#allocation38_spill] sm:$0xff] }
 0x1b5   : > { %3249 = vst [vmem:[%s5376_s26 + $0x100] sm:$0xff] %v3185_v21  ;;  %v3123_v62 = vadd.f32 %v5363_v37, %v3052_v49  ;;  %v2990_v63 = vmax.f32 %v2110_v42, %v2751_v43  ;;  %v5939_v43 = vld [vmem:[#allocation39_spill] sm:$0xff] }
 0x1b6   : > { %v3188_v16 = vmax.f32 %v3124_v5, 0.0  ;;  %v3055_v61 = vmax.f32 %v5920_v29, %v2991_v27  ;;  %v5938_v5 = vmax.f32 %v5936_v20, %v5937_v25 }
 0x1b7   : > { %v3187_v4 = vmax.f32 %v3123_v62, 0.0  ;;  %v3054_v31 = vmax.f32 %v5923_v26, %v2990_v63  ;;  %v4194_v38 = vpop.f32.mrb[102].mxu0  ;;  %v4298_v45 = vpop.f32.mrb[102].mxu1  ;;  %v5940_v62 = vld [vmem:[#allocation40_spill] sm:$0xff] }
 0x1b8   : > { %3252 = vst [vmem:[%s5376_s26 + $0x118] sm:$0xff] %v3188_v16  ;;  %v3126_v46 = vadd.f32 %v5363_v37, %v3055_v61  ;;  %v2993_v47 = vmax.f32 %v4194_v38, %v4298_v45  ;;  %v2120_v54 = vpop.f32.mrb[103].mxu0  ;;  %v2761_v32 = vpop.f32.mrb[103].mxu1  ;;  %v5941_v63 = vmax.f32 %v5939_v43, %v5940_v62  ;;  %v5942_v38 = vld [vmem:[#allocation41_spill] sm:$0xff]  ;;  %v5943_v45 = vld [vmem:[#allocation42_spill] sm:$0xff] }
 0x1b9   : > { %3251 = vst [vmem:[%s5376_s26 + $0x110] sm:$0xff] %v3187_v4  ;;  %v3125_v33 = vadd.f32 %v5363_v37, %v3054_v31  ;;  %v2992_v10 = vmax.f32 %v2120_v54, %v2761_v32  ;;  %v5945_v32 = vld [vmem:[#allocation43_spill] sm:$0xff] }
 0x1ba   : > { %v3190_v40 = vmax.f32 %v3126_v46, 0.0  ;;  %v3057_v30 = vmax.f32 %v5926_v35, %v2993_v47  ;;  %v5944_v46 = vmax.f32 %v5942_v38, %v5943_v45 }
 0x1bb   : > { %v3189_v58 = vmax.f32 %v3125_v33, 0.0  ;;  %v3056_v59 = vmax.f32 %v5929_v8, %v2992_v10  ;;  %v4197_v60 = vpop.f32.mrb[104].mxu0  ;;  %v4301_v9 = vpop.f32.mrb[104].mxu1  ;;  %v5946_v33 = vld [vmem:[#allocation44_spill] sm:$0xff] }
 0x1bc   : > { %3254 = vst [vmem:[%s5376_s26 + $0x128] sm:$0xff] %v3190_v40  ;;  %v3128_v36 = vadd.f32 %v5363_v37, %v3057_v30  ;;  %v2995_v11 = vmax.f32 %v4197_v60, %v4301_v9  ;;  %v2130_v12 = vpop.f32.mrb[105].mxu0  ;;  %v2771_v44 = vpop.f32.mrb[105].mxu1  ;;  %v5947_v10 = vmax.f32 %v5945_v32, %v5946_v33  ;;  %v5948_v60 = vld [vmem:[#allocation45_spill] sm:$0xff]  ;;  %v5949_v9 = vld [vmem:[#allocation46_spill] sm:$0xff] }
 0x1bd   : > { %3253 = vst [vmem:[%s5376_s26 + $0x120] sm:$0xff] %v3189_v58  ;;  %v3127_v52 = vadd.f32 %v5363_v37, %v3056_v59  ;;  %v2994_v7 = vmax.f32 %v2130_v12, %v2771_v44  ;;  %v5951_v44 = vld [vmem:[#allocation47_spill] sm:$0xff] }
 0x1be   : > { %v3192_v53 = vmax.f32 %v3128_v36, 0.0  ;;  %v3059_v15 = vmax.f32 %v5932_v14, %v2995_v11  ;;  %v5950_v36 = vmax.f32 %v5948_v60, %v5949_v9 }
 0x1bf   : > { %v3191_v56 = vmax.f32 %v3127_v52, 0.0  ;;  %v3058_v3 = vmax.f32 %v5935_v0, %v2994_v7  ;;  %v4200_v13 = vpop.f32.mrb[106].mxu0  ;;  %v4304_v18 = vpop.f32.mrb[106].mxu1  ;;  %v5952_v52 = vld [vmem:[#allocation48_spill] sm:$0xff] }
 0x1c0   : > { %3256 = vst [vmem:[%s5376_s26 + $0x138] sm:$0xff] %v3192_v53  ;;  %v3130_v19 = vadd.f32 %v5363_v37, %v3059_v15  ;;  %v2997_v23 = vmax.f32 %v4200_v13, %v4304_v18  ;;  %v2140_v21 = vpop.f32.mrb[107].mxu0  ;;  %v2781_v22 = vpop.f32.mrb[107].mxu1  ;;  %v5953_v7 = vmax.f32 %v5951_v44, %v5952_v52  ;;  %v5954_v13 = vld [vmem:[#allocation49_spill] sm:$0xff]  ;;  %v5955_v18 = vld [vmem:[#allocation50_spill] sm:$0xff] }
 0x1c1   : > { %3255 = vst [vmem:[%s5376_s26 + $0x130] sm:$0xff] %v3191_v56  ;;  %v3129_v6 = vadd.f32 %v5363_v37, %v3058_v3  ;;  %v2996_v48 = vmax.f32 %v2140_v21, %v2781_v22  ;;  %v5957_v22 = vld [vmem:[#allocation51_spill] sm:$0xff] }
 0x1c2   : > { %v3194_v49 = vmax.f32 %v3130_v19, 0.0  ;;  %v3061_v27 = vmax.f32 %v5938_v5, %v2997_v23  ;;  %v5956_v19 = vmax.f32 %v5954_v13, %v5955_v18 }
 0x1c3   : > { %v3193_v42 = vmax.f32 %v3129_v6, 0.0  ;;  %v3060_v16 = vmax.f32 %v5941_v63, %v2996_v48  ;;  %v4203_v1 = vpop.f32.mrb[108].mxu0  ;;  %v4307_v28 = vpop.f32.mrb[108].mxu1  ;;  %v5958_v6 = vld [vmem:[#allocation52_spill] sm:$0xff] }
 0x1c4   : > { %3258 = vst [vmem:[%s5376_s26 + $0x148] sm:$0xff] %v3194_v49  ;;  %v3132_v29 = vadd.f32 %v5363_v37, %v3061_v27  ;;  %v2999_v61 = vmax.f32 %v4203_v1, %v4307_v28  ;;  %v2150_v4 = vpop.f32.mrb[109].mxu0  ;;  %v2791_v2 = vpop.f32.mrb[109].mxu1  ;;  %v5959_v48 = vmax.f32 %v5957_v22, %v5958_v6  ;;  %v5960_v1 = vld [vmem:[#allocation53_spill] sm:$0xff]  ;;  %v5961_v28 = vld [vmem:[#allocation54_spill] sm:$0xff] }
 0x1c5   : > { %3257 = vst [vmem:[%s5376_s26 + $0x140] sm:$0xff] %v3193_v42  ;;  %v3131_v39 = vadd.f32 %v5363_v37, %v3060_v16  ;;  %v2998_v26 = vmax.f32 %v2150_v4, %v2791_v2  ;;  %v5963_v2 = vld [vmem:[#allocation55_spill] sm:$0xff] }
 0x1c6   : > { %v3196_v31 = vmax.f32 %v3132_v29, 0.0  ;;  %v3063_v47 = vmax.f32 %v5944_v46, %v2999_v61  ;;  %v5962_v29 = vmax.f32 %v5960_v1, %v5961_v28 }
 0x1c7   : > { %v3195_v54 = vmax.f32 %v3131_v39, 0.0  ;;  %v3062_v40 = vmax.f32 %v5947_v10, %v2998_v26  ;;  %v4206_v41 = vpop.f32.mrb[110].mxu0  ;;  %v4310_v34 = vpop.f32.mrb[110].mxu1  ;;  %v5964_v39 = vld [vmem:[#allocation56_spill] sm:$0xff] }
 0x1c8   : > { %3260 = vst [vmem:[%s5376_s26 + $0x158] sm:$0xff] %v3196_v31  ;;  %v3134_v35 = vadd.f32 %v5363_v37, %v3063_v47  ;;  %v3001_v30 = vmax.f32 %v4206_v41, %v4310_v34  ;;  %v2160_v58 = vpop.f32.mrb[111].mxu0  ;;  %v2801_v50 = vpop.f32.mrb[111].mxu1  ;;  %v5965_v26 = vmax.f32 %v5963_v2, %v5964_v39  ;;  %v5966_v41 = vld [vmem:[#allocation57_spill] sm:$0xff]  ;;  %v5967_v34 = vld [vmem:[#allocation58_spill] sm:$0xff] }
 0x1c9   : > { %3259 = vst [vmem:[%s5376_s26 + $0x150] sm:$0xff] %v3195_v54  ;;  %v3133_v51 = vadd.f32 %v5363_v37, %v3062_v40  ;;  %v3000_v8 = vmax.f32 %v2160_v58, %v2801_v50  ;;  %v5969_v50 = vld [vmem:[#allocation59_spill] sm:$0xff] }
 0x1ca   : > { %v3198_v59 = vmax.f32 %v3134_v35, 0.0  ;;  %v3065_v11 = vmax.f32 %v5950_v36, %v3001_v30  ;;  %v5968_v35 = vmax.f32 %v5966_v41, %v5967_v34 }
 0x1cb   : > { %v3197_v12 = vmax.f32 %v3133_v51, 0.0  ;;  %v3064_v53 = vmax.f32 %v5953_v7, %v3000_v8  ;;  %v4209_v57 = vpop.f32.mrb[112].mxu0  ;;  %v4313_v55 = vpop.f32.mrb[112].mxu1  ;;  %v5970_v51 = vld [vmem:[#allocation60_spill] sm:$0xff] }
 0x1cc   : > { %3262 = vst [vmem:[%s5376_s26 + $0x168] sm:$0xff] %v3198_v59  ;;  %v3136_v14 = vadd.f32 %v5363_v37, %v3065_v11  ;;  %v3003_v15 = vmax.f32 %v4209_v57, %v4313_v55  ;;  %v2170_v56 = vpop.f32.mrb[113].mxu0  ;;  %v2811_v17 = vpop.f32.mrb[113].mxu1  ;;  %v5971_v8 = vmax.f32 %v5969_v50, %v5970_v51  ;;  %v5972_v57 = vld [vmem:[#allocation61_spill] sm:$0xff]  ;;  %v5973_v55 = vld [vmem:[#allocation62_spill] sm:$0xff] }
 0x1cd   : > { %3261 = vst [vmem:[%s5376_s26 + $0x160] sm:$0xff] %v3197_v12  ;;  %v3135_v24 = vadd.f32 %v5363_v37, %v3064_v53  ;;  %v3002_v0 = vmax.f32 %v2170_v56, %v2811_v17  ;;  %v5975_v17 = vld [vmem:[#allocation63_spill] sm:$0xff] }
 0x1ce   : > { %v3200_v3 = vmax.f32 %v3136_v14, 0.0  ;;  %v3067_v23 = vmax.f32 %v5956_v19, %v3003_v15  ;;  %v5974_v14 = vmax.f32 %v5972_v57, %v5973_v55 }
 0x1cf   : > { %v3199_v21 = vmax.f32 %v3135_v24, 0.0  ;;  %v3066_v49 = vmax.f32 %v5959_v48, %v3002_v0  ;;  %v4212_v20 = vpop.f32.mrb[114].mxu0  ;;  %v4316_v25 = vpop.f32.mrb[114].mxu1  ;;  %v5976_v24 = vld [vmem:[#allocation64_spill] sm:$0xff] }
 0x1d0   : > { %3264 = vst [vmem:[%s5376_s26 + $0x178] sm:$0xff] %v3200_v3  ;;  %v3138_v5 = vadd.f32 %v5363_v37, %v3067_v23  ;;  %v3005_v27 = vmax.f32 %v4212_v20, %v4316_v25  ;;  %v2180_v42 = vpop.f32.mrb[115].mxu0  ;;  %v2821_v43 = vpop.f32.mrb[115].mxu1  ;;  %v5977_v0 = vmax.f32 %v5975_v17, %v5976_v24  ;;  %v5978_v20 = vld [vmem:[#allocation65_spill] sm:$0xff]  ;;  %v5979_v25 = vld [vmem:[#allocation66_spill] sm:$0xff] }
 0x1d1   : > { %3263 = vst [vmem:[%s5376_s26 + $0x170] sm:$0xff] %v3199_v21  ;;  %v3137_v62 = vadd.f32 %v5363_v37, %v3066_v49  ;;  %v3004_v63 = vmax.f32 %v2180_v42, %v2821_v43  ;;  %v5981_v43 = vld [vmem:[#allocation67_spill] sm:$0xff] }
 0x1d2   : > { %v3202_v16 = vmax.f32 %v3138_v5, 0.0  ;;  %v3069_v61 = vmax.f32 %v5962_v29, %v3005_v27  ;;  %v5980_v5 = vmax.f32 %v5978_v20, %v5979_v25 }
 0x1d3   : > { %v3201_v4 = vmax.f32 %v3137_v62, 0.0  ;;  %v3068_v31 = vmax.f32 %v5965_v26, %v3004_v63  ;;  %v4215_v38 = vpop.f32.mrb[116].mxu0  ;;  %v4319_v45 = vpop.f32.mrb[116].mxu1  ;;  %v5982_v62 = vld [vmem:[#allocation68_spill] sm:$0xff] }
 0x1d4   : > { %3266 = vst [vmem:[%s5376_s26 + $0x188] sm:$0xff] %v3202_v16  ;;  %v3140_v46 = vadd.f32 %v5363_v37, %v3069_v61  ;;  %v3007_v47 = vmax.f32 %v4215_v38, %v4319_v45  ;;  %v2190_v54 = vpop.f32.mrb[117].mxu0  ;;  %v2831_v32 = vpop.f32.mrb[117].mxu1  ;;  %v5983_v63 = vmax.f32 %v5981_v43, %v5982_v62  ;;  %v5984_v38 = vld [vmem:[#allocation69_spill] sm:$0xff]  ;;  %v5985_v45 = vld [vmem:[#allocation70_spill] sm:$0xff] }
 0x1d5   : > { %3265 = vst [vmem:[%s5376_s26 + $0x180] sm:$0xff] %v3201_v4  ;;  %v3139_v33 = vadd.f32 %v5363_v37, %v3068_v31  ;;  %v3006_v10 = vmax.f32 %v2190_v54, %v2831_v32  ;;  %v5987_v32 = vld [vmem:[#allocation71_spill] sm:$0xff] }
 0x1d6   : > { %v3204_v40 = vmax.f32 %v3140_v46, 0.0  ;;  %v3071_v30 = vmax.f32 %v5968_v35, %v3007_v47  ;;  %v5986_v46 = vmax.f32 %v5984_v38, %v5985_v45 }
 0x1d7   : > { %v3203_v58 = vmax.f32 %v3139_v33, 0.0  ;;  %v3070_v59 = vmax.f32 %v5971_v8, %v3006_v10  ;;  %v4218_v60 = vpop.f32.mrb[118].mxu0  ;;  %v4322_v9 = vpop.f32.mrb[118].mxu1  ;;  %v5988_v33 = vld [vmem:[#allocation72_spill] sm:$0xff] }
 0x1d8   : > { %3268 = vst [vmem:[%s5376_s26 + $0x198] sm:$0xff] %v3204_v40  ;;  %v3142_v36 = vadd.f32 %v5363_v37, %v3071_v30  ;;  %v3009_v11 = vmax.f32 %v4218_v60, %v4322_v9  ;;  %v2200_v12 = vpop.f32.mrb[119].mxu0  ;;  %v2841_v44 = vpop.f32.mrb[119].mxu1  ;;  %v5989_v10 = vmax.f32 %v5987_v32, %v5988_v33  ;;  %v5990_v60 = vld [vmem:[#allocation73_spill] sm:$0xff]  ;;  %v5991_v9 = vld [vmem:[#allocation74_spill] sm:$0xff] }
 0x1d9   : > { %3267 = vst [vmem:[%s5376_s26 + $0x190] sm:$0xff] %v3203_v58  ;;  %v3141_v52 = vadd.f32 %v5363_v37, %v3070_v59  ;;  %v3008_v7 = vmax.f32 %v2200_v12, %v2841_v44  ;;  %v5993_v44 = vld [vmem:[#allocation75_spill] sm:$0xff] }
 0x1da   : > { %v3206_v53 = vmax.f32 %v3142_v36, 0.0  ;;  %v3073_v15 = vmax.f32 %v5974_v14, %v3009_v11  ;;  %v5992_v36 = vmax.f32 %v5990_v60, %v5991_v9 }
 0x1db   : > { %v3205_v56 = vmax.f32 %v3141_v52, 0.0  ;;  %v3072_v3 = vmax.f32 %v5977_v0, %v3008_v7  ;;  %v4221_v13 = vpop.f32.mrb[120].mxu0  ;;  %v4325_v18 = vpop.f32.mrb[120].mxu1  ;;  %v5994_v52 = vld [vmem:[#allocation76_spill] sm:$0xff] }
 0x1dc   : > { %3270 = vst [vmem:[%s5376_s26 + $0x1a8] sm:$0xff] %v3206_v53  ;;  %v3144_v19 = vadd.f32 %v5363_v37, %v3073_v15  ;;  %v3011_v23 = vmax.f32 %v4221_v13, %v4325_v18  ;;  %v2210_v21 = vpop.f32.mrb[121].mxu0  ;;  %v2851_v22 = vpop.f32.mrb[121].mxu1  ;;  %v5995_v7 = vmax.f32 %v5993_v44, %v5994_v52  ;;  %v5996_v13 = vld [vmem:[#allocation77_spill] sm:$0xff]  ;;  %v5997_v18 = vld [vmem:[#allocation78_spill] sm:$0xff] }
 0x1dd   : > { %3269 = vst [vmem:[%s5376_s26 + $0x1a0] sm:$0xff] %v3205_v56  ;;  %v3143_v6 = vadd.f32 %v5363_v37, %v3072_v3  ;;  %v3010_v48 = vmax.f32 %v2210_v21, %v2851_v22  ;;  %v5999_v22 = vld [vmem:[#allocation79_spill] sm:$0xff] }
 0x1de   : > { %v3208_v49 = vmax.f32 %v3144_v19, 0.0  ;;  %v3075_v27 = vmax.f32 %v5980_v5, %v3011_v23  ;;  %v5998_v19 = vmax.f32 %v5996_v13, %v5997_v18 }
 0x1df   : > { %v3207_v42 = vmax.f32 %v3143_v6, 0.0  ;;  %v3074_v16 = vmax.f32 %v5983_v63, %v3010_v48  ;;  %v4224_v1 = vpop.f32.mrb[122].mxu0  ;;  %v4328_v28 = vpop.f32.mrb[122].mxu1  ;;  %v6000_v6 = vld [vmem:[#allocation80_spill] sm:$0xff] }
 0x1e0   : > { %3272 = vst [vmem:[%s5376_s26 + $0x1b8] sm:$0xff] %v3208_v49  ;;  %v3146_v29 = vadd.f32 %v5363_v37, %v3075_v27  ;;  %v3013_v61 = vmax.f32 %v4224_v1, %v4328_v28  ;;  %v2220_v4 = vpop.f32.mrb[123].mxu0  ;;  %v2861_v2 = vpop.f32.mrb[123].mxu1  ;;  %v6001_v48 = vmax.f32 %v5999_v22, %v6000_v6 }
 0x1e1   : > { %3271 = vst [vmem:[%s5376_s26 + $0x1b0] sm:$0xff] %v3207_v42  ;;  %v3145_v39 = vadd.f32 %v5363_v37, %v3074_v16  ;;  %v3012_v26 = vmax.f32 %v2220_v4, %v2861_v2 }
 0x1e2   : > { %v3210_v31 = vmax.f32 %v3146_v29, 0.0  ;;  %v3077_v47 = vmax.f32 %v5986_v46, %v3013_v61 }
 0x1e3   : > { %v3209_v54 = vmax.f32 %v3145_v39, 0.0  ;;  %v3076_v40 = vmax.f32 %v5989_v10, %v3012_v26  ;;  %v4227_v41 = vpop.f32.mrb[124].mxu0  ;;  %v4331_v34 = vpop.f32.mrb[124].mxu1 }
 0x1e4   : > { %3274 = vst [vmem:[%s5376_s26 + $0x1c8] sm:$0xff] %v3210_v31  ;;  %v3148_v35 = vadd.f32 %v5363_v37, %v3077_v47  ;;  %v3015_v30 = vmax.f32 %v4227_v41, %v4331_v34  ;;  %v2230_v58 = vpop.f32.mrb[125].mxu0  ;;  %v2871_v50 = vpop.f32.mrb[125].mxu1 }
 0x1e5   : > { %3273 = vst [vmem:[%s5376_s26 + $0x1c0] sm:$0xff] %v3209_v54  ;;  %v3147_v51 = vadd.f32 %v5363_v37, %v3076_v40  ;;  %v3014_v8 = vmax.f32 %v2230_v58, %v2871_v50 }
 0x1e6   : > { %v3212_v59 = vmax.f32 %v3148_v35, 0.0  ;;  %v3079_v11 = vmax.f32 %v5992_v36, %v3015_v30 }
 0x1e7   : > { %v3211_v12 = vmax.f32 %v3147_v51, 0.0  ;;  %v3078_v53 = vmax.f32 %v5995_v7, %v3014_v8  ;;  %v4230_v57 = vpop.f32.mrb[126].mxu0  ;;  %v4334_v55 = vpop.f32.mrb[126].mxu1 }
 0x1e8   : > { %3276 = vst [vmem:[%s5376_s26 + $0x1d8] sm:$0xff] %v3212_v59  ;;  %v3150_v14 = vadd.f32 %v5363_v37, %v3079_v11  ;;  %v3017_v15 = vmax.f32 %v4230_v57, %v4334_v55  ;;  %v2240_v56 = vpop.f32.mrb[127].mxu0  ;;  %v2881_v17 = vpop.f32.mrb[127].mxu1 }
 0x1e9   : > { %3275 = vst [vmem:[%s5376_s26 + $0x1d0] sm:$0xff] %v3211_v12  ;;  %v3149_v24 = vadd.f32 %v5363_v37, %v3078_v53  ;;  %v3016_v0 = vmax.f32 %v2240_v56, %v2881_v17 }
 0x1ea   : > { %v3214_v3 = vmax.f32 %v3150_v14, 0.0  ;;  %v3081_v23 = vmax.f32 %v5998_v19, %v3017_v15 }
 0x1eb   : > { %v3213_v21 = vmax.f32 %v3149_v24, 0.0  ;;  %v3080_v49 = vmax.f32 %v6001_v48, %v3016_v0 }
 0x1ec   : > { %3278 = vst [vmem:[%s5376_s26 + $0x1e8] sm:$0xff] %v3214_v3  ;;  %v3152_v20 = vadd.f32 %v5363_v37, %v3081_v23 }
 0x1ed   : > { %3277 = vst [vmem:[%s5376_s26 + $0x1e0] sm:$0xff] %v3213_v21  ;;  %v3151_v25 = vadd.f32 %v5363_v37, %v3080_v49 }
 0x1ee   : > { %v3216_v5 = vmax.f32 %v3152_v20, 0.0 }
 0x1ef   : > { %v3215_v27 = vmax.f32 %v3151_v25, 0.0 }
 0x1f0   : > { %3280 = vst [vmem:[%s5376_s26 + $0x1f8] sm:$0xff] %v3216_v5 }
 0x1f1   : > { %3279 = vst [vmem:[%s5376_s26 + $0x1f0] sm:$0xff] %v3215_v27 }
 0x1f2 PF: > { %s16_s21 = sadd.s32 1, %s4381_s21  }
 0x1f3   : > { %p13_p4 = scmp.ge.s32.totalorder %s16_s21, 5  }
 0x1f5   :  { %15 = sbr.rel (!%p13_p4) target bundleno = 1 (0x1), region = 83 }

// kernel: net_forward.4
= control target key start
LH: loop header
LB: loop body
LE: loop exit
PB: predicated region body
PF: predicated region fallthrough
CT: control target
= control target key end

     0   :  { %v1237_v0 = vmov 0.0|0.0   ;;  %vm75_vm0 = vcmask 261120   ;;  %s2094_s4 = inlined_call_operand.vmem [shape: f32[160,128], index: 4, kind: input, shape index: {}]   ;;  %s2095_s0 = inlined_call_operand.vmem [shape: f32[128,160], index: 0, kind: input, shape index: {}]   ;;  %s2096_s1 = inlined_call_operand.vmem [shape: f32[128,160], index: 1, kind: input, shape index: {}]   ;;  %s2097_s2 = inlined_call_operand.vmem [shape: f32[128,160], index: 2, kind: input, shape index: {}]   ;;  %s2098_s3 = inlined_call_operand.vmem [shape: f32[128,160], index: 3, kind: input, shape index: {}]   ;;  %s2099_s5 = inlined_call_operand.vmem [shape: f32[1,128], index: 5, kind: input, shape index: {}]   ;;  %s2100_s6 = inlined_call_operand.vmem [shape: f32[128,128], index: 6, kind: output, shape index: {}]  }
   0x1   :  { %1116 = vmatprep.subr.bf16.mxu0 %v1237_v0  ;;  %1146 = vmatprep.subr.bf16.mxu1 %v1237_v0  ;;  %v23_v1 = vld [vmem:[%s2094_s4] sm:$0xff]  ;;  %v24_v2 = vld [vmem:[%s2094_s4 + $0x8] sm:$0xff]  ;;  %v25_v3 = vld [vmem:[%s2094_s4 + $0x10] sm:$0xff] }
   0x2   :  { %v1284_v4 = vpack.c.bf16 %v24_v2, %v23_v1  ;;  %v26_v5 = vld [vmem:[%s2094_s4 + $0x18] sm:$0xff]  ;;  %v27_v7 = vld [vmem:[%s2094_s4 + $0x20] sm:$0xff]  ;;  %v28_v8 = vld [vmem:[%s2094_s4 + $0x28] sm:$0xff] }
   0x3   :  { %v1291_v6 = vpack.c.bf16 %v26_v5, %v25_v3  ;;  %v44_v9 = vld [vmem:[%s2095_s0 + $0x8] sm:$0xff]  ;;  %v1306_v10 = vpack.c.bf16 %v28_v8, %v27_v7  ;;  %v29_v12 = vld [vmem:[%s2094_s4 + $0x30] sm:$0xff]  ;;  %v30_v13 = vld [vmem:[%s2094_s4 + $0x38] sm:$0xff] }
   0x4   :  { %1118 = vmatpush1.bf16.msra.mxu0 %v1284_v4  ;;  %1148 = vmatpush1.bf16.msra.mxu1 %v1284_v4  ;;  %v270_v11 = vld [vmem:[%s2096_s1 + $0x8] sm:$0xff]  ;;  %v1323_v14 = vpack.c.bf16 %v30_v13, %v29_v12  ;;  %v31_v15 = vld [vmem:[%s2094_s4 + $0x40] sm:$0xff]  ;;  %v33_v18 = vld [vmem:[%s2094_s4 + $0x50] sm:$0xff] }
   0x5   :  { %1119 = vmatprep.subr.bf16.mxu0 %v1237_v0  ;;  %1149 = vmatprep.subr.bf16.mxu1 %v1237_v0  ;;  %v32_v16 = vld [vmem:[%s2094_s4 + $0x48] sm:$0xff]  ;;  %v34_v19 = vld [vmem:[%s2094_s4 + $0x58] sm:$0xff]  ;;  %v35_v21 = vld [vmem:[%s2094_s4 + $0x60] sm:$0xff] }
   0x6   :  { %1051 = vmatprep.mubr.msk.f32.mxu0 %vm75_vm0, %v44_v9  ;;  %1067 = vmatprep.mubr.msk.f32.mxu1 %vm75_vm0, %v270_v11  ;;  %v1335_v17 = vpack.c.bf16 %v32_v16, %v31_v15  ;;  %v1347_v20 = vpack.c.bf16 %v34_v19, %v33_v18  ;;  %v36_v22 = vld [vmem:[%s2094_s4 + $0x68] sm:$0xff]  ;;  %v37_v24 = vld [vmem:[%s2094_s4 + $0x70] sm:$0xff]  ;;  %v38_v25 = vld [vmem:[%s2094_s4 + $0x78] sm:$0xff] }
   0x7   :  { %v1359_v23 = vpack.c.bf16 %v36_v22, %v35_v21  ;;  %v1371_v26 = vpack.c.bf16 %v38_v25, %v37_v24  ;;  %v39_v27 = vld [vmem:[%s2094_s4 + $0x80] sm:$0xff]  ;;  %v40_v28 = vld [vmem:[%s2094_s4 + $0x88] sm:$0xff]  ;;  %v41_v30 = vld [vmem:[%s2094_s4 + $0x90] sm:$0xff] }
   0x8   :  { %1121 = vmatpush1.bf16.msra.mxu0 %v1291_v6  ;;  %1151 = vmatpush1.bf16.msra.mxu1 %v1291_v6  ;;  %v1383_v29 = vpack.c.bf16 %v40_v28, %v39_v27  ;;  %v42_v31 = vld [vmem:[%s2094_s4 + $0x98] sm:$0xff]  ;;  %v43_v33 = vld [vmem:[%s2095_s0] sm:$0xff]  ;;  %v45_v37 = vld [vmem:[%s2095_s0 + $0x10] sm:$0xff] }
   0x9   :  { %1122 = vmatprep.subr.bf16.mxu0 %v1237_v0  ;;  %1152 = vmatprep.subr.bf16.mxu1 %v1237_v0  ;;  %v1395_v32 = vpack.c.bf16 %v42_v31, %v41_v30  ;;  %v269_v34 = vld [vmem:[%s2096_s1] sm:$0xff]  ;;  %v46_v35 = vld [vmem:[%s2095_s0 + $0x18] sm:$0xff]  ;;  %v271_v38 = vld [vmem:[%s2096_s1 + $0x10] sm:$0xff] }
   0xa   :  { %v272_v36 = vld [vmem:[%s2096_s1 + $0x18] sm:$0xff]  ;;  %v48_v39 = vld [vmem:[%s2095_s0 + $0x28] sm:$0xff]  ;;  %v47_v41 = vld [vmem:[%s2095_s0 + $0x20] sm:$0xff] }
   0xb   :  { %v274_v40 = vld [vmem:[%s2096_s1 + $0x28] sm:$0xff]  ;;  %v273_v42 = vld [vmem:[%s2096_s1 + $0x20] sm:$0xff]  ;;  %v50_v43 = vld [vmem:[%s2095_s0 + $0x38] sm:$0xff] }
   0xc   :  { %1124 = vmatpush1.bf16.msra.mxu0 %v1306_v10  ;;  %1154 = vmatpush1.bf16.msra.mxu1 %v1306_v10  ;;  %v276_v44 = vld [vmem:[%s2096_s1 + $0x38] sm:$0xff]  ;;  %v49_v45 = vld [vmem:[%s2095_s0 + $0x30] sm:$0xff]  ;;  %v52_v47 = vld [vmem:[%s2095_s0 + $0x48] sm:$0xff] }
   0xd   :  { %1125 = vmatprep.subr.bf16.mxu0 %v1237_v0  ;;  %1155 = vmatprep.subr.bf16.mxu1 %v1237_v0  ;;  %v275_v46 = vld [vmem:[%s2096_s1 + $0x30] sm:$0xff]  ;;  %v278_v48 = vld [vmem:[%s2096_s1 + $0x48] sm:$0xff]  ;;  %v51_v49 = vld [vmem:[%s2095_s0 + $0x40] sm:$0xff] }
   0xe   :  { %v277_v50 = vld [vmem:[%s2096_s1 + $0x40] sm:$0xff]  ;;  %v54_v51 = vld [vmem:[%s2095_s0 + $0x58] sm:$0xff]  ;;  %v53_v53 = vld [vmem:[%s2095_s0 + $0x50] sm:$0xff] }
   0xf   :  { %v280_v52 = vld [vmem:[%s2096_s1 + $0x58] sm:$0xff]  ;;  %v279_v54 = vld [vmem:[%s2096_s1 + $0x50] sm:$0xff]  ;;  %v56_v55 = vld [vmem:[%s2095_s0 + $0x68] sm:$0xff] }
  0x10   :  { %1127 = vmatpush1.bf16.msra.mxu0 %v1323_v14  ;;  %1157 = vmatpush1.bf16.msra.mxu1 %v1323_v14  ;;  %v282_v56 = vld [vmem:[%s2096_s1 + $0x68] sm:$0xff]  ;;  %v55_v57 = vld [vmem:[%s2095_s0 + $0x60] sm:$0xff]  ;;  %v58_v59 = vld [vmem:[%s2095_s0 + $0x78] sm:$0xff] }
  0x11   :  { %1128 = vmatprep.subr.bf16.mxu0 %v1237_v0  ;;  %1158 = vmatprep.subr.bf16.mxu1 %v1237_v0  ;;  %v281_v58 = vld [vmem:[%s2096_s1 + $0x60] sm:$0xff]  ;;  %v284_v60 = vld [vmem:[%s2096_s1 + $0x78] sm:$0xff]  ;;  %v57_v61 = vld [vmem:[%s2095_s0 + $0x70] sm:$0xff] }
  0x12   :  { %v283_v62 = vld [vmem:[%s2096_s1 + $0x70] sm:$0xff]  ;;  %v60_v63 = vld [vmem:[%s2095_s0 + $0x88] sm:$0xff]  ;;  %v59_v2 = vld [vmem:[%s2095_s0 + $0x80] sm:$0xff] }
  0x13   :  { %v286_v1 = vld [vmem:[%s2096_s1 + $0x88] sm:$0xff]  ;;  %v285_v3 = vld [vmem:[%s2096_s1 + $0x80] sm:$0xff]  ;;  %v288_v5 = vld [vmem:[%s2096_s1 + $0x98] sm:$0xff] }
  0x14   :  { %1130 = vmatpush1.bf16.msra.mxu0 %v1335_v17  ;;  %1160 = vmatpush1.bf16.msra.mxu1 %v1335_v17  ;;  %v287_v7 = vld [vmem:[%s2096_s1 + $0x90] sm:$0xff]  ;;  %v64_v8 = vld [vmem:[%s2095_s0 + $0xa8] sm:$0xff]  ;;  %v289_v11 = vld [vmem:[%s2096_s1 + $0xa0] sm:$0xff] }
  0x15   :  { %1131 = vmatprep.subr.bf16.mxu0 %v1237_v0  ;;  %1161 = vmatprep.subr.bf16.mxu1 %v1237_v0  ;;  %v290_v9 = vld [vmem:[%s2096_s1 + $0xa8] sm:$0xff]  ;;  %v66_v12 = vld [vmem:[%s2095_s0 + $0xb8] sm:$0xff]  ;;  %v65_v13 = vld [vmem:[%s2095_s0 + $0xb0] sm:$0xff] }
  0x16   :  { %v68_v15 = vld [vmem:[%s2095_s0 + $0xc8] sm:$0xff]  ;;  %v293_v18 = vld [vmem:[%s2096_s1 + $0xc0] sm:$0xff]  ;;  %v70_v19 = vld [vmem:[%s2095_s0 + $0xd8] sm:$0xff] }
  0x17   :  { %v294_v16 = vld [vmem:[%s2096_s1 + $0xc8] sm:$0xff]  ;;  %v69_v21 = vld [vmem:[%s2095_s0 + $0xd0] sm:$0xff]  ;;  %v71_v25 = vld [vmem:[%s2095_s0 + $0xe0] sm:$0xff] }
  0x18   :  { %1133 = vmatpush1.bf16.msra.mxu0 %v1347_v20  ;;  %1163 = vmatpush1.bf16.msra.mxu1 %v1347_v20  ;;  %v295_v22 = vld [vmem:[%s2096_s1 + $0xd0] sm:$0xff]  ;;  %v298_v24 = vld [vmem:[%s2096_s1 + $0xe8] sm:$0xff]  ;;  %v74_v27 = vld [vmem:[%s2095_s0 + $0xf8] sm:$0xff] }
  0x19   :  { %1134 = vmatprep.subr.bf16.mxu0 %v1237_v0  ;;  %1164 = vmatprep.subr.bf16.mxu1 %v1237_v0  ;;  %v300_v28 = vld [vmem:[%s2096_s1 + $0xf8] sm:$0xff]  ;;  %v299_v30 = vld [vmem:[%s2096_s1 + $0xf0] sm:$0xff]  ;;  %v495_v31 = vld [vmem:[%s2097_s2 + $0x8] sm:$0xff] }
  0x1c   :  { %1136 = vmatpush1.bf16.msra.mxu0 %v1359_v23  ;;  %1166 = vmatpush1.bf16.msra.mxu1 %v1359_v23 }
  0x1d   :  { %1137 = vmatprep.subr.bf16.mxu0 %v1237_v0  ;;  %1167 = vmatprep.subr.bf16.mxu1 %v1237_v0 }
  0x20   :  { %1139 = vmatpush1.bf16.msra.mxu0 %v1371_v26  ;;  %1169 = vmatpush1.bf16.msra.mxu1 %v1371_v26 }
  0x21   :  { %1140 = vmatprep.subr.bf16.mxu0 %v1237_v0  ;;  %1170 = vmatprep.subr.bf16.mxu1 %v1237_v0 }
  0x24   :  { %1142 = vmatpush1.bf16.msra.mxu0 %v1383_v29  ;;  %1172 = vmatpush1.bf16.msra.mxu1 %v1383_v29 }
  0x25   :  { %1143 = vmatprep.subr.bf16.mxu0 %v1237_v0  ;;  %1173 = vmatprep.subr.bf16.mxu1 %v1237_v0 }
  0x28   :  { %1145 = vmatpush1.bf16.msra.mxu0 %v1395_v32  ;;  %1175 = vmatpush1.bf16.msra.mxu1 %v1395_v32 }
  0x29   :  { %1176 = vmatprep.subr.bf16.mxu0 %v1237_v0  ;;  %1206 = vmatprep.subr.bf16.mxu1 %v1237_v0 }
  0x2b   :  { %189 = vmatmul.mubr.f32.vlgmr.msra.gmra.mrb[0].mxu0 %v43_v33  ;;  %414 = vmatmul.mubr.f32.vlgmr.msra.gmra.mrb[0].mxu1 %v269_v34  ;;  %v494_v33 = vld [vmem:[%s2097_s2] sm:$0xff] }
  0x2c   :  { %1178 = vmatpush1.bf16.msra.mxu0 %v1284_v4  ;;  %1208 = vmatpush1.bf16.msra.mxu1 %v1284_v4  ;;  %v62_v4 = vld [vmem:[%s2095_s0 + $0x98] sm:$0xff]  ;;  %v719_v34 = vld [vmem:[%s2098_s3] sm:$0xff] }
  0x2d   :  { %1052 = vmatprep.mubr.msk.f32.mxu0 %vm75_vm0, %v46_v35  ;;  %1068 = vmatprep.mubr.msk.f32.mxu1 %vm75_vm0, %v272_v36  ;;  %v497_v35 = vld [vmem:[%s2097_s2 + $0x18] sm:$0xff] }
  0x2e   :  { %1179 = vmatprep.subr.bf16.mxu0 %v1237_v0  ;;  %1209 = vmatprep.subr.bf16.mxu1 %v1237_v0  ;;  %v722_v36 = vld [vmem:[%s2098_s3 + $0x18] sm:$0xff] }
  0x2f   :  { %194 = vmatmul.mubr.f32.gmra.mrb[2].mxu0 %v45_v37  ;;  %419 = vmatmul.mubr.f32.gmra.mrb[2].mxu1 %v271_v38  ;;  %v496_v37 = vld [vmem:[%s2097_s2 + $0x10] sm:$0xff] }
  0x30   :  { %1053 = vmatprep.mubr.msk.f32.mxu0 %vm75_vm0, %v48_v39  ;;  %1069 = vmatprep.mubr.msk.f32.mxu1 %vm75_vm0, %v274_v40  ;;  %v721_v38 = vld [vmem:[%s2098_s3 + $0x10] sm:$0xff]  ;;  %v499_v39 = vld [vmem:[%s2097_s2 + $0x28] sm:$0xff] }
  0x31   :  { %1181 = vmatpush1.bf16.msra.mxu0 %v1291_v6  ;;  %1211 = vmatpush1.bf16.msra.mxu1 %v1291_v6  ;;  %v61_v6 = vld [vmem:[%s2095_s0 + $0x90] sm:$0xff]  ;;  %v724_v40 = vld [vmem:[%s2098_s3 + $0x28] sm:$0xff] }
  0x32   :  { %1182 = vmatprep.subr.bf16.mxu0 %v1237_v0  ;;  %1212 = vmatprep.subr.bf16.mxu1 %v1237_v0 }
  0x33   :  { %199 = vmatmul.mubr.f32.gmra.mrb[4].mxu0 %v47_v41  ;;  %424 = vmatmul.mubr.f32.gmra.mrb[4].mxu1 %v273_v42  ;;  %v498_v41 = vld [vmem:[%s2097_s2 + $0x20] sm:$0xff] }
  0x34   :  { %1054 = vmatprep.mubr.msk.f32.mxu0 %vm75_vm0, %v50_v43  ;;  %1070 = vmatprep.mubr.msk.f32.mxu1 %vm75_vm0, %v276_v44  ;;  %v723_v42 = vld [vmem:[%s2098_s3 + $0x20] sm:$0xff]  ;;  %v501_v43 = vld [vmem:[%s2097_s2 + $0x38] sm:$0xff] }
  0x35   :  { %1184 = vmatpush1.bf16.msra.mxu0 %v1306_v10  ;;  %1214 = vmatpush1.bf16.msra.mxu1 %v1306_v10  ;;  %v63_v10 = vld [vmem:[%s2095_s0 + $0xa0] sm:$0xff]  ;;  %v726_v44 = vld [vmem:[%s2098_s3 + $0x38] sm:$0xff] }
  0x36   :  { %1185 = vmatprep.subr.bf16.mxu0 %v1237_v0  ;;  %1215 = vmatprep.subr.bf16.mxu1 %v1237_v0 }
  0x37   :  { %204 = vmatmul.mubr.f32.gmra.mrb[6].mxu0 %v49_v45  ;;  %429 = vmatmul.mubr.f32.gmra.mrb[6].mxu1 %v275_v46  ;;  %v500_v45 = vld [vmem:[%s2097_s2 + $0x30] sm:$0xff] }
  0x38   :  { %1055 = vmatprep.mubr.msk.f32.mxu0 %vm75_vm0, %v52_v47  ;;  %1071 = vmatprep.mubr.msk.f32.mxu1 %vm75_vm0, %v278_v48  ;;  %v725_v46 = vld [vmem:[%s2098_s3 + $0x30] sm:$0xff]  ;;  %v503_v47 = vld [vmem:[%s2097_s2 + $0x48] sm:$0xff] }
  0x39   :  { %1187 = vmatpush1.bf16.msra.mxu0 %v1323_v14  ;;  %1217 = vmatpush1.bf16.msra.mxu1 %v1323_v14  ;;  %v291_v14 = vld [vmem:[%s2096_s1 + $0xb0] sm:$0xff]  ;;  %v728_v48 = vld [vmem:[%s2098_s3 + $0x48] sm:$0xff] }
  0x3a   :  { %1188 = vmatprep.subr.bf16.mxu0 %v1237_v0  ;;  %1218 = vmatprep.subr.bf16.mxu1 %v1237_v0 }
  0x3b   :  { %209 = vmatmul.mubr.f32.gmra.mrb[8].mxu0 %v51_v49  ;;  %434 = vmatmul.mubr.f32.gmra.mrb[8].mxu1 %v277_v50  ;;  %v502_v49 = vld [vmem:[%s2097_s2 + $0x40] sm:$0xff] }
  0x3c   :  { %1056 = vmatprep.mubr.msk.f32.mxu0 %vm75_vm0, %v54_v51  ;;  %1072 = vmatprep.mubr.msk.f32.mxu1 %vm75_vm0, %v280_v52  ;;  %v727_v50 = vld [vmem:[%s2098_s3 + $0x40] sm:$0xff]  ;;  %v505_v51 = vld [vmem:[%s2097_s2 + $0x58] sm:$0xff] }
  0x3d   :  { %1190 = vmatpush1.bf16.msra.mxu0 %v1335_v17  ;;  %1220 = vmatpush1.bf16.msra.mxu1 %v1335_v17  ;;  %v67_v17 = vld [vmem:[%s2095_s0 + $0xc0] sm:$0xff]  ;;  %v730_v52 = vld [vmem:[%s2098_s3 + $0x58] sm:$0xff] }
  0x3e   :  { %1191 = vmatprep.subr.bf16.mxu0 %v1237_v0  ;;  %1221 = vmatprep.subr.bf16.mxu1 %v1237_v0 }
  0x3f   :  { %214 = vmatmul.mubr.f32.gmra.mrb[10].mxu0 %v53_v53  ;;  %439 = vmatmul.mubr.f32.gmra.mrb[10].mxu1 %v279_v54  ;;  %v504_v53 = vld [vmem:[%s2097_s2 + $0x50] sm:$0xff] }
  0x40   :  { %1057 = vmatprep.mubr.msk.f32.mxu0 %vm75_vm0, %v56_v55  ;;  %1073 = vmatprep.mubr.msk.f32.mxu1 %vm75_vm0, %v282_v56  ;;  %v729_v54 = vld [vmem:[%s2098_s3 + $0x50] sm:$0xff]  ;;  %v507_v55 = vld [vmem:[%s2097_s2 + $0x68] sm:$0xff] }
  0x41   :  { %1193 = vmatpush1.bf16.msra.mxu0 %v1347_v20  ;;  %1223 = vmatpush1.bf16.msra.mxu1 %v1347_v20  ;;  %v296_v20 = vld [vmem:[%s2096_s1 + $0xd8] sm:$0xff]  ;;  %v732_v56 = vld [vmem:[%s2098_s3 + $0x68] sm:$0xff] }
  0x42   :  { %1194 = vmatprep.subr.bf16.mxu0 %v1237_v0  ;;  %1224 = vmatprep.subr.bf16.mxu1 %v1237_v0 }
  0x43   :  { %219 = vmatmul.mubr.f32.gmra.mrb[12].mxu0 %v55_v57  ;;  %444 = vmatmul.mubr.f32.gmra.mrb[12].mxu1 %v281_v58  ;;  %v506_v57 = vld [vmem:[%s2097_s2 + $0x60] sm:$0xff] }
  0x44   :  { %1058 = vmatprep.mubr.msk.f32.mxu0 %vm75_vm0, %v58_v59  ;;  %1074 = vmatprep.mubr.msk.f32.mxu1 %vm75_vm0, %v284_v60  ;;  %v731_v58 = vld [vmem:[%s2098_s3 + $0x60] sm:$0xff]  ;;  %v509_v59 = vld [vmem:[%s2097_s2 + $0x78] sm:$0xff] }
  0x45   :  { %1196 = vmatpush1.bf16.msra.mxu0 %v1359_v23  ;;  %1226 = vmatpush1.bf16.msra.mxu1 %v1359_v23  ;;  %v72_v23 = vld [vmem:[%s2095_s0 + $0xe8] sm:$0xff]  ;;  %v734_v60 = vld [vmem:[%s2098_s3 + $0x78] sm:$0xff] }
  0x46   :  { %1197 = vmatprep.subr.bf16.mxu0 %v1237_v0  ;;  %1227 = vmatprep.subr.bf16.mxu1 %v1237_v0 }
  0x47   :  { %224 = vmatmul.mubr.f32.gmra.mrb[14].mxu0 %v57_v61  ;;  %449 = vmatmul.mubr.f32.gmra.mrb[14].mxu1 %v283_v62  ;;  %v508_v61 = vld [vmem:[%s2097_s2 + $0x70] sm:$0xff] }
  0x48   :  { %1059 = vmatprep.mubr.msk.f32.mxu0 %vm75_vm0, %v60_v63  ;;  %1075 = vmatprep.mubr.msk.f32.mxu1 %vm75_vm0, %v286_v1  ;;  %v733_v62 = vld [vmem:[%s2098_s3 + $0x70] sm:$0xff]  ;;  %v511_v63 = vld [vmem:[%s2097_s2 + $0x88] sm:$0xff] }
  0x49   :  { %1199 = vmatpush1.bf16.msra.mxu0 %v1371_v26  ;;  %1229 = vmatpush1.bf16.msra.mxu1 %v1371_v26  ;;  %v297_v26 = vld [vmem:[%s2096_s1 + $0xe0] sm:$0xff]  ;;  %v736_v1 = vld [vmem:[%s2098_s3 + $0x88] sm:$0xff] }
  0x4a   :  { %1200 = vmatprep.subr.bf16.mxu0 %v1237_v0  ;;  %1230 = vmatprep.subr.bf16.mxu1 %v1237_v0 }
  0x4b   :  { %229 = vmatmul.mubr.f32.gmra.mrb[16].mxu0 %v59_v2  ;;  %454 = vmatmul.mubr.f32.gmra.mrb[16].mxu1 %v285_v3  ;;  %v510_v2 = vld [vmem:[%s2097_s2 + $0x80] sm:$0xff] }
  0x4c   :  { %1060 = vmatprep.mubr.msk.f32.mxu0 %vm75_vm0, %v62_v4  ;;  %1076 = vmatprep.mubr.msk.f32.mxu1 %vm75_vm0, %v288_v5  ;;  %v735_v3 = vld [vmem:[%s2098_s3 + $0x80] sm:$0xff]  ;;  %v513_v4 = vld [vmem:[%s2097_s2 + $0x98] sm:$0xff] }
  0x4d   :  { %1202 = vmatpush1.bf16.msra.mxu0 %v1383_v29  ;;  %1232 = vmatpush1.bf16.msra.mxu1 %v1383_v29  ;;  %v73_v29 = vld [vmem:[%s2095_s0 + $0xf0] sm:$0xff]  ;;  %v738_v5 = vld [vmem:[%s2098_s3 + $0x98] sm:$0xff] }
  0x4e   :  { %1203 = vmatprep.subr.bf16.mxu0 %v1237_v0  ;;  %1233 = vmatprep.subr.bf16.mxu1 %v1237_v0  ;;  %v292_v0 = vld [vmem:[%s2096_s1 + $0xb8] sm:$0xff] }
  0x4f   :  { %234 = vmatmul.mubr.f32.gmra.mrb[18].mxu0 %v61_v6  ;;  %459 = vmatmul.mubr.f32.gmra.mrb[18].mxu1 %v287_v7  ;;  %v512_v6 = vld [vmem:[%s2097_s2 + $0x90] sm:$0xff] }
  0x50   :  { %1061 = vmatprep.mubr.msk.f32.mxu0 %vm75_vm0, %v64_v8  ;;  %1077 = vmatprep.mubr.msk.f32.mxu1 %vm75_vm0, %v290_v9  ;;  %v737_v7 = vld [vmem:[%s2098_s3 + $0x90] sm:$0xff]  ;;  %v515_v8 = vld [vmem:[%s2097_s2 + $0xa8] sm:$0xff] }
  0x51   :  { %1205 = vmatpush1.bf16.msra.mxu0 %v1395_v32  ;;  %1235 = vmatpush1.bf16.msra.mxu1 %v1395_v32  ;;  %v720_v32 = vld [vmem:[%s2098_s3 + $0x8] sm:$0xff] }
  0x52   :  { %v740_v9 = vld [vmem:[%s2098_s3 + $0xa8] sm:$0xff] }
  0x53   :  { %239 = vmatmul.mubr.f32.gmra.mrb[20].mxu0 %v63_v10  ;;  %464 = vmatmul.mubr.f32.gmra.mrb[20].mxu1 %v289_v11  ;;  %v514_v10 = vld [vmem:[%s2097_s2 + $0xa0] sm:$0xff] }
  0x54   :  { %1062 = vmatprep.mubr.msk.f32.mxu0 %vm75_vm0, %v66_v12  ;;  %1078 = vmatprep.mubr.msk.f32.mxu1 %vm75_vm0, %v292_v0  ;;  %v739_v11 = vld [vmem:[%s2098_s3 + $0xa0] sm:$0xff]  ;;  %v517_v12 = vld [vmem:[%s2097_s2 + $0xb8] sm:$0xff] }
  0x55   :  { %v742_v0 = vld [vmem:[%s2098_s3 + $0xb8] sm:$0xff] }
  0x57   :  { %244 = vmatmul.mubr.f32.gmra.mrb[22].mxu0 %v65_v13  ;;  %469 = vmatmul.mubr.f32.gmra.mrb[22].mxu1 %v291_v14  ;;  %v516_v13 = vld [vmem:[%s2097_s2 + $0xb0] sm:$0xff] }
  0x58   :  { %1063 = vmatprep.mubr.msk.f32.mxu0 %vm75_vm0, %v68_v15  ;;  %1079 = vmatprep.mubr.msk.f32.mxu1 %vm75_vm0, %v294_v16  ;;  %v741_v14 = vld [vmem:[%s2098_s3 + $0xb0] sm:$0xff]  ;;  %v519_v15 = vld [vmem:[%s2097_s2 + $0xc8] sm:$0xff] }
  0x59   :  { %v744_v16 = vld [vmem:[%s2098_s3 + $0xc8] sm:$0xff] }
  0x5b   :  { %249 = vmatmul.mubr.f32.gmra.mrb[24].mxu0 %v67_v17  ;;  %474 = vmatmul.mubr.f32.gmra.mrb[24].mxu1 %v293_v18  ;;  %v518_v17 = vld [vmem:[%s2097_s2 + $0xc0] sm:$0xff] }
  0x5c   :  { %1064 = vmatprep.mubr.msk.f32.mxu0 %vm75_vm0, %v70_v19  ;;  %1080 = vmatprep.mubr.msk.f32.mxu1 %vm75_vm0, %v296_v20  ;;  %v743_v18 = vld [vmem:[%s2098_s3 + $0xc0] sm:$0xff]  ;;  %v521_v19 = vld [vmem:[%s2097_s2 + $0xd8] sm:$0xff] }
  0x5d   :  { %v746_v20 = vld [vmem:[%s2098_s3 + $0xd8] sm:$0xff] }
  0x5f   :  { %254 = vmatmul.mubr.f32.gmra.mrb[26].mxu0 %v69_v21  ;;  %479 = vmatmul.mubr.f32.gmra.mrb[26].mxu1 %v295_v22  ;;  %v520_v21 = vld [vmem:[%s2097_s2 + $0xd0] sm:$0xff] }
  0x60   :  { %1065 = vmatprep.mubr.msk.f32.mxu0 %vm75_vm0, %v72_v23  ;;  %1081 = vmatprep.mubr.msk.f32.mxu1 %vm75_vm0, %v298_v24  ;;  %v745_v22 = vld [vmem:[%s2098_s3 + $0xd0] sm:$0xff]  ;;  %v523_v23 = vld [vmem:[%s2097_s2 + $0xe8] sm:$0xff] }
  0x61   :  { %v748_v24 = vld [vmem:[%s2098_s3 + $0xe8] sm:$0xff] }
  0x63   :  { %259 = vmatmul.mubr.f32.gmra.mrb[28].mxu0 %v71_v25  ;;  %484 = vmatmul.mubr.f32.gmra.mrb[28].mxu1 %v297_v26  ;;  %v522_v25 = vld [vmem:[%s2097_s2 + $0xe0] sm:$0xff] }
  0x64   :  { %1066 = vmatprep.mubr.msk.f32.mxu0 %vm75_vm0, %v74_v27  ;;  %1082 = vmatprep.mubr.msk.f32.mxu1 %vm75_vm0, %v300_v28  ;;  %v747_v26 = vld [vmem:[%s2098_s3 + $0xe0] sm:$0xff]  ;;  %v525_v27 = vld [vmem:[%s2097_s2 + $0xf8] sm:$0xff] }
  0x65   :  { %v750_v28 = vld [vmem:[%s2098_s3 + $0xf8] sm:$0xff] }
  0x67   :  { %264 = vmatmul.mubr.f32.gmra.mrb[30].mxu0 %v73_v29  ;;  %489 = vmatmul.mubr.f32.gmra.mrb[30].mxu1 %v299_v30  ;;  %v524_v29 = vld [vmem:[%s2097_s2 + $0xf0] sm:$0xff] }
  0x68   :  { %1083 = vmatprep.mubr.msk.f32.mxu0 %vm75_vm0, %v495_v31  ;;  %1099 = vmatprep.mubr.msk.f32.mxu1 %vm75_vm0, %v720_v32  ;;  %v749_v30 = vld [vmem:[%s2098_s3 + $0xf0] sm:$0xff] }
  0x6b   :  { %639 = vmatmul.mubr.f32.vlgmr.msra.gmra.mrb[32].mxu0 %v494_v33  ;;  %864 = vmatmul.mubr.f32.vlgmr.msra.gmra.mrb[32].mxu1 %v719_v34 }
  0x6c   :  { %1084 = vmatprep.mubr.msk.f32.mxu0 %vm75_vm0, %v497_v35  ;;  %1100 = vmatprep.mubr.msk.f32.mxu1 %vm75_vm0, %v722_v36 }
  0x6f   :  { %644 = vmatmul.mubr.f32.gmra.mrb[34].mxu0 %v496_v37  ;;  %869 = vmatmul.mubr.f32.gmra.mrb[34].mxu1 %v721_v38 }
  0x70   :  { %1085 = vmatprep.mubr.msk.f32.mxu0 %vm75_vm0, %v499_v39  ;;  %1101 = vmatprep.mubr.msk.f32.mxu1 %vm75_vm0, %v724_v40 }
  0x73   :  { %649 = vmatmul.mubr.f32.gmra.mrb[36].mxu0 %v498_v41  ;;  %874 = vmatmul.mubr.f32.gmra.mrb[36].mxu1 %v723_v42 }
  0x74   :  { %1086 = vmatprep.mubr.msk.f32.mxu0 %vm75_vm0, %v501_v43  ;;  %1102 = vmatprep.mubr.msk.f32.mxu1 %vm75_vm0, %v726_v44 }
  0x77   :  { %654 = vmatmul.mubr.f32.gmra.mrb[38].mxu0 %v500_v45  ;;  %879 = vmatmul.mubr.f32.gmra.mrb[38].mxu1 %v725_v46 }
  0x78   :  { %1087 = vmatprep.mubr.msk.f32.mxu0 %vm75_vm0, %v503_v47  ;;  %1103 = vmatprep.mubr.msk.f32.mxu1 %vm75_vm0, %v728_v48 }
  0x7b   :  { %659 = vmatmul.mubr.f32.gmra.mrb[40].mxu0 %v502_v49  ;;  %884 = vmatmul.mubr.f32.gmra.mrb[40].mxu1 %v727_v50 }
  0x7c   :  { %1088 = vmatprep.mubr.msk.f32.mxu0 %vm75_vm0, %v505_v51  ;;  %1104 = vmatprep.mubr.msk.f32.mxu1 %vm75_vm0, %v730_v52 }
  0x7f   :  { %664 = vmatmul.mubr.f32.gmra.mrb[42].mxu0 %v504_v53  ;;  %889 = vmatmul.mubr.f32.gmra.mrb[42].mxu1 %v729_v54 }
  0x80   :  { %1089 = vmatprep.mubr.msk.f32.mxu0 %vm75_vm0, %v507_v55  ;;  %1105 = vmatprep.mubr.msk.f32.mxu1 %vm75_vm0, %v732_v56 }
  0x83   :  { %669 = vmatmul.mubr.f32.gmra.mrb[44].mxu0 %v506_v57  ;;  %894 = vmatmul.mubr.f32.gmra.mrb[44].mxu1 %v731_v58 }
  0x84   :  { %1090 = vmatprep.mubr.msk.f32.mxu0 %vm75_vm0, %v509_v59  ;;  %1106 = vmatprep.mubr.msk.f32.mxu1 %vm75_vm0, %v734_v60 }
  0x87   :  { %674 = vmatmul.mubr.f32.gmra.mrb[46].mxu0 %v508_v61  ;;  %899 = vmatmul.mubr.f32.gmra.mrb[46].mxu1 %v733_v62 }
  0x88   :  { %1091 = vmatprep.mubr.msk.f32.mxu0 %vm75_vm0, %v511_v63  ;;  %1107 = vmatprep.mubr.msk.f32.mxu1 %vm75_vm0, %v736_v1 }
  0x8b   :  { %679 = vmatmul.mubr.f32.gmra.mrb[48].mxu0 %v510_v2  ;;  %904 = vmatmul.mubr.f32.gmra.mrb[48].mxu1 %v735_v3 }
  0x8c   :  { %1092 = vmatprep.mubr.msk.f32.mxu0 %vm75_vm0, %v513_v4  ;;  %1108 = vmatprep.mubr.msk.f32.mxu1 %vm75_vm0, %v738_v5 }
  0x8f   :  { %684 = vmatmul.mubr.f32.gmra.mrb[50].mxu0 %v512_v6  ;;  %909 = vmatmul.mubr.f32.gmra.mrb[50].mxu1 %v737_v7 }
  0x90   :  { %1093 = vmatprep.mubr.msk.f32.mxu0 %vm75_vm0, %v515_v8  ;;  %1109 = vmatprep.mubr.msk.f32.mxu1 %vm75_vm0, %v740_v9 }
  0x93   :  { %689 = vmatmul.mubr.f32.gmra.mrb[52].mxu0 %v514_v10  ;;  %914 = vmatmul.mubr.f32.gmra.mrb[52].mxu1 %v739_v11 }
  0x94   :  { %1094 = vmatprep.mubr.msk.f32.mxu0 %vm75_vm0, %v517_v12  ;;  %1110 = vmatprep.mubr.msk.f32.mxu1 %vm75_vm0, %v742_v0 }
  0x97   :  { %694 = vmatmul.mubr.f32.gmra.mrb[54].mxu0 %v516_v13  ;;  %919 = vmatmul.mubr.f32.gmra.mrb[54].mxu1 %v741_v14 }
  0x98   :  { %1095 = vmatprep.mubr.msk.f32.mxu0 %vm75_vm0, %v519_v15  ;;  %1111 = vmatprep.mubr.msk.f32.mxu1 %vm75_vm0, %v744_v16 }
  0x9b   :  { %699 = vmatmul.mubr.f32.gmra.mrb[56].mxu0 %v518_v17  ;;  %924 = vmatmul.mubr.f32.gmra.mrb[56].mxu1 %v743_v18 }
  0x9c   :  { %1096 = vmatprep.mubr.msk.f32.mxu0 %vm75_vm0, %v521_v19  ;;  %1112 = vmatprep.mubr.msk.f32.mxu1 %vm75_vm0, %v746_v20 }
  0x9f   :  { %704 = vmatmul.mubr.f32.gmra.mrb[58].mxu0 %v520_v21  ;;  %929 = vmatmul.mubr.f32.gmra.mrb[58].mxu1 %v745_v22 }
  0xa0   :  { %1097 = vmatprep.mubr.msk.f32.mxu0 %vm75_vm0, %v523_v23  ;;  %1113 = vmatprep.mubr.msk.f32.mxu1 %vm75_vm0, %v748_v24 }
  0xa3   :  { %709 = vmatmul.mubr.f32.gmra.mrb[60].mxu0 %v522_v25  ;;  %934 = vmatmul.mubr.f32.gmra.mrb[60].mxu1 %v747_v26 }
  0xa4   :  { %1098 = vmatprep.mubr.msk.f32.mxu0 %vm75_vm0, %v525_v27  ;;  %1114 = vmatprep.mubr.msk.f32.mxu1 %vm75_vm0, %v750_v28 }
  0xa7   :  { %714 = vmatmul.mubr.f32.gmra.mrb[62].mxu0 %v524_v29  ;;  %939 = vmatmul.mubr.f32.gmra.mrb[62].mxu1 %v749_v30 }
  0xfe   :  { %v1881_v31 = vpop.f32.mrb[0].mxu0  ;;  %v1883_v32 = vpop.f32.mrb[0].mxu1 }
  0xff   :  { %v944_v33 = vmax.f32 %v1881_v31, %v1883_v32  ;;  %v192_v34 = vpop.f32.mrb[1].mxu0  ;;  %v417_v35 = vpop.f32.mrb[1].mxu1 }
 0x102   :  { %v1887_v36 = vpop.f32.mrb[2].mxu0  ;;  %v1889_v37 = vpop.f32.mrb[2].mxu1 }
 0x103   :  { %v945_v38 = vmax.f32 %v1887_v36, %v1889_v37  ;;  %v197_v39 = vpop.f32.mrb[3].mxu0  ;;  %v422_v40 = vpop.f32.mrb[3].mxu1 }
 0x106   :  { %v1893_v41 = vpop.f32.mrb[4].mxu0  ;;  %v1895_v42 = vpop.f32.mrb[4].mxu1 }
 0x107   :  { %v946_v43 = vmax.f32 %v1893_v41, %v1895_v42  ;;  %v202_v44 = vpop.f32.mrb[5].mxu0  ;;  %v427_v45 = vpop.f32.mrb[5].mxu1 }
 0x10a   :  { %v1899_v46 = vpop.f32.mrb[6].mxu0  ;;  %v1901_v47 = vpop.f32.mrb[6].mxu1 }
 0x10b   :  { %v947_v48 = vmax.f32 %v1899_v46, %v1901_v47  ;;  %v207_v49 = vpop.f32.mrb[7].mxu0  ;;  %v432_v50 = vpop.f32.mrb[7].mxu1 }
 0x10e   :  { %v1905_v51 = vpop.f32.mrb[8].mxu0  ;;  %v1907_v52 = vpop.f32.mrb[8].mxu1 }
 0x10f   :  { %v948_v53 = vmax.f32 %v1905_v51, %v1907_v52  ;;  %v212_v54 = vpop.f32.mrb[9].mxu0  ;;  %v437_v55 = vpop.f32.mrb[9].mxu1 }
 0x112   :  { %v1911_v56 = vpop.f32.mrb[10].mxu0  ;;  %v1913_v57 = vpop.f32.mrb[10].mxu1 }
 0x113   :  { %v949_v58 = vmax.f32 %v1911_v56, %v1913_v57  ;;  %v217_v59 = vpop.f32.mrb[11].mxu0  ;;  %v442_v60 = vpop.f32.mrb[11].mxu1 }
 0x116   :  { %v1917_v61 = vpop.f32.mrb[12].mxu0  ;;  %v1919_v62 = vpop.f32.mrb[12].mxu1 }
 0x117   :  { %v950_v63 = vmax.f32 %v1917_v61, %v1919_v62  ;;  %v222_v1 = vpop.f32.mrb[13].mxu0  ;;  %v447_v2 = vpop.f32.mrb[13].mxu1 }
 0x11a   :  { %v1923_v3 = vpop.f32.mrb[14].mxu0  ;;  %v1925_v4 = vpop.f32.mrb[14].mxu1 }
 0x11b   :  { %v951_v5 = vmax.f32 %v1923_v3, %v1925_v4  ;;  %v227_v6 = vpop.f32.mrb[15].mxu0  ;;  %v452_v7 = vpop.f32.mrb[15].mxu1 }
 0x11e   :  { %v1929_v8 = vpop.f32.mrb[16].mxu0  ;;  %v1931_v9 = vpop.f32.mrb[16].mxu1 }
 0x11f   :  { %v952_v10 = vmax.f32 %v1929_v8, %v1931_v9  ;;  %v232_v11 = vpop.f32.mrb[17].mxu0  ;;  %v457_v12 = vpop.f32.mrb[17].mxu1 }
 0x122   :  { %v1935_v0 = vpop.f32.mrb[18].mxu0  ;;  %v1937_v13 = vpop.f32.mrb[18].mxu1 }
 0x123   :  { %v953_v14 = vmax.f32 %v1935_v0, %v1937_v13  ;;  %v237_v15 = vpop.f32.mrb[19].mxu0  ;;  %v462_v16 = vpop.f32.mrb[19].mxu1 }
 0x126   :  { %v1941_v17 = vpop.f32.mrb[20].mxu0  ;;  %v1943_v18 = vpop.f32.mrb[20].mxu1 }
 0x127   :  { %v954_v19 = vmax.f32 %v1941_v17, %v1943_v18  ;;  %v242_v20 = vpop.f32.mrb[21].mxu0  ;;  %v467_v21 = vpop.f32.mrb[21].mxu1 }
 0x128   :  { %v1980_v21 = vld [vmem:[%s2099_s5] ss:$0 sm:$0xff] }
 0x12a   :  { %v1947_v22 = vpop.f32.mrb[22].mxu0  ;;  %v1949_v23 = vpop.f32.mrb[22].mxu1 }
 0x12b   :  { %v955_v24 = vmax.f32 %v1947_v22, %v1949_v23  ;;  %v247_v25 = vpop.f32.mrb[23].mxu0  ;;  %v472_v26 = vpop.f32.mrb[23].mxu1 }
 0x12e   :  { %v1953_v27 = vpop.f32.mrb[24].mxu0  ;;  %v1955_v28 = vpop.f32.mrb[24].mxu1 }
 0x12f   :  { %v956_v29 = vmax.f32 %v1953_v27, %v1955_v28  ;;  %v252_v30 = vpop.f32.mrb[25].mxu0  ;;  %v477_v34 = vpop.f32.mrb[25].mxu1 }
 0x132   :  { %v1959_v35 = vpop.f32.mrb[26].mxu0  ;;  %v1961_v39 = vpop.f32.mrb[26].mxu1 }
 0x133   :  { %v957_v40 = vmax.f32 %v1959_v35, %v1961_v39  ;;  %v257_v44 = vpop.f32.mrb[27].mxu0  ;;  %v482_v45 = vpop.f32.mrb[27].mxu1 }
 0x136   :  { %v1965_v49 = vpop.f32.mrb[28].mxu0  ;;  %v1967_v50 = vpop.f32.mrb[28].mxu1 }
 0x137   :  { %v958_v54 = vmax.f32 %v1965_v49, %v1967_v50  ;;  %v262_v55 = vpop.f32.mrb[29].mxu0  ;;  %v487_v59 = vpop.f32.mrb[29].mxu1 }
 0x13a   :  { %v1971_v60 = vpop.f32.mrb[30].mxu0  ;;  %v1973_v1 = vpop.f32.mrb[30].mxu1 }
 0x13b   :  { %v959_v2 = vmax.f32 %v1971_v60, %v1973_v1  ;;  %v267_v6 = vpop.f32.mrb[31].mxu0  ;;  %v492_v7 = vpop.f32.mrb[31].mxu1 }
 0x13e   :  { %v640_v11 = vpop.f32.mrb[32].mxu0  ;;  %v865_v12 = vpop.f32.mrb[32].mxu1 }
 0x13f   :  { %v960_v15 = vmax.f32 %v640_v11, %v865_v12  ;;  %v642_v16 = vpop.f32.mrb[33].mxu0  ;;  %v867_v20 = vpop.f32.mrb[33].mxu1 }
 0x141   :  { %v976_v25 = vmax.f32 %v944_v33, %v960_v15 }
 0x142   :  { %v645_v26 = vpop.f32.mrb[34].mxu0  ;;  %v870_v30 = vpop.f32.mrb[34].mxu1 }
 0x143   :  { %v999_v34 = vadd.f32 %v1980_v21, %v976_v25  ;;  %v961_v44 = vmax.f32 %v645_v26, %v870_v30  ;;  %v647_v45 = vpop.f32.mrb[35].mxu0  ;;  %v872_v55 = vpop.f32.mrb[35].mxu1 }
 0x145   :  { %v1015_v59 = vmax.f32 %v999_v34, 0.0  ;;  %v977_v6 = vmax.f32 %v945_v38, %v961_v44 }
 0x146   :  { %v650_v7 = vpop.f32.mrb[36].mxu0  ;;  %v875_v11 = vpop.f32.mrb[36].mxu1 }
 0x147   :  { %1031 = vst [vmem:[%s2100_s6] sm:$0xff] %v1015_v59  ;;  %v1000_v31 = vadd.f32 %v1980_v21, %v977_v6  ;;  %v962_v32 = vmax.f32 %v650_v7, %v875_v11  ;;  %v652_v33 = vpop.f32.mrb[37].mxu0  ;;  %v877_v12 = vpop.f32.mrb[37].mxu1 }
 0x149   :  { %v1016_v15 = vmax.f32 %v1000_v31, 0.0  ;;  %v978_v16 = vmax.f32 %v946_v43, %v962_v32 }
 0x14a   :  { %v655_v20 = vpop.f32.mrb[38].mxu0  ;;  %v880_v25 = vpop.f32.mrb[38].mxu1 }
 0x14b   :  { %1032 = vst [vmem:[%s2100_s6 + $0x8] sm:$0xff] %v1016_v15  ;;  %v1001_v36 = vadd.f32 %v1980_v21, %v978_v16  ;;  %v963_v37 = vmax.f32 %v655_v20, %v880_v25  ;;  %v657_v38 = vpop.f32.mrb[39].mxu0  ;;  %v882_v26 = vpop.f32.mrb[39].mxu1 }
 0x14d   :  { %v1017_v30 = vmax.f32 %v1001_v36, 0.0  ;;  %v979_v34 = vmax.f32 %v947_v48, %v963_v37 }
 0x14e   :  { %v660_v44 = vpop.f32.mrb[40].mxu0  ;;  %v885_v45 = vpop.f32.mrb[40].mxu1 }
 0x14f   :  { %1033 = vst [vmem:[%s2100_s6 + $0x10] sm:$0xff] %v1017_v30  ;;  %v1002_v41 = vadd.f32 %v1980_v21, %v979_v34  ;;  %v964_v42 = vmax.f32 %v660_v44, %v885_v45  ;;  %v662_v43 = vpop.f32.mrb[41].mxu0  ;;  %v887_v55 = vpop.f32.mrb[41].mxu1 }
 0x151   :  { %v1018_v59 = vmax.f32 %v1002_v41, 0.0  ;;  %v980_v6 = vmax.f32 %v948_v53, %v964_v42 }
 0x152   :  { %v665_v7 = vpop.f32.mrb[42].mxu0  ;;  %v890_v11 = vpop.f32.mrb[42].mxu1 }
 0x153   :  { %1034 = vst [vmem:[%s2100_s6 + $0x18] sm:$0xff] %v1018_v59  ;;  %v1003_v46 = vadd.f32 %v1980_v21, %v980_v6  ;;  %v965_v47 = vmax.f32 %v665_v7, %v890_v11  ;;  %v667_v48 = vpop.f32.mrb[43].mxu0  ;;  %v892_v31 = vpop.f32.mrb[43].mxu1 }
 0x155   :  { %v1019_v32 = vmax.f32 %v1003_v46, 0.0  ;;  %v981_v33 = vmax.f32 %v949_v58, %v965_v47 }
 0x156   :  { %v670_v12 = vpop.f32.mrb[44].mxu0  ;;  %v895_v15 = vpop.f32.mrb[44].mxu1 }
 0x157   :  { %1035 = vst [vmem:[%s2100_s6 + $0x20] sm:$0xff] %v1019_v32  ;;  %v1004_v51 = vadd.f32 %v1980_v21, %v981_v33  ;;  %v966_v52 = vmax.f32 %v670_v12, %v895_v15  ;;  %v672_v53 = vpop.f32.mrb[45].mxu0  ;;  %v897_v16 = vpop.f32.mrb[45].mxu1 }
 0x159   :  { %v1020_v20 = vmax.f32 %v1004_v51, 0.0  ;;  %v982_v25 = vmax.f32 %v950_v63, %v966_v52 }
 0x15a   :  { %v675_v36 = vpop.f32.mrb[46].mxu0  ;;  %v900_v37 = vpop.f32.mrb[46].mxu1 }
 0x15b   :  { %1036 = vst [vmem:[%s2100_s6 + $0x28] sm:$0xff] %v1020_v20  ;;  %v1005_v56 = vadd.f32 %v1980_v21, %v982_v25  ;;  %v967_v57 = vmax.f32 %v675_v36, %v900_v37  ;;  %v677_v58 = vpop.f32.mrb[47].mxu0  ;;  %v902_v38 = vpop.f32.mrb[47].mxu1 }
 0x15d   :  { %v1021_v26 = vmax.f32 %v1005_v56, 0.0  ;;  %v983_v30 = vmax.f32 %v951_v5, %v967_v57 }
 0x15e   :  { %v680_v34 = vpop.f32.mrb[48].mxu0  ;;  %v905_v44 = vpop.f32.mrb[48].mxu1 }
 0x15f   :  { %1037 = vst [vmem:[%s2100_s6 + $0x30] sm:$0xff] %v1021_v26  ;;  %v1006_v61 = vadd.f32 %v1980_v21, %v983_v30  ;;  %v968_v62 = vmax.f32 %v680_v34, %v905_v44  ;;  %v682_v63 = vpop.f32.mrb[49].mxu0  ;;  %v907_v45 = vpop.f32.mrb[49].mxu1 }
 0x161   :  { %v1022_v41 = vmax.f32 %v1006_v61, 0.0  ;;  %v984_v42 = vmax.f32 %v952_v10, %v968_v62 }
 0x162   :  { %v685_v43 = vpop.f32.mrb[50].mxu0  ;;  %v910_v55 = vpop.f32.mrb[50].mxu1 }
 0x163   :  { %1038 = vst [vmem:[%s2100_s6 + $0x38] sm:$0xff] %v1022_v41  ;;  %v1007_v3 = vadd.f32 %v1980_v21, %v984_v42  ;;  %v969_v4 = vmax.f32 %v685_v43, %v910_v55  ;;  %v687_v5 = vpop.f32.mrb[51].mxu0  ;;  %v912_v59 = vpop.f32.mrb[51].mxu1 }
 0x165   :  { %v1023_v6 = vmax.f32 %v1007_v3, 0.0  ;;  %v985_v7 = vmax.f32 %v953_v14, %v969_v4 }
 0x166   :  { %v690_v11 = vpop.f32.mrb[52].mxu0  ;;  %v915_v46 = vpop.f32.mrb[52].mxu1 }
 0x167   :  { %1039 = vst [vmem:[%s2100_s6 + $0x40] sm:$0xff] %v1023_v6  ;;  %v1008_v8 = vadd.f32 %v1980_v21, %v985_v7  ;;  %v970_v9 = vmax.f32 %v690_v11, %v915_v46  ;;  %v692_v10 = vpop.f32.mrb[53].mxu0  ;;  %v917_v47 = vpop.f32.mrb[53].mxu1 }
 0x169   :  { %v1024_v48 = vmax.f32 %v1008_v8, 0.0  ;;  %v986_v31 = vmax.f32 %v954_v19, %v970_v9 }
 0x16a   :  { %v695_v32 = vpop.f32.mrb[54].mxu0  ;;  %v920_v33 = vpop.f32.mrb[54].mxu1 }
 0x16b   :  { %1040 = vst [vmem:[%s2100_s6 + $0x48] sm:$0xff] %v1024_v48  ;;  %v1009_v0 = vadd.f32 %v1980_v21, %v986_v31  ;;  %v971_v13 = vmax.f32 %v695_v32, %v920_v33  ;;  %v697_v14 = vpop.f32.mrb[55].mxu0  ;;  %v922_v12 = vpop.f32.mrb[55].mxu1 }
 0x16d   :  { %v1025_v15 = vmax.f32 %v1009_v0, 0.0  ;;  %v987_v51 = vmax.f32 %v955_v24, %v971_v13 }
 0x16e   :  { %v700_v52 = vpop.f32.mrb[56].mxu0  ;;  %v925_v53 = vpop.f32.mrb[56].mxu1 }
 0x16f   :  { %1041 = vst [vmem:[%s2100_s6 + $0x50] sm:$0xff] %v1025_v15  ;;  %v1010_v17 = vadd.f32 %v1980_v21, %v987_v51  ;;  %v972_v18 = vmax.f32 %v700_v52, %v925_v53  ;;  %v702_v19 = vpop.f32.mrb[57].mxu0  ;;  %v927_v16 = vpop.f32.mrb[57].mxu1 }
 0x171   :  { %v1026_v20 = vmax.f32 %v1010_v17, 0.0  ;;  %v988_v25 = vmax.f32 %v956_v29, %v972_v18 }
 0x172   :  { %v705_v36 = vpop.f32.mrb[58].mxu0  ;;  %v930_v37 = vpop.f32.mrb[58].mxu1 }
 0x173   :  { %1042 = vst [vmem:[%s2100_s6 + $0x58] sm:$0xff] %v1026_v20  ;;  %v1011_v22 = vadd.f32 %v1980_v21, %v988_v25  ;;  %v973_v23 = vmax.f32 %v705_v36, %v930_v37  ;;  %v707_v24 = vpop.f32.mrb[59].mxu0  ;;  %v932_v56 = vpop.f32.mrb[59].mxu1 }
 0x175   :  { %v1027_v57 = vmax.f32 %v1011_v22, 0.0  ;;  %v989_v58 = vmax.f32 %v957_v40, %v973_v23 }
 0x176   :  { %v710_v38 = vpop.f32.mrb[60].mxu0  ;;  %v935_v26 = vpop.f32.mrb[60].mxu1 }
 0x177   :  { %1043 = vst [vmem:[%s2100_s6 + $0x60] sm:$0xff] %v1027_v57  ;;  %v1012_v27 = vadd.f32 %v1980_v21, %v989_v58  ;;  %v974_v28 = vmax.f32 %v710_v38, %v935_v26  ;;  %v712_v29 = vpop.f32.mrb[61].mxu0  ;;  %v937_v30 = vpop.f32.mrb[61].mxu1 }
 0x179   :  { %v1028_v34 = vmax.f32 %v1012_v27, 0.0  ;;  %v990_v44 = vmax.f32 %v958_v54, %v974_v28 }
 0x17a   :  { %v715_v61 = vpop.f32.mrb[62].mxu0  ;;  %v940_v62 = vpop.f32.mrb[62].mxu1 }
 0x17b   :  { %1044 = vst [vmem:[%s2100_s6 + $0x68] sm:$0xff] %v1028_v34  ;;  %v1013_v35 = vadd.f32 %v1980_v21, %v990_v44  ;;  %v975_v39 = vmax.f32 %v715_v61, %v940_v62  ;;  %v717_v40 = vpop.f32.mrb[63].mxu0  ;;  %v942_v63 = vpop.f32.mrb[63].mxu1 }
 0x17d   :  { %v1029_v45 = vmax.f32 %v1013_v35, 0.0  ;;  %v991_v41 = vmax.f32 %v959_v2, %v975_v39 }
 0x17f   :  { %1045 = vst [vmem:[%s2100_s6 + $0x70] sm:$0xff] %v1029_v45  ;;  %v1014_v49 = vadd.f32 %v1980_v21, %v991_v41 }
 0x181   :  { %v1030_v50 = vmax.f32 %v1014_v49, 0.0 }
 0x183   :  { %1046 = vst [vmem:[%s2100_s6 + $0x78] sm:$0xff] %v1030_v50 }

// kernel: net_forward.5
= control target key start
LH: loop header
LB: loop body
LE: loop exit
PB: predicated region body
PF: predicated region fallthrough
CT: control target
= control target key end

     0   :  { %s2781_s0 = inlined_call_operand.vmem [shape: f32[8,2048], index: 0, kind: input, shape index: {}]   ;;  %s2782_s1 = inlined_call_operand.vmem [shape: f32[2048,128], index: 1, kind: input, shape index: {}]   ;;  %s2783_s2 = inlined_call_operand.vmem [shape: f32[1,128], index: 2, kind: input, shape index: {}]   ;;  %s2784_s3 = inlined_call_operand.vmem [shape: f32[128,128], index: 3, kind: input, shape index: {}]   ;;  %s2785_s4 = inlined_call_operand.vmem [shape: f32[1,128], index: 4, kind: input, shape index: {}]   ;;  %s2786_s5 = inlined_call_operand.vmem [shape: f32[128,128], index: 5, kind: input, shape index: {}]   ;;  %s2787_s6 = inlined_call_operand.vmem [shape: f32[1,128], index: 6, kind: input, shape index: {}]   ;;  %s2788_s7 = inlined_call_operand.hbm [shape: f32[8,128], index: 7, kind: output, shape index: {}]  }
   0x1   :  { %v59_v0 = vld [vmem:[%s2782_s1 + $0x80] sm:$0xff]  ;;  %v60_v1 = vld [vmem:[%s2782_s1 + $0x88] sm:$0xff]  ;;  %v61_v11 = vld [vmem:[%s2782_s1 + $0x90] sm:$0xff] }
   0x2   :  { %v43_v2 = vld [vmem:[%s2782_s1] sm:$0xff]  ;;  %v1456_v3 = vpack.c.bf16 %v60_v1, %v59_v0  ;;  %v44_v4 = vld [vmem:[%s2782_s1 + $0x8] sm:$0xff]  ;;  %v62_v13 = vld [vmem:[%s2782_s1 + $0x98] sm:$0xff] }
   0x3   :  { %v91_v5 = vld [vmem:[%s2782_s1 + $0x180] sm:$0xff]  ;;  %v92_v6 = vld [vmem:[%s2782_s1 + $0x188] sm:$0xff]  ;;  %v1458_v7 = vpack.c.bf16 %v44_v4, %v43_v2  ;;  %v45_v14 = vld [vmem:[%s2782_s1 + $0x10] sm:$0xff]  ;;  %v1460_v16 = vpack.c.bf16 %v62_v13, %v61_v11 }
   0x4   :  { %v1488_v8 = vpack.c.bf16 %v92_v6, %v91_v5  ;;  %v75_v9 = vld [vmem:[%s2782_s1 + $0x100] sm:$0xff]  ;;  %v76_v10 = vld [vmem:[%s2782_s1 + $0x108] sm:$0xff]  ;;  %1457 = vmatprep.subr.bf16.mxu0 %v1456_v3  ;;  %v46_v15 = vld [vmem:[%s2782_s1 + $0x18] sm:$0xff] }
   0x5   :  { %v1490_v12 = vpack.c.bf16 %v76_v10, %v75_v9  ;;  %1459 = vmatpush3.bf16.msra.mxu0 %v1458_v7  ;;  %v1462_v17 = vpack.c.bf16 %v46_v15, %v45_v14  ;;  %v93_v18 = vld [vmem:[%s2782_s1 + $0x190] sm:$0xff]  ;;  %v94_v19 = vld [vmem:[%s2782_s1 + $0x198] sm:$0xff]  ;;  %v63_v23 = vld [vmem:[%s2782_s1 + $0xa0] sm:$0xff] }
   0x6   :  { %1489 = vmatprep.subr.bf16.mxu1 %v1488_v8  ;;  %v77_v20 = vld [vmem:[%s2782_s1 + $0x110] sm:$0xff]  ;;  %v1492_v21 = vpack.c.bf16 %v94_v19, %v93_v18  ;;  %v78_v22 = vld [vmem:[%s2782_s1 + $0x118] sm:$0xff]  ;;  %v64_v24 = vld [vmem:[%s2782_s1 + $0xa8] sm:$0xff]  ;;  %1461 = vmatprep.subr.bf16.mxu0 %v1460_v16 }
   0x7   :  { %1491 = vmatpush3.bf16.msra.mxu1 %v1490_v12  ;;  %v1494_v25 = vpack.c.bf16 %v78_v22, %v77_v20  ;;  %v1464_v26 = vpack.c.bf16 %v64_v24, %v63_v23  ;;  %v47_v27 = vld [vmem:[%s2782_s1 + $0x20] sm:$0xff]  ;;  %v48_v28 = vld [vmem:[%s2782_s1 + $0x28] sm:$0xff]  ;;  %v65_v35 = vld [vmem:[%s2782_s1 + $0xb0] sm:$0xff] }
   0x8   :  { %v95_v29 = vld [vmem:[%s2782_s1 + $0x1a0] sm:$0xff]  ;;  %1493 = vmatprep.subr.bf16.mxu1 %v1492_v21  ;;  %v96_v30 = vld [vmem:[%s2782_s1 + $0x1a8] sm:$0xff]  ;;  %v1466_v33 = vpack.c.bf16 %v48_v28, %v47_v27  ;;  %v66_v36 = vld [vmem:[%s2782_s1 + $0xb8] sm:$0xff] }
   0x9   :  { %v79_v31 = vld [vmem:[%s2782_s1 + $0x120] sm:$0xff]  ;;  %v80_v32 = vld [vmem:[%s2782_s1 + $0x128] sm:$0xff]  ;;  %1463 = vmatpush3.bf16.msra.mxu0 %v1462_v17  ;;  %v1496_v34 = vpack.c.bf16 %v96_v30, %v95_v29  ;;  %v49_v37 = vld [vmem:[%s2782_s1 + $0x30] sm:$0xff]  ;;  %v1468_v39 = vpack.c.bf16 %v66_v36, %v65_v35 }
   0xa   :  { %1465 = vmatprep.subr.bf16.mxu0 %v1464_v26  ;;  %v1498_v38 = vpack.c.bf16 %v80_v32, %v79_v31  ;;  %v50_v40 = vld [vmem:[%s2782_s1 + $0x38] sm:$0xff]  ;;  %v97_v41 = vld [vmem:[%s2782_s1 + $0x1b0] sm:$0xff]  ;;  %v67_v46 = vld [vmem:[%s2782_s1 + $0xc0] sm:$0xff] }
   0xb   :  { %1495 = vmatpush3.bf16.msra.mxu1 %v1494_v25  ;;  %v98_v42 = vld [vmem:[%s2782_s1 + $0x1b8] sm:$0xff]  ;;  %v81_v44 = vld [vmem:[%s2782_s1 + $0x130] sm:$0xff]  ;;  %v68_v47 = vld [vmem:[%s2782_s1 + $0xc8] sm:$0xff]  ;;  %v1470_v48 = vpack.c.bf16 %v50_v40, %v49_v37 }
   0xc   :  { %1497 = vmatprep.subr.bf16.mxu1 %v1496_v34  ;;  %v1500_v43 = vpack.c.bf16 %v98_v42, %v97_v41  ;;  %v82_v45 = vld [vmem:[%s2782_s1 + $0x138] sm:$0xff]  ;;  %v99_v49 = vld [vmem:[%s2782_s1 + $0x1c0] sm:$0xff]  ;;  %v100_v50 = vld [vmem:[%s2782_s1 + $0x1c8] sm:$0xff]  ;;  %v1472_v52 = vpack.c.bf16 %v68_v47, %v67_v46 }
   0xd   :  { %1467 = vmatpush3.bf16.msra.mxu0 %v1466_v33  ;;  %v1502_v51 = vpack.c.bf16 %v82_v45, %v81_v44  ;;  %v51_v53 = vld [vmem:[%s2782_s1 + $0x40] sm:$0xff]  ;;  %v52_v54 = vld [vmem:[%s2782_s1 + $0x48] sm:$0xff]  ;;  %v1504_v56 = vpack.c.bf16 %v100_v50, %v99_v49  ;;  %v69_v58 = vld [vmem:[%s2782_s1 + $0xd0] sm:$0xff] }
   0xe   :  { %1469 = vmatprep.subr.bf16.mxu0 %v1468_v39  ;;  %v83_v55 = vld [vmem:[%s2782_s1 + $0x140] sm:$0xff]  ;;  %v84_v57 = vld [vmem:[%s2782_s1 + $0x148] sm:$0xff]  ;;  %v70_v59 = vld [vmem:[%s2782_s1 + $0xd8] sm:$0xff]  ;;  %v1474_v62 = vpack.c.bf16 %v52_v54, %v51_v53 }
   0xf   :  { %1499 = vmatpush3.bf16.msra.mxu1 %v1498_v38  ;;  %v101_v60 = vld [vmem:[%s2782_s1 + $0x1d0] sm:$0xff]  ;;  %v102_v61 = vld [vmem:[%s2782_s1 + $0x1d8] sm:$0xff]  ;;  %v1506_v63 = vpack.c.bf16 %v84_v57, %v83_v55  ;;  %v1476_v0 = vpack.c.bf16 %v70_v59, %v69_v58  ;;  %v71_v6 = vld [vmem:[%s2782_s1 + $0xe0] sm:$0xff] }
  0x10   :  { %1501 = vmatprep.subr.bf16.mxu1 %v1500_v43  ;;  %v53_v1 = vld [vmem:[%s2782_s1 + $0x50] sm:$0xff]  ;;  %v54_v2 = vld [vmem:[%s2782_s1 + $0x58] sm:$0xff]  ;;  %v1508_v4 = vpack.c.bf16 %v102_v61, %v101_v60  ;;  %v72_v7 = vld [vmem:[%s2782_s1 + $0xe8] sm:$0xff] }
  0x11   :  { %1471 = vmatpush3.bf16.msra.mxu0 %v1470_v48  ;;  %v85_v3 = vld [vmem:[%s2782_s1 + $0x150] sm:$0xff]  ;;  %v86_v5 = vld [vmem:[%s2782_s1 + $0x158] sm:$0xff]  ;;  %v103_v8 = vld [vmem:[%s2782_s1 + $0x1e0] sm:$0xff]  ;;  %v1478_v10 = vpack.c.bf16 %v54_v2, %v53_v1  ;;  %v1480_v14 = vpack.c.bf16 %v72_v7, %v71_v6 }
  0x12   :  { %1473 = vmatprep.subr.bf16.mxu0 %v1472_v52  ;;  %v104_v9 = vld [vmem:[%s2782_s1 + $0x1e8] sm:$0xff]  ;;  %v55_v11 = vld [vmem:[%s2782_s1 + $0x60] sm:$0xff]  ;;  %v1510_v13 = vpack.c.bf16 %v86_v5, %v85_v3  ;;  %v73_v19 = vld [vmem:[%s2782_s1 + $0xf0] sm:$0xff] }
  0x13   :  { %1503 = vmatpush3.bf16.msra.mxu1 %v1502_v51  ;;  %v56_v12 = vld [vmem:[%s2782_s1 + $0x68] sm:$0xff]  ;;  %v87_v15 = vld [vmem:[%s2782_s1 + $0x160] sm:$0xff]  ;;  %v1512_v18 = vpack.c.bf16 %v104_v9, %v103_v8  ;;  %v74_v20 = vld [vmem:[%s2782_s1 + $0xf8] sm:$0xff] }
  0x14   :  { %1505 = vmatprep.subr.bf16.mxu1 %v1504_v56  ;;  %v88_v16 = vld [vmem:[%s2782_s1 + $0x168] sm:$0xff]  ;;  %v30_v21 = vld [vmem:[%s2781_s0 + $0x18] sm:$0xff]  ;;  %v105_v22 = vld [vmem:[%s2782_s1 + $0x1f0] sm:$0xff]  ;;  %v1482_v24 = vpack.c.bf16 %v56_v12, %v55_v11  ;;  %v1484_v26 = vpack.c.bf16 %v74_v20, %v73_v19 }
  0x15   :  { %1475 = vmatpush3.bf16.msra.mxu0 %v1474_v62  ;;  %v28_v17 = vld [vmem:[%s2781_s0 + $0x8] sm:$0xff]  ;;  %v106_v23 = vld [vmem:[%s2782_s1 + $0x1f8] sm:$0xff]  ;;  %440 = vmatprep.mubr.f32.mxu1 %v30_v21  ;;  %v1514_v25 = vpack.c.bf16 %v88_v16, %v87_v15  ;;  %v57_v27 = vld [vmem:[%s2782_s1 + $0x70] sm:$0xff] }
  0x16   :  { %1477 = vmatprep.subr.bf16.mxu0 %v1476_v0  ;;  %370 = vmatprep.mubr.f32.mxu0 %v28_v17  ;;  %v58_v28 = vld [vmem:[%s2782_s1 + $0x78] sm:$0xff]  ;;  %v89_v29 = vld [vmem:[%s2782_s1 + $0x170] sm:$0xff]  ;;  %v1516_v30 = vpack.c.bf16 %v106_v23, %v105_v22  ;;  %v123_v32 = vld [vmem:[%s2782_s1 + $0x280] sm:$0xff] }
  0x17   :  { %1507 = vmatpush3.bf16.msra.mxu1 %v1506_v63  ;;  %v90_v31 = vld [vmem:[%s2782_s1 + $0x178] sm:$0xff]  ;;  %v124_v33 = vld [vmem:[%s2782_s1 + $0x288] sm:$0xff]  ;;  %v155_v34 = vld [vmem:[%s2782_s1 + $0x380] sm:$0xff]  ;;  %v1486_v36 = vpack.c.bf16 %v58_v28, %v57_v27 }
  0x18   :  { %1509 = vmatprep.subr.bf16.mxu1 %v1508_v4  ;;  %v156_v35 = vld [vmem:[%s2782_s1 + $0x388] sm:$0xff]  ;;  %v1518_v37 = vpack.c.bf16 %v90_v31, %v89_v29  ;;  %v1520_v38 = vpack.c.bf16 %v124_v33, %v123_v32  ;;  %v107_v39 = vld [vmem:[%s2782_s1 + $0x200] sm:$0xff]  ;;  %v125_v44 = vld [vmem:[%s2782_s1 + $0x290] sm:$0xff] }
  0x19   :  { %1479 = vmatpush3.bf16.msra.mxu0 %v1478_v10  ;;  %v108_v40 = vld [vmem:[%s2782_s1 + $0x208] sm:$0xff]  ;;  %v139_v41 = vld [vmem:[%s2782_s1 + $0x300] sm:$0xff]  ;;  %v1552_v42 = vpack.c.bf16 %v156_v35, %v155_v34  ;;  %v126_v45 = vld [vmem:[%s2782_s1 + $0x298] sm:$0xff] }
  0x1a   :  { %1481 = vmatprep.subr.bf16.mxu0 %v1480_v14  ;;  %v140_v43 = vld [vmem:[%s2782_s1 + $0x308] sm:$0xff]  ;;  %v157_v46 = vld [vmem:[%s2782_s1 + $0x390] sm:$0xff]  ;;  %v158_v47 = vld [vmem:[%s2782_s1 + $0x398] sm:$0xff]  ;;  %v1522_v49 = vpack.c.bf16 %v108_v40, %v107_v39  ;;  %v1524_v52 = vpack.c.bf16 %v126_v45, %v125_v44 }
  0x1b   :  { %1511 = vmatpush3.bf16.msra.mxu1 %v1510_v13  ;;  %v27_v48 = vld [vmem:[%s2781_s0] sm:$0xff]  ;;  %v29_v50 = vld [vmem:[%s2781_s0 + $0x10] sm:$0xff]  ;;  %v1554_v51 = vpack.c.bf16 %v140_v43, %v139_v41  ;;  %v110_v54 = vld [vmem:[%s2782_s1 + $0x218] sm:$0xff]  ;;  %v1556_v56 = vpack.c.bf16 %v158_v47, %v157_v46 }
  0x1c   :  { %1513 = vmatprep.subr.bf16.mxu1 %v1512_v18  ;;  %v109_v53 = vld [vmem:[%s2782_s1 + $0x210] sm:$0xff]  ;;  %v142_v57 = vld [vmem:[%s2782_s1 + $0x318] sm:$0xff]  ;;  %v127_v58 = vld [vmem:[%s2782_s1 + $0x2a0] sm:$0xff] }
  0x1d   :  { %1483 = vmatpush3.bf16.msra.mxu0 %v1482_v24  ;;  %v141_v55 = vld [vmem:[%s2782_s1 + $0x310] sm:$0xff]  ;;  %v128_v59 = vld [vmem:[%s2782_s1 + $0x2a8] sm:$0xff]  ;;  %v159_v60 = vld [vmem:[%s2782_s1 + $0x3a0] sm:$0xff]  ;;  %v1526_v62 = vpack.c.bf16 %v110_v54, %v109_v53 }
  0x1e   :  { %1485 = vmatprep.subr.bf16.mxu0 %v1484_v26  ;;  %v160_v61 = vld [vmem:[%s2782_s1 + $0x3a8] sm:$0xff]  ;;  %v1558_v63 = vpack.c.bf16 %v142_v57, %v141_v55  ;;  %v1528_v0 = vpack.c.bf16 %v128_v59, %v127_v58  ;;  %v111_v1 = vld [vmem:[%s2782_s1 + $0x220] sm:$0xff]  ;;  %v129_v6 = vld [vmem:[%s2782_s1 + $0x2b0] sm:$0xff] }
  0x1f   :  { %1515 = vmatpush3.bf16.msra.mxu1 %v1514_v25  ;;  %v112_v2 = vld [vmem:[%s2782_s1 + $0x228] sm:$0xff]  ;;  %v143_v3 = vld [vmem:[%s2782_s1 + $0x320] sm:$0xff]  ;;  %v1560_v4 = vpack.c.bf16 %v160_v61, %v159_v60  ;;  %v130_v7 = vld [vmem:[%s2782_s1 + $0x2b8] sm:$0xff] }
  0x20   :  { %1517 = vmatprep.subr.bf16.mxu1 %v1516_v30  ;;  %v144_v5 = vld [vmem:[%s2782_s1 + $0x328] sm:$0xff]  ;;  %v161_v8 = vld [vmem:[%s2782_s1 + $0x3b0] sm:$0xff]  ;;  %v162_v9 = vld [vmem:[%s2782_s1 + $0x3b8] sm:$0xff]  ;;  %v1530_v10 = vpack.c.bf16 %v112_v2, %v111_v1  ;;  %v1532_v12 = vpack.c.bf16 %v130_v7, %v129_v6 }
  0x21   :  { %1487 = vmatpush3.bf16.msra.mxu0 %v1486_v36  ;;  %v1562_v11 = vpack.c.bf16 %v144_v5, %v143_v3  ;;  %v113_v13 = vld [vmem:[%s2782_s1 + $0x230] sm:$0xff]  ;;  %v114_v14 = vld [vmem:[%s2782_s1 + $0x238] sm:$0xff]  ;;  %v1564_v16 = vpack.c.bf16 %v162_v9, %v161_v8  ;;  %v131_v18 = vld [vmem:[%s2782_s1 + $0x2c0] sm:$0xff] }
  0x22   :  { %1521 = vmatprep.subr.bf16.mxu0 %v1520_v38  ;;  %v145_v15 = vld [vmem:[%s2782_s1 + $0x330] sm:$0xff]  ;;  %v146_v17 = vld [vmem:[%s2782_s1 + $0x338] sm:$0xff]  ;;  %v132_v19 = vld [vmem:[%s2782_s1 + $0x2c8] sm:$0xff]  ;;  %v1534_v22 = vpack.c.bf16 %v114_v14, %v113_v13 }
  0x23   :  { %1519 = vmatpush3.bf16.msra.mxu1 %v1518_v37  ;;  %v163_v20 = vld [vmem:[%s2782_s1 + $0x3c0] sm:$0xff]  ;;  %v164_v21 = vld [vmem:[%s2782_s1 + $0x3c8] sm:$0xff]  ;;  %v1566_v25 = vpack.c.bf16 %v146_v17, %v145_v15  ;;  %v1536_v26 = vpack.c.bf16 %v132_v19, %v131_v18  ;;  %v34_v29 = vld [vmem:[%s2781_s0 + $0x38] sm:$0xff] }
  0x24   :  { %1553 = vmatprep.subr.bf16.mxu1 %v1552_v42  ;;  %371 = vmatmul.mubr.f32.vlgmr.msra.gmra.mrb[0].mxu0 %v27_v48  ;;  %v115_v23 = vld [vmem:[%s2782_s1 + $0x240] sm:$0xff]  ;;  %v32_v24 = vld [vmem:[%s2781_s0 + $0x28] sm:$0xff]  ;;  %v1568_v30 = vpack.c.bf16 %v164_v21, %v163_v20  ;;  %v133_v32 = vld [vmem:[%s2782_s1 + $0x2d0] sm:$0xff] }
  0x25   :  { %1523 = vmatpush3.bf16.msra.mxu0 %v1522_v49  ;;  %v116_v27 = vld [vmem:[%s2782_s1 + $0x248] sm:$0xff]  ;;  %v147_v28 = vld [vmem:[%s2782_s1 + $0x340] sm:$0xff]  ;;  %v134_v33 = vld [vmem:[%s2782_s1 + $0x2d8] sm:$0xff]  ;;  %510 = vmatprep.mubr.f32.mxu0 %v32_v24 }
  0x26   :  { %441 = vmatmul.mubr.f32.vlgmr.msra.gmra.mrb[0].mxu1 %v29_v50  ;;  %1525 = vmatprep.subr.bf16.mxu0 %v1524_v52  ;;  %v148_v31 = vld [vmem:[%s2782_s1 + $0x348] sm:$0xff]  ;;  %v165_v34 = vld [vmem:[%s2782_s1 + $0x3d0] sm:$0xff]  ;;  %v166_v35 = vld [vmem:[%s2782_s1 + $0x3d8] sm:$0xff]  ;;  %v1538_v36 = vpack.c.bf16 %v116_v27, %v115_v23  ;;  %v1540_v38 = vpack.c.bf16 %v134_v33, %v133_v32 }
  0x27   :  { %1555 = vmatpush3.bf16.msra.mxu1 %v1554_v51  ;;  %580 = vmatprep.mubr.f32.mxu1 %v34_v29  ;;  %v1570_v37 = vpack.c.bf16 %v148_v31, %v147_v28  ;;  %v117_v39 = vld [vmem:[%s2782_s1 + $0x250] sm:$0xff]  ;;  %v118_v40 = vld [vmem:[%s2782_s1 + $0x258] sm:$0xff]  ;;  %v1572_v42 = vpack.c.bf16 %v166_v35, %v165_v34  ;;  %v135_v44 = vld [vmem:[%s2782_s1 + $0x2e0] sm:$0xff] }
  0x28   :  { %1557 = vmatprep.subr.bf16.mxu1 %v1556_v56  ;;  %v149_v41 = vld [vmem:[%s2782_s1 + $0x350] sm:$0xff]  ;;  %v150_v43 = vld [vmem:[%s2782_s1 + $0x358] sm:$0xff]  ;;  %v136_v45 = vld [vmem:[%s2782_s1 + $0x2e8] sm:$0xff]  ;;  %v1542_v48 = vpack.c.bf16 %v118_v40, %v117_v39 }
  0x29   :  { %1527 = vmatpush3.bf16.msra.mxu0 %v1526_v62  ;;  %v167_v46 = vld [vmem:[%s2782_s1 + $0x3e0] sm:$0xff]  ;;  %v168_v47 = vld [vmem:[%s2782_s1 + $0x3e8] sm:$0xff]  ;;  %v1574_v49 = vpack.c.bf16 %v150_v43, %v149_v41  ;;  %v1544_v50 = vpack.c.bf16 %v136_v45, %v135_v44  ;;  %v137_v56 = vld [vmem:[%s2782_s1 + $0x2f0] sm:$0xff] }
  0x2a   :  { %1529 = vmatprep.subr.bf16.mxu0 %v1528_v0  ;;  %v119_v51 = vld [vmem:[%s2782_s1 + $0x260] sm:$0xff]  ;;  %v120_v52 = vld [vmem:[%s2782_s1 + $0x268] sm:$0xff]  ;;  %v1576_v54 = vpack.c.bf16 %v168_v47, %v167_v46  ;;  %v138_v57 = vld [vmem:[%s2782_s1 + $0x2f8] sm:$0xff] }
  0x2b   :  { %1559 = vmatpush3.bf16.msra.mxu1 %v1558_v63  ;;  %v151_v53 = vld [vmem:[%s2782_s1 + $0x360] sm:$0xff]  ;;  %v152_v55 = vld [vmem:[%s2782_s1 + $0x368] sm:$0xff]  ;;  %v169_v58 = vld [vmem:[%s2782_s1 + $0x3f0] sm:$0xff]  ;;  %v1546_v60 = vpack.c.bf16 %v120_v52, %v119_v51  ;;  %v1548_v62 = vpack.c.bf16 %v138_v57, %v137_v56 }
  0x2c   :  { %1561 = vmatprep.subr.bf16.mxu1 %v1560_v4  ;;  %v170_v59 = vld [vmem:[%s2782_s1 + $0x3f8] sm:$0xff]  ;;  %v1578_v61 = vpack.c.bf16 %v152_v55, %v151_v53  ;;  %v121_v63 = vld [vmem:[%s2782_s1 + $0x270] sm:$0xff]  ;;  %v187_v4 = vld [vmem:[%s2782_s1 + $0x480] sm:$0xff] }
  0x2d   :  { %1531 = vmatpush3.bf16.msra.mxu0 %v1530_v10  ;;  %v122_v0 = vld [vmem:[%s2782_s1 + $0x278] sm:$0xff]  ;;  %v153_v1 = vld [vmem:[%s2782_s1 + $0x370] sm:$0xff]  ;;  %v1580_v2 = vpack.c.bf16 %v170_v59, %v169_v58  ;;  %v188_v5 = vld [vmem:[%s2782_s1 + $0x488] sm:$0xff] }
  0x2e   :  { %1533 = vmatprep.subr.bf16.mxu0 %v1532_v12  ;;  %v154_v3 = vld [vmem:[%s2782_s1 + $0x378] sm:$0xff]  ;;  %v219_v6 = vld [vmem:[%s2782_s1 + $0x580] sm:$0xff]  ;;  %v220_v7 = vld [vmem:[%s2782_s1 + $0x588] sm:$0xff]  ;;  %v1550_v8 = vpack.c.bf16 %v122_v0, %v121_v63  ;;  %v1584_v10 = vpack.c.bf16 %v188_v5, %v187_v4 }
  0x2f   :  { %1563 = vmatpush3.bf16.msra.mxu1 %v1562_v11  ;;  %v1582_v9 = vpack.c.bf16 %v154_v3, %v153_v1  ;;  %v171_v11 = vld [vmem:[%s2782_s1 + $0x400] sm:$0xff]  ;;  %v172_v12 = vld [vmem:[%s2782_s1 + $0x408] sm:$0xff]  ;;  %v1616_v14 = vpack.c.bf16 %v220_v7, %v219_v6  ;;  %v190_v17 = vld [vmem:[%s2782_s1 + $0x498] sm:$0xff] }
  0x30   :  { %1565 = vmatprep.subr.bf16.mxu1 %v1564_v16  ;;  %v203_v13 = vld [vmem:[%s2782_s1 + $0x500] sm:$0xff]  ;;  %v204_v15 = vld [vmem:[%s2782_s1 + $0x508] sm:$0xff]  ;;  %v189_v16 = vld [vmem:[%s2782_s1 + $0x490] sm:$0xff]  ;;  %v1586_v21 = vpack.c.bf16 %v172_v12, %v171_v11 }
  0x31   :  { %1535 = vmatpush3.bf16.msra.mxu0 %v1534_v22  ;;  %v221_v18 = vld [vmem:[%s2782_s1 + $0x590] sm:$0xff]  ;;  %v222_v19 = vld [vmem:[%s2782_s1 + $0x598] sm:$0xff]  ;;  %v31_v20 = vld [vmem:[%s2781_s0 + $0x20] sm:$0xff]  ;;  %v1618_v23 = vpack.c.bf16 %v204_v15, %v203_v13  ;;  %v1588_v24 = vpack.c.bf16 %v190_v17, %v189_v16 }
  0x32   :  { %1537 = vmatprep.subr.bf16.mxu0 %v1536_v26  ;;  %v33_v22 = vld [vmem:[%s2781_s0 + $0x30] sm:$0xff]  ;;  %v174_v26 = vld [vmem:[%s2782_s1 + $0x418] sm:$0xff]  ;;  %v1620_v28 = vpack.c.bf16 %v222_v19, %v221_v18  ;;  %v192_v31 = vld [vmem:[%s2782_s1 + $0x4a8] sm:$0xff] }
  0x33   :  { %1567 = vmatpush3.bf16.msra.mxu1 %v1566_v25  ;;  %v173_v25 = vld [vmem:[%s2782_s1 + $0x410] sm:$0xff]  ;;  %v206_v29 = vld [vmem:[%s2782_s1 + $0x518] sm:$0xff]  ;;  %v223_v32 = vld [vmem:[%s2782_s1 + $0x5a0] sm:$0xff] }
  0x34   :  { %1569 = vmatprep.subr.bf16.mxu1 %v1568_v30  ;;  %v205_v27 = vld [vmem:[%s2782_s1 + $0x510] sm:$0xff]  ;;  %v191_v30 = vld [vmem:[%s2782_s1 + $0x4a0] sm:$0xff]  ;;  %v224_v33 = vld [vmem:[%s2782_s1 + $0x5a8] sm:$0xff]  ;;  %v1590_v35 = vpack.c.bf16 %v174_v26, %v173_v25 }
  0x35   :  { %1539 = vmatpush3.bf16.msra.mxu0 %v1538_v36  ;;  %v36_v34 = vld [vmem:[%s2781_s0 + $0x48] sm:$0xff]  ;;  %v38_v36 = vld [vmem:[%s2781_s0 + $0x58] sm:$0xff]  ;;  %v175_v39 = vld [vmem:[%s2782_s1 + $0x420] sm:$0xff] }
  0x36   :  { %1541 = vmatprep.subr.bf16.mxu0 %v1540_v38  ;;  %v1592_v38 = vpack.c.bf16 %v192_v31, %v191_v30  ;;  %v176_v40 = vld [vmem:[%s2782_s1 + $0x428] sm:$0xff]  ;;  %v207_v41 = vld [vmem:[%s2782_s1 + $0x520] sm:$0xff]  ;;  %v193_v44 = vld [vmem:[%s2782_s1 + $0x4b0] sm:$0xff] }
  0x37   :  { %1571 = vmatpush3.bf16.msra.mxu1 %v1570_v37  ;;  %v1622_v37 = vpack.c.bf16 %v206_v29, %v205_v27  ;;  %v208_v43 = vld [vmem:[%s2782_s1 + $0x528] sm:$0xff]  ;;  %v194_v45 = vld [vmem:[%s2782_s1 + $0x4b8] sm:$0xff]  ;;  %v225_v46 = vld [vmem:[%s2782_s1 + $0x5b0] sm:$0xff] }
  0x38   :  { %1573 = vmatprep.subr.bf16.mxu1 %v1572_v42  ;;  %v1624_v42 = vpack.c.bf16 %v224_v33, %v223_v32  ;;  %v226_v47 = vld [vmem:[%s2782_s1 + $0x5b8] sm:$0xff]  ;;  %v177_v51 = vld [vmem:[%s2782_s1 + $0x430] sm:$0xff]  ;;  %v195_v56 = vld [vmem:[%s2782_s1 + $0x4c0] sm:$0xff] }
  0x39   :  { %1543 = vmatpush3.bf16.msra.mxu0 %v1542_v48  ;;  %v1594_v48 = vpack.c.bf16 %v176_v40, %v175_v39  ;;  %v178_v52 = vld [vmem:[%s2782_s1 + $0x438] sm:$0xff]  ;;  %v209_v53 = vld [vmem:[%s2782_s1 + $0x530] sm:$0xff]  ;;  %v196_v57 = vld [vmem:[%s2782_s1 + $0x4c8] sm:$0xff] }
  0x3a   :  { %1545 = vmatprep.subr.bf16.mxu0 %v1544_v50  ;;  %v1596_v50 = vpack.c.bf16 %v194_v45, %v193_v44  ;;  %v210_v55 = vld [vmem:[%s2782_s1 + $0x538] sm:$0xff]  ;;  %v227_v58 = vld [vmem:[%s2782_s1 + $0x5c0] sm:$0xff]  ;;  %v228_v59 = vld [vmem:[%s2782_s1 + $0x5c8] sm:$0xff] }
  0x3b   :  { %1575 = vmatpush3.bf16.msra.mxu1 %v1574_v49  ;;  %v1626_v49 = vpack.c.bf16 %v208_v43, %v207_v41  ;;  %v179_v63 = vld [vmem:[%s2782_s1 + $0x440] sm:$0xff]  ;;  %v180_v0 = vld [vmem:[%s2782_s1 + $0x448] sm:$0xff]  ;;  %v197_v4 = vld [vmem:[%s2782_s1 + $0x4d0] sm:$0xff] }
  0x3c   :  { %1577 = vmatprep.subr.bf16.mxu1 %v1576_v54  ;;  %v1628_v54 = vpack.c.bf16 %v226_v47, %v225_v46  ;;  %v211_v1 = vld [vmem:[%s2782_s1 + $0x540] sm:$0xff]  ;;  %v212_v3 = vld [vmem:[%s2782_s1 + $0x548] sm:$0xff]  ;;  %v198_v5 = vld [vmem:[%s2782_s1 + $0x4d8] sm:$0xff] }
  0x3d   :  { %1547 = vmatpush3.bf16.msra.mxu0 %v1546_v60  ;;  %v1598_v60 = vpack.c.bf16 %v178_v52, %v177_v51  ;;  %v229_v6 = vld [vmem:[%s2782_s1 + $0x5d0] sm:$0xff]  ;;  %v230_v7 = vld [vmem:[%s2782_s1 + $0x5d8] sm:$0xff]  ;;  %v199_v16 = vld [vmem:[%s2782_s1 + $0x4e0] sm:$0xff] }
  0x3e   :  { %1549 = vmatprep.subr.bf16.mxu0 %v1548_v62  ;;  %v1600_v62 = vpack.c.bf16 %v196_v57, %v195_v56  ;;  %v181_v11 = vld [vmem:[%s2782_s1 + $0x450] sm:$0xff]  ;;  %v182_v12 = vld [vmem:[%s2782_s1 + $0x458] sm:$0xff]  ;;  %v200_v17 = vld [vmem:[%s2782_s1 + $0x4e8] sm:$0xff] }
  0x3f   :  { %1579 = vmatpush3.bf16.msra.mxu1 %v1578_v61  ;;  %v1630_v61 = vpack.c.bf16 %v210_v55, %v209_v53  ;;  %v213_v13 = vld [vmem:[%s2782_s1 + $0x550] sm:$0xff]  ;;  %v214_v15 = vld [vmem:[%s2782_s1 + $0x558] sm:$0xff]  ;;  %v231_v18 = vld [vmem:[%s2782_s1 + $0x5e0] sm:$0xff] }
  0x40   :  { %1581 = vmatprep.subr.bf16.mxu1 %v1580_v2  ;;  %v1632_v2 = vpack.c.bf16 %v228_v59, %v227_v58  ;;  %v232_v19 = vld [vmem:[%s2782_s1 + $0x5e8] sm:$0xff]  ;;  %v215_v25 = vld [vmem:[%s2782_s1 + $0x560] sm:$0xff]  ;;  %v202_v29 = vld [vmem:[%s2782_s1 + $0x4f8] sm:$0xff] }
  0x41   :  { %1551 = vmatpush3.bf16.msra.mxu0 %v1550_v8  ;;  %v1602_v8 = vpack.c.bf16 %v180_v0, %v179_v63  ;;  %v1640_v26 = vpack.c.bf16 %v232_v19, %v231_v18  ;;  %v216_v27 = vld [vmem:[%s2782_s1 + $0x568] sm:$0xff]  ;;  %v233_v30 = vld [vmem:[%s2782_s1 + $0x5f0] sm:$0xff]  ;;  %v234_v31 = vld [vmem:[%s2782_s1 + $0x5f8] sm:$0xff] }
  0x42   :  { %1585 = vmatprep.subr.bf16.mxu0 %v1584_v10  ;;  %v1604_v10 = vpack.c.bf16 %v198_v5, %v197_v4  ;;  %v185_v33 = vld [vmem:[%s2782_s1 + $0x470] sm:$0xff]  ;;  %v1644_v39 = vpack.c.bf16 %v234_v31, %v233_v30  ;;  %v251_v40 = vld [vmem:[%s2782_s1 + $0x680] sm:$0xff]  ;;  %v252_v41 = vld [vmem:[%s2782_s1 + $0x688] sm:$0xff] }
  0x43   :  { %1583 = vmatpush3.bf16.msra.mxu1 %v1582_v9  ;;  %v1634_v9 = vpack.c.bf16 %v212_v3, %v211_v1 }
  0x44   :  { %1617 = vmatprep.subr.bf16.mxu1 %v1616_v14  ;;  %511 = vmatmul.mubr.f32.vlgmr.msra.gmra.mrb[2].mxu0 %v31_v20  ;;  %v1636_v14 = vpack.c.bf16 %v230_v7, %v229_v6  ;;  %v1606_v20 = vpack.c.bf16 %v182_v12, %v181_v11 }
  0x45   :  { %1587 = vmatpush3.bf16.msra.mxu0 %v1586_v21  ;;  %650 = vmatprep.mubr.f32.mxu0 %v36_v34  ;;  %v1638_v21 = vpack.c.bf16 %v214_v15, %v213_v13  ;;  %v1642_v34 = vpack.c.bf16 %v216_v27, %v215_v25 }
  0x46   :  { %581 = vmatmul.mubr.f32.vlgmr.msra.gmra.mrb[2].mxu1 %v33_v22  ;;  %1589 = vmatprep.subr.bf16.mxu0 %v1588_v24  ;;  %v1608_v22 = vpack.c.bf16 %v200_v17, %v199_v16  ;;  %v184_v24 = vld [vmem:[%s2782_s1 + $0x468] sm:$0xff] }
  0x47   :  { %1619 = vmatpush3.bf16.msra.mxu1 %v1618_v23  ;;  %720 = vmatprep.mubr.f32.mxu1 %v38_v36  ;;  %v183_v23 = vld [vmem:[%s2782_s1 + $0x460] sm:$0xff]  ;;  %v186_v36 = vld [vmem:[%s2782_s1 + $0x478] sm:$0xff] }
  0x48   :  { %1621 = vmatprep.subr.bf16.mxu1 %v1620_v28  ;;  %v201_v28 = vld [vmem:[%s2782_s1 + $0x4f0] sm:$0xff]  ;;  %v1610_v32 = vpack.c.bf16 %v184_v24, %v183_v23 }
  0x49   :  { %1591 = vmatpush3.bf16.msra.mxu0 %v1590_v35  ;;  %v1612_v35 = vpack.c.bf16 %v202_v29, %v201_v28 }
  0x4a   :  { %1593 = vmatprep.subr.bf16.mxu0 %v1592_v38  ;;  %v218_v38 = vld [vmem:[%s2782_s1 + $0x578] sm:$0xff] }
  0x4b   :  { %1623 = vmatpush3.bf16.msra.mxu1 %v1622_v37  ;;  %v217_v37 = vld [vmem:[%s2782_s1 + $0x570] sm:$0xff] }
  0x4c   :  { %1625 = vmatprep.subr.bf16.mxu1 %v1624_v42 }
  0x4d   :  { %1595 = vmatpush3.bf16.msra.mxu0 %v1594_v48 }
  0x4e   :  { %1597 = vmatprep.subr.bf16.mxu0 %v1596_v50 }
  0x4f   :  { %1627 = vmatpush3.bf16.msra.mxu1 %v1626_v49 }
  0x50   :  { %1629 = vmatprep.subr.bf16.mxu1 %v1628_v54 }
  0x51   :  { %1599 = vmatpush3.bf16.msra.mxu0 %v1598_v60 }
  0x52   :  { %1601 = vmatprep.subr.bf16.mxu0 %v1600_v62 }
  0x53   :  { %1631 = vmatpush3.bf16.msra.mxu1 %v1630_v61 }
  0x54   :  { %1633 = vmatprep.subr.bf16.mxu1 %v1632_v2 }
  0x55   :  { %1603 = vmatpush3.bf16.msra.mxu0 %v1602_v8 }
  0x56   :  { %1605 = vmatprep.subr.bf16.mxu0 %v1604_v10 }
  0x57   :  { %1635 = vmatpush3.bf16.msra.mxu1 %v1634_v9 }
  0x58   :  { %1637 = vmatprep.subr.bf16.mxu1 %v1636_v14 }
  0x59   :  { %1607 = vmatpush3.bf16.msra.mxu0 %v1606_v20 }
  0x5a   :  { %1609 = vmatprep.subr.bf16.mxu0 %v1608_v22 }
  0x5b   :  { %1639 = vmatpush3.bf16.msra.mxu1 %v1638_v21 }
  0x5c   :  { %1641 = vmatprep.subr.bf16.mxu1 %v1640_v26 }
  0x5d   :  { %12 = vsyncpa [#allocation3], 0  ;;  %v283_v42 = vld [vmem:[%s2782_s1 + $0x780] sm:$0xff]  ;;  %v284_v43 = vld [vmem:[%s2782_s1 + $0x788] sm:$0xff]  ;;  %1611 = vmatpush3.bf16.msra.mxu0 %v1610_v32  ;;  %v1614_v44 = vpack.c.bf16 %v186_v36, %v185_v33  ;;  %v1646_v45 = vpack.c.bf16 %v218_v38, %v217_v37  ;;  %v1648_v46 = vpack.c.bf16 %v252_v41, %v251_v40  ;;  %vm1789_vm0 = vmmov 0   ;;  %s1791_s8 = smov [#allocation2]  }
  0x5e   :  { %1613 = vmatprep.subr.bf16.mxu0 %v1612_v35  ;;  %v235_v47 = vld [vmem:[%s2782_s1 + $0x600] sm:$0xff]  ;;  %v236_v48 = vld [vmem:[%s2782_s1 + $0x608] sm:$0xff]  ;;  %v1680_v50 = vpack.c.bf16 %v284_v43, %v283_v42  ;;  %v253_v52 = vld [vmem:[%s2782_s1 + $0x690] sm:$0xff]  ;;  %s1061_s9 = sshll.u32 %s1791_s8, 4  ;;  %s1062_s9 = int_to_ptr.vmem [resolvable:$true] %s1061_s9 }
  0x5f   :  { %1643 = vmatpush3.bf16.msra.mxu1 %v1642_v34  ;;  %v267_v49 = vld [vmem:[%s2782_s1 + $0x700] sm:$0xff]  ;;  %v268_v51 = vld [vmem:[%s2782_s1 + $0x708] sm:$0xff]  ;;  %v254_v53 = vld [vmem:[%s2782_s1 + $0x698] sm:$0xff]  ;;  %v1650_v57 = vpack.c.bf16 %v236_v48, %v235_v47  ;;  %p1769_p1 = scmp.lt.s32.totalorder %s1062_s9, %s1062_s9 }
  0x60   :  { %1645 = vmatprep.subr.bf16.mxu1 %v1644_v39  ;;  %v285_v54 = vld [vmem:[%s2782_s1 + $0x790] sm:$0xff]  ;;  %v286_v55 = vld [vmem:[%s2782_s1 + $0x798] sm:$0xff]  ;;  %v35_v56 = vld [vmem:[%s2781_s0 + $0x40] sm:$0xff]  ;;  %v1682_v59 = vpack.c.bf16 %v268_v51, %v267_v49  ;;  %v1652_v60 = vpack.c.bf16 %v254_v53, %v253_v52 }
  0x61   :  { %1615 = vmatpush3.bf16.msra.mxu0 %v1614_v44  ;;  %v37_v58 = vld [vmem:[%s2781_s0 + $0x50] sm:$0xff]  ;;  %v238_v62 = vld [vmem:[%s2782_s1 + $0x618] sm:$0xff]  ;;  %v1684_v0 = vpack.c.bf16 %v286_v55, %v285_v54  ;;  %v255_v2 = vld [vmem:[%s2782_s1 + $0x6a0] sm:$0xff] }
  0x62   :  { %1649 = vmatprep.subr.bf16.mxu0 %v1648_v46  ;;  %v237_v61 = vld [vmem:[%s2782_s1 + $0x610] sm:$0xff]  ;;  %v270_v1 = vld [vmem:[%s2782_s1 + $0x718] sm:$0xff]  ;;  %v256_v3 = vld [vmem:[%s2782_s1 + $0x6a8] sm:$0xff] }
  0x63   :  { %1647 = vmatpush3.bf16.msra.mxu1 %v1646_v45  ;;  %v269_v63 = vld [vmem:[%s2782_s1 + $0x710] sm:$0xff]  ;;  %v287_v4 = vld [vmem:[%s2782_s1 + $0x7a0] sm:$0xff]  ;;  %v288_v5 = vld [vmem:[%s2782_s1 + $0x7a8] sm:$0xff]  ;;  %v1654_v7 = vpack.c.bf16 %v238_v62, %v237_v61  ;;  %v1656_v10 = vpack.c.bf16 %v256_v3, %v255_v2 }
  0x64   :  { %1681 = vmatprep.subr.bf16.mxu1 %v1680_v50  ;;  %651 = vmatmul.mubr.f32.vlgmr.msra.gmra.mrb[4].mxu0 %v35_v56  ;;  %v40_v6 = vld [vmem:[%s2781_s0 + $0x68] sm:$0xff]  ;;  %v42_v8 = vld [vmem:[%s2781_s0 + $0x78] sm:$0xff]  ;;  %v1686_v9 = vpack.c.bf16 %v270_v1, %v269_v63  ;;  %v239_v11 = vld [vmem:[%s2782_s1 + $0x620] sm:$0xff]  ;;  %v1688_v14 = vpack.c.bf16 %v288_v5, %v287_v4 }
  0x65   :  { %1651 = vmatpush3.bf16.msra.mxu0 %v1650_v57  ;;  %v240_v12 = vld [vmem:[%s2782_s1 + $0x628] sm:$0xff]  ;;  %v271_v13 = vld [vmem:[%s2782_s1 + $0x720] sm:$0xff]  ;;  %v257_v16 = vld [vmem:[%s2782_s1 + $0x6b0] sm:$0xff]  ;;  %790 = vmatprep.mubr.f32.mxu0 %v40_v6 }
  0x66   :  { %721 = vmatmul.mubr.f32.vlgmr.msra.gmra.mrb[4].mxu1 %v37_v58  ;;  %1653 = vmatprep.subr.bf16.mxu0 %v1652_v60  ;;  %v272_v15 = vld [vmem:[%s2782_s1 + $0x728] sm:$0xff]  ;;  %v258_v17 = vld [vmem:[%s2782_s1 + $0x6b8] sm:$0xff]  ;;  %v289_v18 = vld [vmem:[%s2782_s1 + $0x7b0] sm:$0xff]  ;;  %v1658_v20 = vpack.c.bf16 %v240_v12, %v239_v11 }
  0x67   :  { %1683 = vmatpush3.bf16.msra.mxu1 %v1682_v59  ;;  %v290_v19 = vld [vmem:[%s2782_s1 + $0x7b8] sm:$0xff]  ;;  %860 = vmatprep.mubr.f32.mxu1 %v42_v8  ;;  %v1690_v21 = vpack.c.bf16 %v272_v15, %v271_v13  ;;  %v1660_v22 = vpack.c.bf16 %v258_v17, %v257_v16  ;;  %v241_v23 = vld [vmem:[%s2782_s1 + $0x630] sm:$0xff]  ;;  %v259_v28 = vld [vmem:[%s2782_s1 + $0x6c0] sm:$0xff] }
  0x68   :  { %1685 = vmatprep.subr.bf16.mxu1 %v1684_v0  ;;  %v242_v24 = vld [vmem:[%s2782_s1 + $0x638] sm:$0xff]  ;;  %v273_v25 = vld [vmem:[%s2782_s1 + $0x730] sm:$0xff]  ;;  %v1692_v26 = vpack.c.bf16 %v290_v19, %v289_v18  ;;  %v260_v29 = vld [vmem:[%s2782_s1 + $0x6c8] sm:$0xff]  ;;  %v1788_v19 = vmov 0.0|0.0  }
  0x69   :  { %1655 = vmatpush3.bf16.msra.mxu0 %v1654_v7  ;;  %v274_v27 = vld [vmem:[%s2782_s1 + $0x738] sm:$0xff]  ;;  %v291_v30 = vld [vmem:[%s2782_s1 + $0x7c0] sm:$0xff]  ;;  %v292_v31 = vld [vmem:[%s2782_s1 + $0x7c8] sm:$0xff]  ;;  %v1662_v32 = vpack.c.bf16 %v242_v24, %v241_v23  ;;  %v1664_v34 = vpack.c.bf16 %v260_v29, %v259_v28 }
  0x6a   :  { %1657 = vmatprep.subr.bf16.mxu0 %v1656_v10  ;;  %v1694_v33 = vpack.c.bf16 %v274_v27, %v273_v25  ;;  %v243_v35 = vld [vmem:[%s2782_s1 + $0x640] sm:$0xff]  ;;  %v244_v36 = vld [vmem:[%s2782_s1 + $0x648] sm:$0xff]  ;;  %v1696_v38 = vpack.c.bf16 %v292_v31, %v291_v30  ;;  %v261_v40 = vld [vmem:[%s2782_s1 + $0x6d0] sm:$0xff] }
  0x6b   :  { %1687 = vmatpush3.bf16.msra.mxu1 %v1686_v9  ;;  %v275_v37 = vld [vmem:[%s2782_s1 + $0x740] sm:$0xff]  ;;  %v276_v39 = vld [vmem:[%s2782_s1 + $0x748] sm:$0xff]  ;;  %v262_v41 = vld [vmem:[%s2782_s1 + $0x6d8] sm:$0xff]  ;;  %v1666_v44 = vpack.c.bf16 %v244_v36, %v243_v35 }
  0x6c   :  { %1689 = vmatprep.subr.bf16.mxu1 %v1688_v14  ;;  %v293_v42 = vld [vmem:[%s2782_s1 + $0x7d0] sm:$0xff]  ;;  %v294_v43 = vld [vmem:[%s2782_s1 + $0x7d8] sm:$0xff]  ;;  %v1698_v45 = vpack.c.bf16 %v276_v39, %v275_v37  ;;  %v1668_v46 = vpack.c.bf16 %v262_v41, %v261_v40  ;;  %v263_v52 = vld [vmem:[%s2782_s1 + $0x6e0] sm:$0xff]  ;;  %v1790_v41 = vmov 0.0  }
  0x6d   :  { %1659 = vmatpush3.bf16.msra.mxu0 %v1658_v20  ;;  %v245_v47 = vld [vmem:[%s2782_s1 + $0x650] sm:$0xff]  ;;  %v246_v48 = vld [vmem:[%s2782_s1 + $0x658] sm:$0xff]  ;;  %v1700_v50 = vpack.c.bf16 %v294_v43, %v293_v42  ;;  %v264_v53 = vld [vmem:[%s2782_s1 + $0x6e8] sm:$0xff] }
  0x6e   :  { %1661 = vmatprep.subr.bf16.mxu0 %v1660_v22  ;;  %v277_v49 = vld [vmem:[%s2782_s1 + $0x750] sm:$0xff]  ;;  %v278_v51 = vld [vmem:[%s2782_s1 + $0x758] sm:$0xff]  ;;  %v295_v54 = vld [vmem:[%s2782_s1 + $0x7e0] sm:$0xff]  ;;  %v1670_v56 = vpack.c.bf16 %v246_v48, %v245_v47  ;;  %v1672_v58 = vpack.c.bf16 %v264_v53, %v263_v52 }
  0x6f   :  { %1691 = vmatpush3.bf16.msra.mxu1 %v1690_v21  ;;  %v296_v55 = vld [vmem:[%s2782_s1 + $0x7e8] sm:$0xff]  ;;  %v1702_v57 = vpack.c.bf16 %v278_v51, %v277_v49  ;;  %v247_v59 = vld [vmem:[%s2782_s1 + $0x660] sm:$0xff]  ;;  %v265_v0 = vld [vmem:[%s2782_s1 + $0x6f0] sm:$0xff] }
  0x70   :  { %1693 = vmatprep.subr.bf16.mxu1 %v1692_v26  ;;  %v248_v60 = vld [vmem:[%s2782_s1 + $0x668] sm:$0xff]  ;;  %v279_v61 = vld [vmem:[%s2782_s1 + $0x760] sm:$0xff]  ;;  %v1704_v62 = vpack.c.bf16 %v296_v55, %v295_v54  ;;  %v266_v1 = vld [vmem:[%s2782_s1 + $0x6f8] sm:$0xff] }
  0x71   :  { %1663 = vmatpush3.bf16.msra.mxu0 %v1662_v32  ;;  %v280_v63 = vld [vmem:[%s2782_s1 + $0x768] sm:$0xff]  ;;  %v297_v2 = vld [vmem:[%s2782_s1 + $0x7f0] sm:$0xff]  ;;  %v298_v3 = vld [vmem:[%s2782_s1 + $0x7f8] sm:$0xff]  ;;  %v1674_v4 = vpack.c.bf16 %v248_v60, %v247_v59  ;;  %v1676_v6 = vpack.c.bf16 %v266_v1, %v265_v0 }
  0x72   :  { %1665 = vmatprep.subr.bf16.mxu0 %v1664_v34  ;;  %v1706_v5 = vpack.c.bf16 %v280_v63, %v279_v61  ;;  %v249_v7 = vld [vmem:[%s2782_s1 + $0x670] sm:$0xff]  ;;  %v250_v8 = vld [vmem:[%s2782_s1 + $0x678] sm:$0xff]  ;;  %v1708_v9 = vpack.c.bf16 %v298_v3, %v297_v2  ;;  %v39_v14 = vld [vmem:[%s2781_s0 + $0x60] sm:$0xff] }
  0x73   :  { %1695 = vmatpush3.bf16.msra.mxu1 %v1694_v33  ;;  %v281_v10 = vld [vmem:[%s2782_s1 + $0x770] sm:$0xff]  ;;  %v282_v11 = vld [vmem:[%s2782_s1 + $0x778] sm:$0xff]  ;;  %v1678_v12 = vpack.c.bf16 %v250_v8, %v249_v7  ;;  %v867_v16 = vld [vmem:[%s2784_s3] sm:$0xff] }
  0x74   :  { %1697 = vmatprep.subr.bf16.mxu1 %v1696_v38  ;;  %v1710_v13 = vpack.c.bf16 %v282_v11, %v281_v10  ;;  %v41_v15 = vld [vmem:[%s2781_s0 + $0x70] sm:$0xff]  ;;  %v868_v17 = vld [vmem:[%s2784_s3 + $0x8] sm:$0xff]  ;;  %v870_v21 = vld [vmem:[%s2784_s3 + $0x18] sm:$0xff] }
  0x75   :  { %1667 = vmatpush3.bf16.msra.mxu0 %v1666_v44  ;;  %v869_v18 = vld [vmem:[%s2784_s3 + $0x10] sm:$0xff]  ;;  %v1713_v20 = vpack.c.bf16 %v868_v17, %v867_v16  ;;  %v871_v23 = vld [vmem:[%s2784_s3 + $0x20] sm:$0xff]  ;;  %v872_v24 = vld [vmem:[%s2784_s3 + $0x28] sm:$0xff] }
  0x76   :  { %1669 = vmatprep.subr.bf16.mxu0 %v1668_v46  ;;  %v1716_v22 = vpack.c.bf16 %v870_v21, %v869_v18  ;;  %v1719_v25 = vpack.c.bf16 %v872_v24, %v871_v23  ;;  %v873_v26 = vld [vmem:[%s2784_s3 + $0x30] sm:$0xff]  ;;  %v874_v27 = vld [vmem:[%s2784_s3 + $0x38] sm:$0xff]  ;;  %v875_v29 = vld [vmem:[%s2784_s3 + $0x40] sm:$0xff] }
  0x77   :  { %1699 = vmatpush3.bf16.msra.mxu1 %v1698_v45  ;;  %v1722_v28 = vpack.c.bf16 %v874_v27, %v873_v26  ;;  %v876_v30 = vld [vmem:[%s2784_s3 + $0x48] sm:$0xff]  ;;  %v877_v32 = vld [vmem:[%s2784_s3 + $0x50] sm:$0xff]  ;;  %v878_v33 = vld [vmem:[%s2784_s3 + $0x58] sm:$0xff] }
  0x78   :  { %1701 = vmatprep.subr.bf16.mxu1 %v1700_v50  ;;  %v1725_v31 = vpack.c.bf16 %v876_v30, %v875_v29  ;;  %v1728_v34 = vpack.c.bf16 %v878_v33, %v877_v32  ;;  %v879_v35 = vld [vmem:[%s2784_s3 + $0x60] sm:$0xff]  ;;  %v880_v36 = vld [vmem:[%s2784_s3 + $0x68] sm:$0xff]  ;;  %v881_v38 = vld [vmem:[%s2784_s3 + $0x70] sm:$0xff] }
  0x79   :  { %1671 = vmatpush3.bf16.msra.mxu0 %v1670_v56  ;;  %v1731_v37 = vpack.c.bf16 %v880_v36, %v879_v35  ;;  %v882_v39 = vld [vmem:[%s2784_s3 + $0x78] sm:$0xff]  ;;  %v961_v42 = vld [vmem:[%s2786_s5] sm:$0xff]  ;;  %v962_v43 = vld [vmem:[%s2786_s5 + $0x8] sm:$0xff] }
  0x7a   :  { %1673 = vmatprep.subr.bf16.mxu0 %v1672_v58  ;;  %v1734_v40 = vpack.c.bf16 %v882_v39, %v881_v38  ;;  %v963_v44 = vld [vmem:[%s2786_s5 + $0x10] sm:$0xff]  ;;  %v1737_v45 = vpack.c.bf16 %v962_v43, %v961_v42  ;;  %v964_v46 = vld [vmem:[%s2786_s5 + $0x18] sm:$0xff]  ;;  %v965_v48 = vld [vmem:[%s2786_s5 + $0x20] sm:$0xff] }
  0x7b   :  { %1703 = vmatpush3.bf16.msra.mxu1 %v1702_v57  ;;  %v1740_v47 = vpack.c.bf16 %v964_v46, %v963_v44  ;;  %v966_v49 = vld [vmem:[%s2786_s5 + $0x28] sm:$0xff]  ;;  %v967_v51 = vld [vmem:[%s2786_s5 + $0x30] sm:$0xff]  ;;  %v968_v52 = vld [vmem:[%s2786_s5 + $0x38] sm:$0xff] }
  0x7c   :  { %1705 = vmatprep.subr.bf16.mxu1 %v1704_v62  ;;  %v1743_v50 = vpack.c.bf16 %v966_v49, %v965_v48  ;;  %v1746_v53 = vpack.c.bf16 %v968_v52, %v967_v51  ;;  %v969_v54 = vld [vmem:[%s2786_s5 + $0x40] sm:$0xff]  ;;  %v970_v55 = vld [vmem:[%s2786_s5 + $0x48] sm:$0xff]  ;;  %v971_v57 = vld [vmem:[%s2786_s5 + $0x50] sm:$0xff] }
  0x7d   :  { %1675 = vmatpush3.bf16.msra.mxu0 %v1674_v4  ;;  %v1749_v56 = vpack.c.bf16 %v970_v55, %v969_v54  ;;  %v972_v58 = vld [vmem:[%s2786_s5 + $0x58] sm:$0xff]  ;;  %v973_v60 = vld [vmem:[%s2786_s5 + $0x60] sm:$0xff]  ;;  %v974_v61 = vld [vmem:[%s2786_s5 + $0x68] sm:$0xff] }
  0x7e   :  { %1677 = vmatprep.subr.bf16.mxu0 %v1676_v6  ;;  %v1752_v59 = vpack.c.bf16 %v972_v58, %v971_v57  ;;  %v1069_v63 = vld [vmem:[%s2783_s2] ss:$0 sm:$0xff]  ;;  %v1755_v2 = vpack.c.bf16 %v974_v61, %v973_v60  ;;  %v975_v33 = vld [vmem:[%s2786_s5 + $0x70] sm:$0xff] }
  0x7f   :  { %1707 = vmatpush3.bf16.msra.mxu1 %v1706_v5  ;;  %v1070_v36 = vld [vmem:[%s2785_s4] ss:$0 sm:$0xff] }
  0x80   :  { %1709 = vmatprep.subr.bf16.mxu1 %v1708_v9 }
  0x81   :  { %1679 = vmatpush3.bf16.msra.mxu0 %v1678_v12 }
  0x82   :  { %1712 = vmatprep.subr.bf16.mxu0 %v1788_v19 }
  0x83   :  { %1711 = vmatpush3.bf16.msra.mxu1 %v1710_v13 }
  0x84   :  { %791 = vmatmul.mubr.f32.vlgmr.msra.gmra.mrb[6].mxu0 %v39_v14  ;;  %1736 = vmatprep.subr.bf16.mxu1 %v1788_v19 }
  0x85   :  { %1714 = vmatpush3.bf16.msra.mxu0 %v1713_v20  ;;  %1418 = vmatprep.mubr.msk.f32.mxu0 %vm1789_vm0, %v1790_v41 }
  0x86   :  { %861 = vmatmul.mubr.f32.vlgmr.msra.gmra.mrb[6].mxu1 %v41_v15  ;;  %1715 = vmatprep.subr.bf16.mxu0 %v1788_v19 }
  0x87   :  { %1453 = vmatprep.mubr.msk.f32.mxu1 %vm1789_vm0, %v1790_v41  ;;  %1738 = vmatpush3.bf16.msra.mxu1 %v1737_v45  ;;  %v1071_v41 = vld [vmem:[%s2787_s6] ss:$0 sm:$0xff] }
  0x88   :  { %1739 = vmatprep.subr.bf16.mxu1 %v1788_v19 }
  0x89   :  { %1717 = vmatpush3.bf16.msra.mxu0 %v1716_v22 }
  0x8a   :  { %1718 = vmatprep.subr.bf16.mxu0 %v1788_v19 }
  0x8b   :  { %1741 = vmatpush3.bf16.msra.mxu1 %v1740_v47 }
  0x8c   :  { %1742 = vmatprep.subr.bf16.mxu1 %v1788_v19 }
  0x8d   :  { %1720 = vmatpush3.bf16.msra.mxu0 %v1719_v25 }
  0x8e   :  { %1721 = vmatprep.subr.bf16.mxu0 %v1788_v19 }
  0x8f   :  { %1744 = vmatpush3.bf16.msra.mxu1 %v1743_v50 }
  0x90   :  { %1745 = vmatprep.subr.bf16.mxu1 %v1788_v19 }
  0x91   :  { %1723 = vmatpush3.bf16.msra.mxu0 %v1722_v28 }
  0x92   :  { %1724 = vmatprep.subr.bf16.mxu0 %v1788_v19 }
  0x93   :  { %1747 = vmatpush3.bf16.msra.mxu1 %v1746_v53 }
  0x94   :  { %1748 = vmatprep.subr.bf16.mxu1 %v1788_v19 }
  0x95   :  { %1726 = vmatpush3.bf16.msra.mxu0 %v1725_v31 }
  0x96   :  { %1727 = vmatprep.subr.bf16.mxu0 %v1788_v19 }
  0x97   :  { %1750 = vmatpush3.bf16.msra.mxu1 %v1749_v56 }
  0x98   :  { %1751 = vmatprep.subr.bf16.mxu1 %v1788_v19 }
  0x99   :  { %1729 = vmatpush3.bf16.msra.mxu0 %v1728_v34  ;;  %v976_v34 = vld [vmem:[%s2786_s5 + $0x78] sm:$0xff]  ;;  %s1764_s5 = scalar_lea.vmem %s1062_s9, 128 }
  0x9a   :  { %1730 = vmatprep.subr.bf16.mxu0 %v1788_v19  ;;  %v1758_v35 = vpack.c.bf16 %v976_v34, %v975_v33  ;;  %p1765_p0 = scmp.ne.s32.totalorder %s1062_s9, %s1764_s5  ;;  %p1770_p2 = scmp.lt.s32.totalorder %s1764_s5, %s1764_s5 }
  0x9b   :  { %1753 = vmatpush3.bf16.msra.mxu1 %v1752_v59 }
  0x9c   :  { %1754 = vmatprep.subr.bf16.mxu1 %v1788_v19  ;;  %p1771_p3 = por %p1770_p2, %p1769_p1 }
  0x9d   :  { %1732 = vmatpush3.bf16.msra.mxu0 %v1731_v37 }
  0x9e   :  { %1733 = vmatprep.subr.bf16.mxu0 %v1788_v19  ;;  %p1772_p4 = pnand %p1771_p3, %p1765_p0 }
  0x9f   :  { %1756 = vmatpush3.bf16.msra.mxu1 %v1755_v2 }
  0xa0   :  { %1757 = vmatprep.subr.bf16.mxu1 %v1788_v19 }
  0xa1   :  { %1735 = vmatpush3.bf16.msra.mxu0 %v1734_v40 }
  0xa3   :  { %1759 = vmatpush3.bf16.msra.mxu1 %v1758_v35 }
  0xf7   :  { %v1104_v62 = vpop.f32.mrb[0].mxu0 }
  0xf8   :  { %v1105_v0 = vpop.f32.mrb[1].mxu0 }
  0xf9   :  { %v1139_v1 = vpop.f32.mrb[0].mxu1  ;;  %v1106_v3 = vadd.f32 %v1105_v0, %v1104_v62 }
  0xfa   :  { %v1140_v4 = vpop.f32.mrb[1].mxu1 }
  0xfb   :  { %v1141_v5 = vadd.f32 %v1140_v4, %v1139_v1  ;;  %v373_v6 = vadd.f32 %v1106_v3, %v1069_v63 }
  0xfd   :  { %v443_v7 = vadd.f32 %v1141_v5, %v373_v6 }
 0x117   :  { %v1174_v8 = vpop.f32.mrb[2].mxu0 }
 0x118   :  { %v1175_v9 = vpop.f32.mrb[3].mxu0 }
 0x119   :  { %v1209_v10 = vpop.f32.mrb[2].mxu1  ;;  %v1176_v11 = vadd.f32 %v1175_v9, %v1174_v8 }
 0x11a   :  { %v1210_v12 = vpop.f32.mrb[3].mxu1 }
 0x11b   :  { %v1211_v13 = vadd.f32 %v1210_v12, %v1209_v10  ;;  %v513_v14 = vadd.f32 %v1176_v11, %v443_v7 }
 0x11d   :  { %v583_v15 = vadd.f32 %v1211_v13, %v513_v14 }
 0x137   :  { %v1244_v16 = vpop.f32.mrb[4].mxu0 }
 0x138   :  { %v1245_v17 = vpop.f32.mrb[5].mxu0 }
 0x139   :  { %v1279_v18 = vpop.f32.mrb[4].mxu1  ;;  %v1246_v20 = vadd.f32 %v1245_v17, %v1244_v16 }
 0x13a   :  { %v1280_v21 = vpop.f32.mrb[5].mxu1 }
 0x13b   :  { %v1281_v22 = vadd.f32 %v1280_v21, %v1279_v18  ;;  %v653_v23 = vadd.f32 %v1246_v20, %v583_v15 }
 0x13d   :  { %v723_v24 = vadd.f32 %v1281_v22, %v653_v23 }
 0x157   :  { %v1314_v25 = vpop.f32.mrb[6].mxu0 }
 0x158   :  { %v1315_v26 = vpop.f32.mrb[7].mxu0 }
 0x159   :  { %v1349_v27 = vpop.f32.mrb[6].mxu1  ;;  %v1316_v19 = vadd.f32 %v1315_v26, %v1314_v25 }
 0x15a   :  { %v1350_v28 = vpop.f32.mrb[7].mxu1 }
 0x15b   :  { %v1351_v29 = vadd.f32 %v1350_v28, %v1349_v27  ;;  %v793_v30 = vadd.f32 %v1316_v19, %v723_v24 }
 0x15d   :  { %v863_v31 = vadd.f32 %v1351_v29, %v793_v30 }
 0x15f   :  { %v866_v32 = vmax.f32 %v863_v31, 0.0 }
 0x161   :  { %1419 = vmatmul.mubr.f32.vlgmr.msra.gmra.mrb[8].mxu0 %v866_v32 }
 0x234   :  { %v956_v37 = vpop.f32.mrb[8].mxu0 }
 0x235   :  { %v957_v38 = vadd.f32 %v1070_v36, %v956_v37  ;;  %v1420_v39 = vpop.f32.mrb[9].mxu0 }
 0x237   :  { %v960_v40 = vmax.f32 %v957_v38, 0.0 }
 0x239   :  { %1454 = vmatmul.mubr.f32.vlgmr.msra.gmra.mrb[8].mxu1 %v960_v40 }
 0x30c   :  { %v1050_v42 = vpop.f32.mrb[8].mxu1 }
 0x30d   :  { %v1051_v43 = vadd.f32 %v1071_v41, %v1050_v42  ;;  %v1455_v44 = vpop.f32.mrb[9].mxu1 }
 0x30f   :  { %1054 = vst [vmem:[#allocation2] sm:$0xff] %v1051_v43 }
 0x310   :  { %1775 = shalt.err (!%p1772_p4)
}
 0x311   :  { %s1776_s11 = scalar_lea.hbm %s2788_s7, 128 }
 0x312   :  { %p1777_p5 = scmp.ne.s32.totalorder %s2788_s7, %s1776_s11  ;;  %p1780_p6 = scmp.lt.u32.totalorder %s1776_s11, %s2788_s7 }
 0x314   :  { %p1782_p7 = pnand %p1780_p6, %p1777_p5 }
 0x316   :  { %1785 = shalt.err (!%p1782_p7)
}
 0x317   :  { %1064 = dma.vmem_to_hbm [thread:$0]  %s1062_s9, 128, %s2788_s7, [#allocation3]  }
 0x318   :  { %1786 = dma.done.wait [#allocation3], 128  }
 0x319   :  { %1787 = vsyncadd [#allocation3], 4294967168 }
 0x31a   :  { %1068 = vsyncpa [#allocation3], 1 }

</bundles_post_ra>
